<compile_context>
chip_gen: v5e
topology: v5e:2x2
jax: 0.10.0
libtpu: 0.0.40
codegen_flags: <defaults>
</compile_context>

<pallas_src>
import math

import jax
import jax.numpy as jnp
from jax.experimental import pallas as pl
from jax.experimental.pallas import tpu as pltpu

# ---------------- model hyper-parameters (small, consistent with the module) ----------------
HID_DIM = 32
PF_DIM = 64
N_HEADS = 4
N_LAYERS = 2
HEAD_DIM = HID_DIM // N_HEADS
OUTPUT_DIM = 48          # trg vocab size
PAD_IDX = 1
MAX_POS = 1000
EPS = 1e-5               # nn.LayerNorm default
V_PAD = 128              # lane-padded logits width (dense stores)
NEG_INF = -1e10


# ---------------- in-kernel helpers (VMEM-resident values only) ----------------

def _layer_norm(z, g, b):
    mean = jnp.mean(z, axis=-1, keepdims=True)
    var = jnp.mean((z - mean) ** 2, axis=-1, keepdims=True)
    return (z - mean) * jax.lax.rsqrt(var + EPS) * g + b


def _mha(q_in, kv_in, layer, watt_ref, batt_ref, wo_ref, bo_ref, bias):
    """Multi-head attention on batch-stacked slabs.

    q_in : (M, D) bf16 queries   (M = Bb * T rows)
    kv_in: (Mk, D) bf16 keys/values source
    bias : (M, Mk) f32 additive mask (0 = attend, -1e10 = masked; block-diagonal over batch)
    watt_ref: (L*3*H, D, Hd) bf16, batt_ref: (L*3*H, 1, Hd) f32  (W_q pre-scaled by 1/sqrt(Hd))
    wo_ref  : (L*H, Hd, D)  bf16, bo_ref : (L, 1, D) f32
    """
    base = layer * 3 * N_HEADS
    acc = None
    for h in range(N_HEADS):                       # unrolled; per-head weights -> no lane slicing
        iq = base + h
        ik = base + N_HEADS + h
        iv = base + 2 * N_HEADS + h
        qh = jnp.dot(q_in, watt_ref[iq], preferred_element_type=jnp.float32) + batt_ref[iq]
        kh = jnp.dot(kv_in, watt_ref[ik], preferred_element_type=jnp.float32) + batt_ref[ik]
        vh = jnp.dot(kv_in, watt_ref[iv], preferred_element_type=jnp.float32) + batt_ref[iv]
        # energy = Q @ K^T   (scale already folded into W_q / b_q)
        e = jax.lax.dot_general(qh.astype(jnp.bfloat16), kh.astype(jnp.bfloat16),
                                (((1,), (1,)), ((), ())),
                                preferred_element_type=jnp.float32)        # (M, Mk)
        e = e + bias                                                        # additive mask
        m = jnp.max(e, axis=-1, keepdims=True)
        p = jnp.exp(e - m)
        p = p * pl.reciprocal(jnp.sum(p, axis=-1, keepdims=True), approx=True)
        ctx = jnp.dot(p.astype(jnp.bfloat16), vh.astype(jnp.bfloat16),
                      preferred_element_type=jnp.float32)                   # (M, Hd)
        contrib = jnp.dot(ctx.astype(jnp.bfloat16), wo_ref[layer * N_HEADS + h],
                          preferred_element_type=jnp.float32)               # (M, D)
        acc = contrib if acc is None else acc + contrib
    return acc + bo_ref[layer]


# ---------------- the fused decoder kernel (whole stack, Bb batch elements / step) --------------

def _decoder_kernel(x_ref, src_ref, bself_ref, bcross_ref,
                    watt_s_ref, batt_s_ref, wo_s_ref, bo_s_ref,
                    watt_c_ref, batt_c_ref, wo_c_ref, bo_c_ref,
                    wf1_ref, bf1_ref, wf2_ref, bf2_ref,
                    lng_ref, lnb_ref, fcw_ref, fcb_ref,
                    out_ref):
    x = x_ref[...]                                    # (M, D)  f32 batch-stacked embedded trg
    src_b16 = src_ref[...].astype(jnp.bfloat16)       # (Mk, D) bf16 batch-stacked encoder output
    bias_self = bself_ref[...]                        # (M, M)  additive mask
    bias_cross = bcross_ref[...]                      # (M, Mk) additive mask

    for l in range(N_LAYERS):                         # unrolled layer loop
        g, b = lng_ref[l], lnb_ref[l]                 # ONE shared LayerNorm per layer (per spec)

        # --- self attention + residual + LN ---
        xb = x.astype(jnp.bfloat16)
        sa = _mha(xb, xb, l, watt_s_ref, batt_s_ref, wo_s_ref, bo_s_ref, bias_self)
        x = _layer_norm(x + sa, g, b)

        # --- encoder (cross) attention + residual + LN ---
        xb = x.astype(jnp.bfloat16)
        ca = _mha(xb, src_b16, l, watt_c_ref, batt_c_ref, wo_c_ref, bo_c_ref, bias_cross)
        x = _layer_norm(x + ca, g, b)

        # --- positionwise feed-forward (Conv1d k=1 == per-position linear) ---
        xb = x.astype(jnp.bfloat16)
        h = jnp.maximum(
            jnp.dot(xb, wf1_ref[l], preferred_element_type=jnp.float32) + bf1_ref[l], 0.0)
        ff = jnp.dot(h.astype(jnp.bfloat16), wf2_ref[l],
                     preferred_element_type=jnp.float32) + bf2_ref[l]
        x = _layer_norm(x + ff, g, b)

    # final vocab projection; lane-padded to 128 -> dense unmasked store
    out_ref[...] = jnp.dot(x.astype(jnp.bfloat16), fcw_ref[...],
                           preferred_element_type=jnp.float32) + fcb_ref[...]


# ---------------- wrapper (Decoder.forward) ----------------

def _block_diag_bias(per_batch, bb):
    """(G*Bb, Tq, Tk) additive bias -> (G, Bb*Tq, Bb*Tk), cross-batch pairs masked."""
    gbb, tq, tk = per_batch.shape
    g = gbb // bb
    grp = per_batch.reshape(g, bb, tq, tk)
    eye = jnp.eye(bb, dtype=bool)
    out = jnp.where(eye[None, :, :, None, None], grp[:, :, None, :, :],
                    jnp.float32(NEG_INF))              # (G, i, j, Tq, Tk)
    out = jnp.transpose(out, (0, 1, 3, 2, 4)).reshape(g, bb * tq, bb * tk)
    return out


def decoder_forward(params, trg_ids, enc_src, trg_mask, src_mask, *, batch_block=None):
    """Decoder.forward(trg, src, trg_mask, src_mask) -> (B, T, OUTPUT_DIM) logits."""
    B, T = trg_ids.shape
    S = enc_src.shape[1]
    D, PF, L, H = HID_DIM, PF_DIM, N_LAYERS, N_HEADS
    Sp = ((S + 7) // 8) * 8                       # pad encoder length to a sublane multiple

    if batch_block is None:
        cap = max(1, 128 // T)                    # keep slab M <= 128 rows
        batch_block = max(1, min(cap, (B + 1) // 2))   # >= 2 grid steps when B >= 2 (v7x: 2 TCs)
    Bb = batch_block
    G = -(-B // Bb)
    Bpad = G * Bb
    M, Mk = Bb * T, Bb * Sp

    # token + positional embedding (plain-JAX gather; dropout is identity in eval)
    pos = jnp.arange(T)
    x = (jnp.take(params["tok_emb"], trg_ids, axis=0) * math.sqrt(D)
         + params["pos_emb"][pos][None])                                   # (B, T, D)

    # additive mask biases (0 attend / -1e10 masked)
    bias_self_pb = (trg_mask[:, 0].astype(jnp.float32) - 1.0) * 1e10        # (B, T, T)
    m_cross = jnp.broadcast_to(src_mask[:, 0].astype(jnp.float32), (B, T, S))
    bias_cross_pb = (m_cross - 1.0) * 1e10
    bias_cross_pb = jnp.pad(bias_cross_pb, ((0, 0), (0, 0), (0, Sp - S)),
                            constant_values=NEG_INF)                        # (B, T, Sp)

    enc_p = jnp.pad(enc_src, ((0, 0), (0, Sp - S), (0, 0)))                 # (B, Sp, D)

    if Bpad != B:
        pb = Bpad - B
        x = jnp.pad(x, ((0, pb), (0, 0), (0, 0)))
        enc_p = jnp.pad(enc_p, ((0, pb), (0, 0), (0, 0)))
        bias_self_pb = jnp.pad(bias_self_pb, ((0, pb), (0, 0), (0, 0)))
        bias_cross_pb = jnp.pad(bias_cross_pb, ((0, pb), (0, 0), (0, 0)))

    x_slab = x.reshape(Bpad * T, D)
    enc_slab = enc_p.reshape(Bpad * Sp, D)
    bias_self = _block_diag_bias(bias_self_pb, Bb)       # (G, M, M)
    bias_cross = _block_diag_bias(bias_cross_pb, Bb)     # (G, M, Mk)

    def wspec(shape):                                    # full, grid-invariant weight block
        n = len(shape)
        return pl.BlockSpec(shape, lambda g_, _n=n: (0,) * _n)

    out = pl.pallas_call(
        _decoder_kernel,
        out_shape=jax.ShapeDtypeStruct((Bpad * T, V_PAD), jnp.float32),
        grid=(G,),
        in_specs=[
            pl.BlockSpec((M, D), lambda g: (g, 0)),            # embedded trg slab
            pl.BlockSpec((Mk, D), lambda g: (g, 0)),           # encoder output slab
            pl.BlockSpec((None, M, M), lambda g: (g, 0, 0)),   # self-attn additive mask
            pl.BlockSpec((None, M, Mk), lambda g: (g, 0, 0)),  # cross-attn additive mask
            wspec((L * 3 * H, D, HEAD_DIM)), wspec((L * 3 * H, 1, HEAD_DIM)),   # self QKV (per-head)
            wspec((L * H, HEAD_DIM, D)), wspec((L, 1, D)),                      # self out-proj
            wspec((L * 3 * H, D, HEAD_DIM)), wspec((L * 3 * H, 1, HEAD_DIM)),   # cross QKV (per-head)
            wspec((L * H, HEAD_DIM, D)), wspec((L, 1, D)),                      # cross out-proj
            wspec((L, D, PF)), wspec((L, 1, PF)),                               # FFN fc_1
            wspec((L, PF, D)), wspec((L, 1, D)),                                # FFN fc_2
            wspec((L, 1, D)), wspec((L, 1, D)),                                 # shared LayerNorm
            wspec((D, V_PAD)), wspec((1, V_PAD)),                               # final fc (lane-padded)
        ],
        out_specs=pl.BlockSpec((M, V_PAD), lambda g: (g, 0)),
        compiler_params=pltpu.CompilerParams(dimension_semantics=("parallel",)),
    )(x_slab, enc_slab, bias_self, bias_cross,
      params["w_att_self"], params["b_att_self"], params["w_o_self"], params["b_o_self"],
      params["w_att_cross"], params["b_att_cross"], params["w_o_cross"], params["b_o_cross"],
      params["w_ff1"], params["b_ff1"], params["w_ff2"], params["b_ff2"],
      params["ln_g"], params["ln_b"], params["fc_w"], params["fc_b"])

    return out.reshape(Bpad, T, V_PAD)[:B, :, :OUTPUT_DIM]


# ---------------- parameters: canonical (reference) + kernel-layout ----------------

def init_canonical_params(key):
    D, PF, L, V = HID_DIM, PF_DIM, N_LAYERS, OUTPUT_DIM
    keys = iter(jax.random.split(key, 64))

    def w(shape):
        return jax.random.normal(next(keys), shape, jnp.float32) * 0.02

    def attn():
        return {"w_q": w((D, D)), "b_q": w((1, D)),
                "w_k": w((D, D)), "b_k": w((1, D)),
                "w_v": w((D, D)), "b_v": w((1, D)),
                "w_o": w((D, D)), "b_o": w((1, D))}

    layers = [{"self": attn(), "cross": attn(),
               "w_ff1": w((D, PF)), "b_ff1": w((1, PF)),
               "w_ff2": w((PF, D)), "b_ff2": w((1, D)),
               "ln_g": jnp.ones((1, D), jnp.float32),
               "ln_b": jnp.zeros((1, D), jnp.float32)} for _ in range(L)]

    return {"tok_emb": w((V, D)), "pos_emb": w((MAX_POS, D)),
            "fc_w": w((D, V)), "fc_b": w((1, V)), "layers": layers}


def make_kernel_params(cp):
    """Kernel layout: per-head major-axis weight stacks, attention scale folded into W_q/b_q,
    bf16 MXU operands, lane-padded final projection."""
    scale = 1.0 / math.sqrt(HEAD_DIM)
    bf = lambda a: a.astype(jnp.bfloat16)

    def att_stacks(which):
        w_rows, b_rows, wo_rows, bo_rows = [], [], [], []
        for l in range(N_LAYERS):
            a = cp["layers"][l][which]
            per = [("q", a["w_q"] * scale, a["b_q"] * scale),
                   ("k", a["w_k"], a["b_k"]),
                   ("v", a["w_v"], a["b_v"])]
            for _, w_full, b_full in per:
                for h in range(N_HEADS):
                    sl = slice(h * HEAD_DIM, (h + 1) * HEAD_DIM)
                    w_rows.append(w_full[:, sl])          # (D, Hd)
                    b_rows.append(b_full[:, sl])          # (1, Hd)
            for h in range(N_HEADS):
                sl = slice(h * HEAD_DIM, (h + 1) * HEAD_DIM)
                wo_rows.append(a["w_o"][sl, :])           # (Hd, D)
            bo_rows.append(a["b_o"])                      # (1, D)
        return (bf(jnp.stack(w_rows)), jnp.stack(b_rows),
                bf(jnp.stack(wo_rows)), jnp.stack(bo_rows))

    w_att_s, b_att_s, w_o_s, b_o_s = att_stacks("self")
    w_att_c, b_att_c, w_o_c, b_o_c = att_stacks("cross")

    stack = lambda name: jnp.stack([cp["layers"][l][name] for l in range(N_LAYERS)])

    fc_w = jnp.zeros((HID_DIM, V_PAD), jnp.float32).at[:, :OUTPUT_DIM].set(cp["fc_w"])
    fc_b = jnp.zeros((1, V_PAD), jnp.float32).at[:, :OUTPUT_DIM].set(cp["fc_b"])

    return {"tok_emb": cp["tok_emb"], "pos_emb": cp["pos_emb"],
            "w_att_self": w_att_s, "b_att_self": b_att_s,
            "w_o_self": w_o_s, "b_o_self": b_o_s,
            "w_att_cross": w_att_c, "b_att_cross": b_att_c,
            "w_o_cross": w_o_c, "b_o_cross": b_o_c,
            "w_ff1": bf(stack("w_ff1")), "b_ff1": stack("b_ff1"),
            "w_ff2": bf(stack("w_ff2")), "b_ff2": stack("b_ff2"),
            "ln_g": stack("ln_g"), "ln_b": stack("ln_b"),
            "fc_w": bf(fc_w), "fc_b": fc_b}


# ---------------- pure-JAX float32 reference (matches the PyTorch module) ----------------

def reference_decoder(cp, trg_ids, enc_src, trg_mask, src_mask):
    D = HID_DIM
    B, T = trg_ids.shape
    pos = jnp.arange(T)
    x = jnp.take(cp["tok_emb"], trg_ids, axis=0) * math.sqrt(D) + cp["pos_emb"][pos][None]

    def attention(q_in, kv_in, a, mask):
        Q = q_in @ a["w_q"] + a["b_q"]
        K = kv_in @ a["w_k"] + a["b_k"]
        V = kv_in @ a["w_v"] + a["b_v"]
        split = lambda z: z.reshape(B, -1, N_HEADS, HEAD_DIM).transpose(0, 2, 1, 3)
        Qh, Kh, Vh = split(Q), split(K), split(V)
        e = jnp.einsum("bhqd,bhkd->bhqk", Qh, Kh) / math.sqrt(HEAD_DIM)
        e = jnp.where(mask == 0, NEG_INF, e)              # masked_fill(mask == 0, -1e10)
        att = jax.nn.softmax(e, axis=-1)
        ctx = jnp.einsum("bhqk,bhkd->bhqd", att, Vh)
        ctx = ctx.transpose(0, 2, 1, 3).reshape(B, -1, HID_DIM)
        return ctx @ a["w_o"] + a["b_o"]

    def layer_norm(z, g, b):
        mu = jnp.mean(z, axis=-1, keepdims=True)
        var = jnp.mean((z - mu) ** 2, axis=-1, keepdims=True)
        return (z - mu) * jax.lax.rsqrt(var + EPS) * g + b

    for l in range(N_LAYERS):
        lp = cp["layers"][l]
        g, b = lp["ln_g"], lp["ln_b"]                     # single shared LayerNorm per layer
        x = layer_norm(x + attention(x, x, lp["self"], trg_mask), g, b)
        x = layer_norm(x + attention(x, enc_src, lp["cross"], src_mask), g, b)
        hdn = jax.nn.relu(x @ lp["w_ff1"] + lp["b_ff1"])
        x = layer_norm(x + hdn @ lp["w_ff2"] + lp["b_ff2"], g, b)
    return x @ cp["fc_w"] + cp["fc_b"]


# ---------------- main ----------------

if __name__ == "__main__":
    B, T, S = 4, 8, 10
    kp, k1, k2, k3 = jax.random.split(jax.random.PRNGKey(0), 4)

    cparams = init_canonical_params(kp)
    kparams = make_kernel_params(cparams)

    trg = jax.random.randint(k1, (B, T), 2, OUTPUT_DIM, dtype=jnp.int32)
    trg = trg.at[:, -1].set(PAD_IDX)                        # exercise target padding
    enc_src = jax.random.normal(k2, (B, S, HID_DIM), jnp.float32)

    # masks exactly as the surrounding Seq2Seq module would build them
    src_tok = jax.random.randint(k3, (B, S), 2, 50, dtype=jnp.int32).at[:, -2:].set(PAD_IDX)
    src_mask = (src_tok != PAD_IDX)[:, None, None, :]       # (B, 1, 1, S)
    trg_pad = (trg != PAD_IDX)[:, None, :, None]            # (B, 1, T, 1)
    sub = jnp.tril(jnp.ones((T, T), dtype=bool))
    trg_mask = trg_pad & sub[None, None]                    # (B, 1, T, T)

    fwd = jax.jit(decoder_forward)
    out = jax.block_until_ready(fwd(kparams, trg, enc_src, trg_mask, src_mask))

    assert out.shape == (B, T, OUTPUT_DIM), out.shape
    assert bool(jnp.all(jnp.isfinite(out)))

    # numerical check against the pure-JAX f32 reference (non-pad target rows only:
    # fully-masked pad rows differ by construction between masked_fill and additive bias)
    ref = reference_decoder(cparams, trg, enc_src, trg_mask, src_mask)
    valid = (trg != PAD_IDX)[:, :, None]
    max_err = float(jnp.max(jnp.where(valid, jnp.abs(out - ref), 0.0)))
    assert max_err < 3e-2, f"max abs err vs reference = {max_err}"

    print("KERNEL_OK")
</pallas_src>

<mosaic_0001>
module attributes {stable_mosaic.version = 11 : i64} {
  func.func @_decoder_kernel(%arg0: i32, %arg1: memref<16x32xf32, #tpu.memory_space<vmem>>, %arg2: memref<32x32xf32, #tpu.memory_space<vmem>>, %arg3: memref<1x16x16xf32, #tpu.memory_space<vmem>>, %arg4: memref<1x16x32xf32, #tpu.memory_space<vmem>>, %arg5: memref<24x32x8xbf16, #tpu.memory_space<vmem>>, %arg6: memref<24x1x8xf32, #tpu.memory_space<vmem>>, %arg7: memref<8x8x32xbf16, #tpu.memory_space<vmem>>, %arg8: memref<2x1x32xf32, #tpu.memory_space<vmem>>, %arg9: memref<24x32x8xbf16, #tpu.memory_space<vmem>>, %arg10: memref<24x1x8xf32, #tpu.memory_space<vmem>>, %arg11: memref<8x8x32xbf16, #tpu.memory_space<vmem>>, %arg12: memref<2x1x32xf32, #tpu.memory_space<vmem>>, %arg13: memref<2x32x64xbf16, #tpu.memory_space<vmem>>, %arg14: memref<2x1x64xf32, #tpu.memory_space<vmem>>, %arg15: memref<2x64x32xbf16, #tpu.memory_space<vmem>>, %arg16: memref<2x1x32xf32, #tpu.memory_space<vmem>>, %arg17: memref<2x1x32xf32, #tpu.memory_space<vmem>>, %arg18: memref<2x1x32xf32, #tpu.memory_space<vmem>>, %arg19: memref<32x128xbf16, #tpu.memory_space<vmem>>, %arg20: memref<1x128xf32, #tpu.memory_space<vmem>>, %arg21: memref<16x128xf32, #tpu.memory_space<vmem>>) attributes {dimension_semantics = [#tpu.dimension_semantics<parallel>], iteration_bounds = array<i64: 2>, scalar_prefetch = 0 : i64, scratch_operands = 0 : i64, tpu.core_type = #tpu.core_type<tc>, window_params = [{transform_indices = @transform_0, window_bounds = array<i64: 16, 32>}, {transform_indices = @transform_1, window_bounds = array<i64: 32, 32>}, {transform_indices = @transform_2, window_bounds = array<i64: 1, 16, 16>}, {transform_indices = @transform_3, window_bounds = array<i64: 1, 16, 32>}, {pipeline_mode = #tpu.pipeline_mode<synchronous>, transform_indices = @transform_4, window_bounds = array<i64: 24, 32, 8>}, {pipeline_mode = #tpu.pipeline_mode<synchronous>, transform_indices = @transform_5, window_bounds = array<i64: 24, 1, 8>}, {pipeline_mode = #tpu.pipeline_mode<synchronous>, transform_indices = @transform_6, window_bounds = array<i64: 8, 8, 32>}, {pipeline_mode = #tpu.pipeline_mode<synchronous>, transform_indices = @transform_7, window_bounds = array<i64: 2, 1, 32>}, {pipeline_mode = #tpu.pipeline_mode<synchronous>, transform_indices = @transform_8, window_bounds = array<i64: 24, 32, 8>}, {pipeline_mode = #tpu.pipeline_mode<synchronous>, transform_indices = @transform_9, window_bounds = array<i64: 24, 1, 8>}, {pipeline_mode = #tpu.pipeline_mode<synchronous>, transform_indices = @transform_10, window_bounds = array<i64: 8, 8, 32>}, {pipeline_mode = #tpu.pipeline_mode<synchronous>, transform_indices = @transform_11, window_bounds = array<i64: 2, 1, 32>}, {pipeline_mode = #tpu.pipeline_mode<synchronous>, transform_indices = @transform_12, window_bounds = array<i64: 2, 32, 64>}, {pipeline_mode = #tpu.pipeline_mode<synchronous>, transform_indices = @transform_13, window_bounds = array<i64: 2, 1, 64>}, {pipeline_mode = #tpu.pipeline_mode<synchronous>, transform_indices = @transform_14, window_bounds = array<i64: 2, 64, 32>}, {pipeline_mode = #tpu.pipeline_mode<synchronous>, transform_indices = @transform_15, window_bounds = array<i64: 2, 1, 32>}, {pipeline_mode = #tpu.pipeline_mode<synchronous>, transform_indices = @transform_16, window_bounds = array<i64: 2, 1, 32>}, {pipeline_mode = #tpu.pipeline_mode<synchronous>, transform_indices = @transform_17, window_bounds = array<i64: 2, 1, 32>}, {pipeline_mode = #tpu.pipeline_mode<synchronous>, transform_indices = @transform_18, window_bounds = array<i64: 32, 128>}, {pipeline_mode = #tpu.pipeline_mode<synchronous>, transform_indices = @transform_19, window_bounds = array<i64: 1, 128>}, {transform_indices = @transform_20, window_bounds = array<i64: 16, 128>}]} {
    %c0 = arith.constant 0 : index
    %c0_0 = arith.constant 0 : index
    %0 = vector.load %arg1[%c0, %c0_0] : memref<16x32xf32, #tpu.memory_space<vmem>>, vector<16x32xf32>
    %c0_1 = arith.constant 0 : index
    %c0_2 = arith.constant 0 : index
    %1 = vector.load %arg2[%c0_1, %c0_2] : memref<32x32xf32, #tpu.memory_space<vmem>>, vector<32x32xf32>
    %2 = arith.truncf %1 : vector<32x32xf32> to vector<32x32xbf16>
    %c0_3 = arith.constant 0 : index
    %c0_4 = arith.constant 0 : index
    %c0_5 = arith.constant 0 : index
    %3 = vector.load %arg3[%c0_3, %c0_4, %c0_5] : memref<1x16x16xf32, #tpu.memory_space<vmem>>, vector<1x16x16xf32>
    %4 = vector.shape_cast %3 : vector<1x16x16xf32> to vector<16x16xf32>
    %c0_6 = arith.constant 0 : index
    %c0_7 = arith.constant 0 : index
    %c0_8 = arith.constant 0 : index
    %5 = vector.load %arg4[%c0_6, %c0_7, %c0_8] : memref<1x16x32xf32, #tpu.memory_space<vmem>>, vector<1x16x32xf32>
    %6 = vector.shape_cast %5 : vector<1x16x32xf32> to vector<16x32xf32>
    %c0_9 = arith.constant 0 : index
    %c0_10 = arith.constant 0 : index
    %c0_11 = arith.constant 0 : index
    %7 = vector.load %arg17[%c0_9, %c0_10, %c0_11] : memref<2x1x32xf32, #tpu.memory_space<vmem>>, vector<1x1x32xf32>
    %8 = vector.shape_cast %7 : vector<1x1x32xf32> to vector<1x32xf32>
    %c0_12 = arith.constant 0 : index
    %c0_13 = arith.constant 0 : index
    %c0_14 = arith.constant 0 : index
    %9 = vector.load %arg18[%c0_12, %c0_13, %c0_14] : memref<2x1x32xf32, #tpu.memory_space<vmem>>, vector<1x1x32xf32>
    %10 = vector.shape_cast %9 : vector<1x1x32xf32> to vector<1x32xf32>
    %11 = arith.truncf %0 : vector<16x32xf32> to vector<16x32xbf16>
    %c0_15 = arith.constant 0 : index
    %c0_16 = arith.constant 0 : index
    %c0_17 = arith.constant 0 : index
    %12 = vector.load %arg5[%c0_15, %c0_16, %c0_17] : memref<24x32x8xbf16, #tpu.memory_space<vmem>>, vector<1x32x8xbf16>
    %13 = vector.shape_cast %12 : vector<1x32x8xbf16> to vector<32x8xbf16>
    %cst = arith.constant dense<0.000000e+00> : vector<16x8xf32>
    %14 = tpu.matmul %11, %13, %cst {dimension_numbers = #tpu.dot_dimension_numbers<[1], [0], [0], [1], [0, 0, 1, 1], [], []>} : vector<16x32xbf16>, vector<32x8xbf16>, vector<16x8xf32> -> vector<16x8xf32>
    %c0_18 = arith.constant 0 : index
    %c0_19 = arith.constant 0 : index
    %c0_20 = arith.constant 0 : index
    %15 = vector.load %arg6[%c0_18, %c0_19, %c0_20] : memref<24x1x8xf32, #tpu.memory_space<vmem>>, vector<1x1x8xf32>
    %16 = vector.shape_cast %15 : vector<1x1x8xf32> to vector<1x8xf32>
    %17 = vector.broadcast %16 : vector<1x8xf32> to vector<16x8xf32>
    %18 = arith.addf %14, %17 : vector<16x8xf32>
    %c4 = arith.constant 4 : index
    %c0_21 = arith.constant 0 : index
    %c0_22 = arith.constant 0 : index
    %19 = vector.load %arg5[%c4, %c0_21, %c0_22] : memref<24x32x8xbf16, #tpu.memory_space<vmem>>, vector<1x32x8xbf16>
    %20 = vector.shape_cast %19 : vector<1x32x8xbf16> to vector<32x8xbf16>
    %cst_23 = arith.constant dense<0.000000e+00> : vector<16x8xf32>
    %21 = tpu.matmul %11, %20, %cst_23 {dimension_numbers = #tpu.dot_dimension_numbers<[1], [0], [0], [1], [0, 0, 1, 1], [], []>} : vector<16x32xbf16>, vector<32x8xbf16>, vector<16x8xf32> -> vector<16x8xf32>
    %c4_24 = arith.constant 4 : index
    %c0_25 = arith.constant 0 : index
    %c0_26 = arith.constant 0 : index
    %22 = vector.load %arg6[%c4_24, %c0_25, %c0_26] : memref<24x1x8xf32, #tpu.memory_space<vmem>>, vector<1x1x8xf32>
    %23 = vector.shape_cast %22 : vector<1x1x8xf32> to vector<1x8xf32>
    %24 = vector.broadcast %23 : vector<1x8xf32> to vector<16x8xf32>
    %25 = arith.addf %21, %24 : vector<16x8xf32>
    %c8 = arith.constant 8 : index
    %c0_27 = arith.constant 0 : index
    %c0_28 = arith.constant 0 : index
    %26 = vector.load %arg5[%c8, %c0_27, %c0_28] : memref<24x32x8xbf16, #tpu.memory_space<vmem>>, vector<1x32x8xbf16>
    %27 = vector.shape_cast %26 : vector<1x32x8xbf16> to vector<32x8xbf16>
    %cst_29 = arith.constant dense<0.000000e+00> : vector<16x8xf32>
    %28 = tpu.matmul %11, %27, %cst_29 {dimension_numbers = #tpu.dot_dimension_numbers<[1], [0], [0], [1], [0, 0, 1, 1], [], []>} : vector<16x32xbf16>, vector<32x8xbf16>, vector<16x8xf32> -> vector<16x8xf32>
    %c8_30 = arith.constant 8 : index
    %c0_31 = arith.constant 0 : index
    %c0_32 = arith.constant 0 : index
    %29 = vector.load %arg6[%c8_30, %c0_31, %c0_32] : memref<24x1x8xf32, #tpu.memory_space<vmem>>, vector<1x1x8xf32>
    %30 = vector.shape_cast %29 : vector<1x1x8xf32> to vector<1x8xf32>
    %31 = vector.broadcast %30 : vector<1x8xf32> to vector<16x8xf32>
    %32 = arith.addf %28, %31 : vector<16x8xf32>
    %33 = arith.truncf %18 : vector<16x8xf32> to vector<16x8xbf16>
    %34 = arith.truncf %25 : vector<16x8xf32> to vector<16x8xbf16>
    %cst_33 = arith.constant dense<0.000000e+00> : vector<16x16xf32>
    %35 = tpu.matmul %33, %34, %cst_33 {dimension_numbers = #tpu.dot_dimension_numbers<[1], [1], [0], [0], [0, 0, 1, 0], [], []>} : vector<16x8xbf16>, vector<16x8xbf16>, vector<16x16xf32> -> vector<16x16xf32>
    %36 = arith.addf %35, %4 : vector<16x16xf32>
    %cst_34 = arith.constant dense<0xFF800000> : vector<16xf32>
    %37 = vector.multi_reduction <maximumf>, %36, %cst_34 [1] : vector<16x16xf32> to vector<16xf32>
    %38 = vector.shape_cast %37 : vector<16xf32> to vector<16x1xf32>
    %39 = vector.broadcast %38 : vector<16x1xf32> to vector<16x16xf32>
    %40 = arith.subf %36, %39 : vector<16x16xf32>
    %41 = math.exp %40 : vector<16x16xf32>
    %cst_35 = arith.constant dense<0.000000e+00> : vector<16xf32>
    %42 = vector.multi_reduction <add>, %41, %cst_35 [1] : vector<16x16xf32> to vector<16xf32>
    %43 = vector.shape_cast %42 : vector<16xf32> to vector<16x1xf32>
    %44 = tpu.reciprocal %43 {approx = true} : vector<16x1xf32> -> vector<16x1xf32>
    %45 = vector.broadcast %44 : vector<16x1xf32> to vector<16x16xf32>
    %46 = arith.mulf %41, %45 : vector<16x16xf32>
    %47 = arith.truncf %46 : vector<16x16xf32> to vector<16x16xbf16>
    %48 = arith.truncf %32 : vector<16x8xf32> to vector<16x8xbf16>
    %cst_36 = arith.constant dense<0.000000e+00> : vector<16x8xf32>
    %49 = tpu.matmul %47, %48, %cst_36 {dimension_numbers = #tpu.dot_dimension_numbers<[1], [0], [0], [1], [0, 0, 1, 1], [], []>} : vector<16x16xbf16>, vector<16x8xbf16>, vector<16x8xf32> -> vector<16x8xf32>
    %50 = arith.truncf %49 : vector<16x8xf32> to vector<16x8xbf16>
    %c0_37 = arith.constant 0 : index
    %c0_38 = arith.constant 0 : index
    %c0_39 = arith.constant 0 : index
    %51 = vector.load %arg7[%c0_37, %c0_38, %c0_39] : memref<8x8x32xbf16, #tpu.memory_space<vmem>>, vector<1x8x32xbf16>
    %52 = vector.shape_cast %51 : vector<1x8x32xbf16> to vector<8x32xbf16>
    %cst_40 = arith.constant dense<0.000000e+00> : vector<16x32xf32>
    %53 = tpu.matmul %50, %52, %cst_40 {dimension_numbers = #tpu.dot_dimension_numbers<[1], [0], [0], [1], [0, 0, 1, 1], [], []>} : vector<16x8xbf16>, vector<8x32xbf16>, vector<16x32xf32> -> vector<16x32xf32>
    %c1 = arith.constant 1 : index
    %c0_41 = arith.constant 0 : index
    %c0_42 = arith.constant 0 : index
    %54 = vector.load %arg5[%c1, %c0_41, %c0_42] : memref<24x32x8xbf16, #tpu.memory_space<vmem>>, vector<1x32x8xbf16>
    %55 = vector.shape_cast %54 : vector<1x32x8xbf16> to vector<32x8xbf16>
    %cst_43 = arith.constant dense<0.000000e+00> : vector<16x8xf32>
    %56 = tpu.matmul %11, %55, %cst_43 {dimension_numbers = #tpu.dot_dimension_numbers<[1], [0], [0], [1], [0, 0, 1, 1], [], []>} : vector<16x32xbf16>, vector<32x8xbf16>, vector<16x8xf32> -> vector<16x8xf32>
    %c1_44 = arith.constant 1 : index
    %c0_45 = arith.constant 0 : index
    %c0_46 = arith.constant 0 : index
    %57 = vector.load %arg6[%c1_44, %c0_45, %c0_46] : memref<24x1x8xf32, #tpu.memory_space<vmem>>, vector<1x1x8xf32>
    %58 = vector.shape_cast %57 : vector<1x1x8xf32> to vector<1x8xf32>
    %59 = vector.broadcast %58 : vector<1x8xf32> to vector<16x8xf32>
    %60 = arith.addf %56, %59 : vector<16x8xf32>
    %c5 = arith.constant 5 : index
    %c0_47 = arith.constant 0 : index
    %c0_48 = arith.constant 0 : index
    %61 = vector.load %arg5[%c5, %c0_47, %c0_48] : memref<24x32x8xbf16, #tpu.memory_space<vmem>>, vector<1x32x8xbf16>
    %62 = vector.shape_cast %61 : vector<1x32x8xbf16> to vector<32x8xbf16>
    %cst_49 = arith.constant dense<0.000000e+00> : vector<16x8xf32>
    %63 = tpu.matmul %11, %62, %cst_49 {dimension_numbers = #tpu.dot_dimension_numbers<[1], [0], [0], [1], [0, 0, 1, 1], [], []>} : vector<16x32xbf16>, vector<32x8xbf16>, vector<16x8xf32> -> vector<16x8xf32>
    %c5_50 = arith.constant 5 : index
    %c0_51 = arith.constant 0 : index
    %c0_52 = arith.constant 0 : index
    %64 = vector.load %arg6[%c5_50, %c0_51, %c0_52] : memref<24x1x8xf32, #tpu.memory_space<vmem>>, vector<1x1x8xf32>
    %65 = vector.shape_cast %64 : vector<1x1x8xf32> to vector<1x8xf32>
    %66 = vector.broadcast %65 : vector<1x8xf32> to vector<16x8xf32>
    %67 = arith.addf %63, %66 : vector<16x8xf32>
    %c9 = arith.constant 9 : index
    %c0_53 = arith.constant 0 : index
    %c0_54 = arith.constant 0 : index
    %68 = vector.load %arg5[%c9, %c0_53, %c0_54] : memref<24x32x8xbf16, #tpu.memory_space<vmem>>, vector<1x32x8xbf16>
    %69 = vector.shape_cast %68 : vector<1x32x8xbf16> to vector<32x8xbf16>
    %cst_55 = arith.constant dense<0.000000e+00> : vector<16x8xf32>
    %70 = tpu.matmul %11, %69, %cst_55 {dimension_numbers = #tpu.dot_dimension_numbers<[1], [0], [0], [1], [0, 0, 1, 1], [], []>} : vector<16x32xbf16>, vector<32x8xbf16>, vector<16x8xf32> -> vector<16x8xf32>
    %c9_56 = arith.constant 9 : index
    %c0_57 = arith.constant 0 : index
    %c0_58 = arith.constant 0 : index
    %71 = vector.load %arg6[%c9_56, %c0_57, %c0_58] : memref<24x1x8xf32, #tpu.memory_space<vmem>>, vector<1x1x8xf32>
    %72 = vector.shape_cast %71 : vector<1x1x8xf32> to vector<1x8xf32>
    %73 = vector.broadcast %72 : vector<1x8xf32> to vector<16x8xf32>
    %74 = arith.addf %70, %73 : vector<16x8xf32>
    %75 = arith.truncf %60 : vector<16x8xf32> to vector<16x8xbf16>
    %76 = arith.truncf %67 : vector<16x8xf32> to vector<16x8xbf16>
    %cst_59 = arith.constant dense<0.000000e+00> : vector<16x16xf32>
    %77 = tpu.matmul %75, %76, %cst_59 {dimension_numbers = #tpu.dot_dimension_numbers<[1], [1], [0], [0], [0, 0, 1, 0], [], []>} : vector<16x8xbf16>, vector<16x8xbf16>, vector<16x16xf32> -> vector<16x16xf32>
    %78 = arith.addf %77, %4 : vector<16x16xf32>
    %cst_60 = arith.constant dense<0xFF800000> : vector<16xf32>
    %79 = vector.multi_reduction <maximumf>, %78, %cst_60 [1] : vector<16x16xf32> to vector<16xf32>
    %80 = vector.shape_cast %79 : vector<16xf32> to vector<16x1xf32>
    %81 = vector.broadcast %80 : vector<16x1xf32> to vector<16x16xf32>
    %82 = arith.subf %78, %81 : vector<16x16xf32>
    %83 = math.exp %82 : vector<16x16xf32>
    %cst_61 = arith.constant dense<0.000000e+00> : vector<16xf32>
    %84 = vector.multi_reduction <add>, %83, %cst_61 [1] : vector<16x16xf32> to vector<16xf32>
    %85 = vector.shape_cast %84 : vector<16xf32> to vector<16x1xf32>
    %86 = tpu.reciprocal %85 {approx = true} : vector<16x1xf32> -> vector<16x1xf32>
    %87 = vector.broadcast %86 : vector<16x1xf32> to vector<16x16xf32>
    %88 = arith.mulf %83, %87 : vector<16x16xf32>
    %89 = arith.truncf %88 : vector<16x16xf32> to vector<16x16xbf16>
    %90 = arith.truncf %74 : vector<16x8xf32> to vector<16x8xbf16>
    %cst_62 = arith.constant dense<0.000000e+00> : vector<16x8xf32>
    %91 = tpu.matmul %89, %90, %cst_62 {dimension_numbers = #tpu.dot_dimension_numbers<[1], [0], [0], [1], [0, 0, 1, 1], [], []>} : vector<16x16xbf16>, vector<16x8xbf16>, vector<16x8xf32> -> vector<16x8xf32>
    %92 = arith.truncf %91 : vector<16x8xf32> to vector<16x8xbf16>
    %c1_63 = arith.constant 1 : index
    %c0_64 = arith.constant 0 : index
    %c0_65 = arith.constant 0 : index
    %93 = vector.load %arg7[%c1_63, %c0_64, %c0_65] : memref<8x8x32xbf16, #tpu.memory_space<vmem>>, vector<1x8x32xbf16>
    %94 = vector.shape_cast %93 : vector<1x8x32xbf16> to vector<8x32xbf16>
    %cst_66 = arith.constant dense<0.000000e+00> : vector<16x32xf32>
    %95 = tpu.matmul %92, %94, %cst_66 {dimension_numbers = #tpu.dot_dimension_numbers<[1], [0], [0], [1], [0, 0, 1, 1], [], []>} : vector<16x8xbf16>, vector<8x32xbf16>, vector<16x32xf32> -> vector<16x32xf32>
    %96 = arith.addf %53, %95 : vector<16x32xf32>
    %c2 = arith.constant 2 : index
    %c0_67 = arith.constant 0 : index
    %c0_68 = arith.constant 0 : index
    %97 = vector.load %arg5[%c2, %c0_67, %c0_68] : memref<24x32x8xbf16, #tpu.memory_space<vmem>>, vector<1x32x8xbf16>
    %98 = vector.shape_cast %97 : vector<1x32x8xbf16> to vector<32x8xbf16>
    %cst_69 = arith.constant dense<0.000000e+00> : vector<16x8xf32>
    %99 = tpu.matmul %11, %98, %cst_69 {dimension_numbers = #tpu.dot_dimension_numbers<[1], [0], [0], [1], [0, 0, 1, 1], [], []>} : vector<16x32xbf16>, vector<32x8xbf16>, vector<16x8xf32> -> vector<16x8xf32>
    %c2_70 = arith.constant 2 : index
    %c0_71 = arith.constant 0 : index
    %c0_72 = arith.constant 0 : index
    %100 = vector.load %arg6[%c2_70, %c0_71, %c0_72] : memref<24x1x8xf32, #tpu.memory_space<vmem>>, vector<1x1x8xf32>
    %101 = vector.shape_cast %100 : vector<1x1x8xf32> to vector<1x8xf32>
    %102 = vector.broadcast %101 : vector<1x8xf32> to vector<16x8xf32>
    %103 = arith.addf %99, %102 : vector<16x8xf32>
    %c6 = arith.constant 6 : index
    %c0_73 = arith.constant 0 : index
    %c0_74 = arith.constant 0 : index
    %104 = vector.load %arg5[%c6, %c0_73, %c0_74] : memref<24x32x8xbf16, #tpu.memory_space<vmem>>, vector<1x32x8xbf16>
    %105 = vector.shape_cast %104 : vector<1x32x8xbf16> to vector<32x8xbf16>
    %cst_75 = arith.constant dense<0.000000e+00> : vector<16x8xf32>
    %106 = tpu.matmul %11, %105, %cst_75 {dimension_numbers = #tpu.dot_dimension_numbers<[1], [0], [0], [1], [0, 0, 1, 1], [], []>} : vector<16x32xbf16>, vector<32x8xbf16>, vector<16x8xf32> -> vector<16x8xf32>
    %c6_76 = arith.constant 6 : index
    %c0_77 = arith.constant 0 : index
    %c0_78 = arith.constant 0 : index
    %107 = vector.load %arg6[%c6_76, %c0_77, %c0_78] : memref<24x1x8xf32, #tpu.memory_space<vmem>>, vector<1x1x8xf32>
    %108 = vector.shape_cast %107 : vector<1x1x8xf32> to vector<1x8xf32>
    %109 = vector.broadcast %108 : vector<1x8xf32> to vector<16x8xf32>
    %110 = arith.addf %106, %109 : vector<16x8xf32>
    %c10 = arith.constant 10 : index
    %c0_79 = arith.constant 0 : index
    %c0_80 = arith.constant 0 : index
    %111 = vector.load %arg5[%c10, %c0_79, %c0_80] : memref<24x32x8xbf16, #tpu.memory_space<vmem>>, vector<1x32x8xbf16>
    %112 = vector.shape_cast %111 : vector<1x32x8xbf16> to vector<32x8xbf16>
    %cst_81 = arith.constant dense<0.000000e+00> : vector<16x8xf32>
    %113 = tpu.matmul %11, %112, %cst_81 {dimension_numbers = #tpu.dot_dimension_numbers<[1], [0], [0], [1], [0, 0, 1, 1], [], []>} : vector<16x32xbf16>, vector<32x8xbf16>, vector<16x8xf32> -> vector<16x8xf32>
    %c10_82 = arith.constant 10 : index
    %c0_83 = arith.constant 0 : index
    %c0_84 = arith.constant 0 : index
    %114 = vector.load %arg6[%c10_82, %c0_83, %c0_84] : memref<24x1x8xf32, #tpu.memory_space<vmem>>, vector<1x1x8xf32>
    %115 = vector.shape_cast %114 : vector<1x1x8xf32> to vector<1x8xf32>
    %116 = vector.broadcast %115 : vector<1x8xf32> to vector<16x8xf32>
    %117 = arith.addf %113, %116 : vector<16x8xf32>
    %118 = arith.truncf %103 : vector<16x8xf32> to vector<16x8xbf16>
    %119 = arith.truncf %110 : vector<16x8xf32> to vector<16x8xbf16>
    %cst_85 = arith.constant dense<0.000000e+00> : vector<16x16xf32>
    %120 = tpu.matmul %118, %119, %cst_85 {dimension_numbers = #tpu.dot_dimension_numbers<[1], [1], [0], [0], [0, 0, 1, 0], [], []>} : vector<16x8xbf16>, vector<16x8xbf16>, vector<16x16xf32> -> vector<16x16xf32>
    %121 = arith.addf %120, %4 : vector<16x16xf32>
    %cst_86 = arith.constant dense<0xFF800000> : vector<16xf32>
    %122 = vector.multi_reduction <maximumf>, %121, %cst_86 [1] : vector<16x16xf32> to vector<16xf32>
    %123 = vector.shape_cast %122 : vector<16xf32> to vector<16x1xf32>
    %124 = vector.broadcast %123 : vector<16x1xf32> to vector<16x16xf32>
    %125 = arith.subf %121, %124 : vector<16x16xf32>
    %126 = math.exp %125 : vector<16x16xf32>
    %cst_87 = arith.constant dense<0.000000e+00> : vector<16xf32>
    %127 = vector.multi_reduction <add>, %126, %cst_87 [1] : vector<16x16xf32> to vector<16xf32>
    %128 = vector.shape_cast %127 : vector<16xf32> to vector<16x1xf32>
    %129 = tpu.reciprocal %128 {approx = true} : vector<16x1xf32> -> vector<16x1xf32>
    %130 = vector.broadcast %129 : vector<16x1xf32> to vector<16x16xf32>
    %131 = arith.mulf %126, %130 : vector<16x16xf32>
    %132 = arith.truncf %131 : vector<16x16xf32> to vector<16x16xbf16>
    %133 = arith.truncf %117 : vector<16x8xf32> to vector<16x8xbf16>
    %cst_88 = arith.constant dense<0.000000e+00> : vector<16x8xf32>
    %134 = tpu.matmul %132, %133, %cst_88 {dimension_numbers = #tpu.dot_dimension_numbers<[1], [0], [0], [1], [0, 0, 1, 1], [], []>} : vector<16x16xbf16>, vector<16x8xbf16>, vector<16x8xf32> -> vector<16x8xf32>
    %135 = arith.truncf %134 : vector<16x8xf32> to vector<16x8xbf16>
    %c2_89 = arith.constant 2 : index
    %c0_90 = arith.constant 0 : index
    %c0_91 = arith.constant 0 : index
    %136 = vector.load %arg7[%c2_89, %c0_90, %c0_91] : memref<8x8x32xbf16, #tpu.memory_space<vmem>>, vector<1x8x32xbf16>
    %137 = vector.shape_cast %136 : vector<1x8x32xbf16> to vector<8x32xbf16>
    %cst_92 = arith.constant dense<0.000000e+00> : vector<16x32xf32>
    %138 = tpu.matmul %135, %137, %cst_92 {dimension_numbers = #tpu.dot_dimension_numbers<[1], [0], [0], [1], [0, 0, 1, 1], [], []>} : vector<16x8xbf16>, vector<8x32xbf16>, vector<16x32xf32> -> vector<16x32xf32>
    %139 = arith.addf %96, %138 : vector<16x32xf32>
    %c3 = arith.constant 3 : index
    %c0_93 = arith.constant 0 : index
    %c0_94 = arith.constant 0 : index
    %140 = vector.load %arg5[%c3, %c0_93, %c0_94] : memref<24x32x8xbf16, #tpu.memory_space<vmem>>, vector<1x32x8xbf16>
    %141 = vector.shape_cast %140 : vector<1x32x8xbf16> to vector<32x8xbf16>
    %cst_95 = arith.constant dense<0.000000e+00> : vector<16x8xf32>
    %142 = tpu.matmul %11, %141, %cst_95 {dimension_numbers = #tpu.dot_dimension_numbers<[1], [0], [0], [1], [0, 0, 1, 1], [], []>} : vector<16x32xbf16>, vector<32x8xbf16>, vector<16x8xf32> -> vector<16x8xf32>
    %c3_96 = arith.constant 3 : index
    %c0_97 = arith.constant 0 : index
    %c0_98 = arith.constant 0 : index
    %143 = vector.load %arg6[%c3_96, %c0_97, %c0_98] : memref<24x1x8xf32, #tpu.memory_space<vmem>>, vector<1x1x8xf32>
    %144 = vector.shape_cast %143 : vector<1x1x8xf32> to vector<1x8xf32>
    %145 = vector.broadcast %144 : vector<1x8xf32> to vector<16x8xf32>
    %146 = arith.addf %142, %145 : vector<16x8xf32>
    %c7 = arith.constant 7 : index
    %c0_99 = arith.constant 0 : index
    %c0_100 = arith.constant 0 : index
    %147 = vector.load %arg5[%c7, %c0_99, %c0_100] : memref<24x32x8xbf16, #tpu.memory_space<vmem>>, vector<1x32x8xbf16>
    %148 = vector.shape_cast %147 : vector<1x32x8xbf16> to vector<32x8xbf16>
    %cst_101 = arith.constant dense<0.000000e+00> : vector<16x8xf32>
    %149 = tpu.matmul %11, %148, %cst_101 {dimension_numbers = #tpu.dot_dimension_numbers<[1], [0], [0], [1], [0, 0, 1, 1], [], []>} : vector<16x32xbf16>, vector<32x8xbf16>, vector<16x8xf32> -> vector<16x8xf32>
    %c7_102 = arith.constant 7 : index
    %c0_103 = arith.constant 0 : index
    %c0_104 = arith.constant 0 : index
    %150 = vector.load %arg6[%c7_102, %c0_103, %c0_104] : memref<24x1x8xf32, #tpu.memory_space<vmem>>, vector<1x1x8xf32>
    %151 = vector.shape_cast %150 : vector<1x1x8xf32> to vector<1x8xf32>
    %152 = vector.broadcast %151 : vector<1x8xf32> to vector<16x8xf32>
    %153 = arith.addf %149, %152 : vector<16x8xf32>
    %c11 = arith.constant 11 : index
    %c0_105 = arith.constant 0 : index
    %c0_106 = arith.constant 0 : index
    %154 = vector.load %arg5[%c11, %c0_105, %c0_106] : memref<24x32x8xbf16, #tpu.memory_space<vmem>>, vector<1x32x8xbf16>
    %155 = vector.shape_cast %154 : vector<1x32x8xbf16> to vector<32x8xbf16>
    %cst_107 = arith.constant dense<0.000000e+00> : vector<16x8xf32>
    %156 = tpu.matmul %11, %155, %cst_107 {dimension_numbers = #tpu.dot_dimension_numbers<[1], [0], [0], [1], [0, 0, 1, 1], [], []>} : vector<16x32xbf16>, vector<32x8xbf16>, vector<16x8xf32> -> vector<16x8xf32>
    %c11_108 = arith.constant 11 : index
    %c0_109 = arith.constant 0 : index
    %c0_110 = arith.constant 0 : index
    %157 = vector.load %arg6[%c11_108, %c0_109, %c0_110] : memref<24x1x8xf32, #tpu.memory_space<vmem>>, vector<1x1x8xf32>
    %158 = vector.shape_cast %157 : vector<1x1x8xf32> to vector<1x8xf32>
    %159 = vector.broadcast %158 : vector<1x8xf32> to vector<16x8xf32>
    %160 = arith.addf %156, %159 : vector<16x8xf32>
    %161 = arith.truncf %146 : vector<16x8xf32> to vector<16x8xbf16>
    %162 = arith.truncf %153 : vector<16x8xf32> to vector<16x8xbf16>
    %cst_111 = arith.constant dense<0.000000e+00> : vector<16x16xf32>
    %163 = tpu.matmul %161, %162, %cst_111 {dimension_numbers = #tpu.dot_dimension_numbers<[1], [1], [0], [0], [0, 0, 1, 0], [], []>} : vector<16x8xbf16>, vector<16x8xbf16>, vector<16x16xf32> -> vector<16x16xf32>
    %164 = arith.addf %163, %4 : vector<16x16xf32>
    %cst_112 = arith.constant dense<0xFF800000> : vector<16xf32>
    %165 = vector.multi_reduction <maximumf>, %164, %cst_112 [1] : vector<16x16xf32> to vector<16xf32>
    %166 = vector.shape_cast %165 : vector<16xf32> to vector<16x1xf32>
    %167 = vector.broadcast %166 : vector<16x1xf32> to vector<16x16xf32>
    %168 = arith.subf %164, %167 : vector<16x16xf32>
    %169 = math.exp %168 : vector<16x16xf32>
    %cst_113 = arith.constant dense<0.000000e+00> : vector<16xf32>
    %170 = vector.multi_reduction <add>, %169, %cst_113 [1] : vector<16x16xf32> to vector<16xf32>
    %171 = vector.shape_cast %170 : vector<16xf32> to vector<16x1xf32>
    %172 = tpu.reciprocal %171 {approx = true} : vector<16x1xf32> -> vector<16x1xf32>
    %173 = vector.broadcast %172 : vector<16x1xf32> to vector<16x16xf32>
    %174 = arith.mulf %169, %173 : vector<16x16xf32>
    %175 = arith.truncf %174 : vector<16x16xf32> to vector<16x16xbf16>
    %176 = arith.truncf %160 : vector<16x8xf32> to vector<16x8xbf16>
    %cst_114 = arith.constant dense<0.000000e+00> : vector<16x8xf32>
    %177 = tpu.matmul %175, %176, %cst_114 {dimension_numbers = #tpu.dot_dimension_numbers<[1], [0], [0], [1], [0, 0, 1, 1], [], []>} : vector<16x16xbf16>, vector<16x8xbf16>, vector<16x8xf32> -> vector<16x8xf32>
    %178 = arith.truncf %177 : vector<16x8xf32> to vector<16x8xbf16>
    %c3_115 = arith.constant 3 : index
    %c0_116 = arith.constant 0 : index
    %c0_117 = arith.constant 0 : index
    %179 = vector.load %arg7[%c3_115, %c0_116, %c0_117] : memref<8x8x32xbf16, #tpu.memory_space<vmem>>, vector<1x8x32xbf16>
    %180 = vector.shape_cast %179 : vector<1x8x32xbf16> to vector<8x32xbf16>
    %cst_118 = arith.constant dense<0.000000e+00> : vector<16x32xf32>
    %181 = tpu.matmul %178, %180, %cst_118 {dimension_numbers = #tpu.dot_dimension_numbers<[1], [0], [0], [1], [0, 0, 1, 1], [], []>} : vector<16x8xbf16>, vector<8x32xbf16>, vector<16x32xf32> -> vector<16x32xf32>
    %182 = arith.addf %139, %181 : vector<16x32xf32>
    %c0_119 = arith.constant 0 : index
    %c0_120 = arith.constant 0 : index
    %c0_121 = arith.constant 0 : index
    %183 = vector.load %arg8[%c0_119, %c0_120, %c0_121] : memref<2x1x32xf32, #tpu.memory_space<vmem>>, vector<1x1x32xf32>
    %184 = vector.shape_cast %183 : vector<1x1x32xf32> to vector<1x32xf32>
    %185 = vector.broadcast %184 : vector<1x32xf32> to vector<16x32xf32>
    %186 = arith.addf %182, %185 : vector<16x32xf32>
    %187 = arith.addf %0, %186 : vector<16x32xf32>
    %cst_122 = arith.constant dense<0.000000e+00> : vector<16xf32>
    %188 = vector.multi_reduction <add>, %187, %cst_122 [1] : vector<16x32xf32> to vector<16xf32>
    %189 = vector.shape_cast %188 : vector<16xf32> to vector<16x1xf32>
    %cst_123 = arith.constant 3.200000e+01 : f32
    %190 = vector.broadcast %cst_123 : f32 to vector<16x1xf32>
    %191 = arith.divf %189, %190 : vector<16x1xf32>
    %192 = vector.broadcast %191 : vector<16x1xf32> to vector<16x32xf32>
    %193 = arith.subf %187, %192 : vector<16x32xf32>
    %194 = arith.mulf %193, %193 : vector<16x32xf32>
    %cst_124 = arith.constant dense<0.000000e+00> : vector<16xf32>
    %195 = vector.multi_reduction <add>, %194, %cst_124 [1] : vector<16x32xf32> to vector<16xf32>
    %196 = vector.shape_cast %195 : vector<16xf32> to vector<16x1xf32>
    %cst_125 = arith.constant 3.200000e+01 : f32
    %197 = vector.broadcast %cst_125 : f32 to vector<16x1xf32>
    %198 = arith.divf %196, %197 : vector<16x1xf32>
    %199 = vector.broadcast %191 : vector<16x1xf32> to vector<16x32xf32>
    %200 = arith.subf %187, %199 : vector<16x32xf32>
    %cst_126 = arith.constant 9.99999974E-6 : f32
    %201 = vector.broadcast %cst_126 : f32 to vector<16x1xf32>
    %202 = arith.addf %198, %201 : vector<16x1xf32>
    %203 = math.rsqrt %202 : vector<16x1xf32>
    %204 = vector.broadcast %203 : vector<16x1xf32> to vector<16x32xf32>
    %205 = arith.mulf %200, %204 : vector<16x32xf32>
    %206 = vector.broadcast %8 : vector<1x32xf32> to vector<16x32xf32>
    %207 = arith.mulf %205, %206 : vector<16x32xf32>
    %208 = vector.broadcast %10 : vector<1x32xf32> to vector<16x32xf32>
    %209 = arith.addf %207, %208 : vector<16x32xf32>
    %210 = arith.truncf %209 : vector<16x32xf32> to vector<16x32xbf16>
    %c0_127 = arith.constant 0 : index
    %c0_128 = arith.constant 0 : index
    %c0_129 = arith.constant 0 : index
    %211 = vector.load %arg9[%c0_127, %c0_128, %c0_129] : memref<24x32x8xbf16, #tpu.memory_space<vmem>>, vector<1x32x8xbf16>
    %212 = vector.shape_cast %211 : vector<1x32x8xbf16> to vector<32x8xbf16>
    %cst_130 = arith.constant dense<0.000000e+00> : vector<16x8xf32>
    %213 = tpu.matmul %210, %212, %cst_130 {dimension_numbers = #tpu.dot_dimension_numbers<[1], [0], [0], [1], [0, 0, 1, 1], [], []>} : vector<16x32xbf16>, vector<32x8xbf16>, vector<16x8xf32> -> vector<16x8xf32>
    %c0_131 = arith.constant 0 : index
    %c0_132 = arith.constant 0 : index
    %c0_133 = arith.constant 0 : index
    %214 = vector.load %arg10[%c0_131, %c0_132, %c0_133] : memref<24x1x8xf32, #tpu.memory_space<vmem>>, vector<1x1x8xf32>
    %215 = vector.shape_cast %214 : vector<1x1x8xf32> to vector<1x8xf32>
    %216 = vector.broadcast %215 : vector<1x8xf32> to vector<16x8xf32>
    %217 = arith.addf %213, %216 : vector<16x8xf32>
    %c4_134 = arith.constant 4 : index
    %c0_135 = arith.constant 0 : index
    %c0_136 = arith.constant 0 : index
    %218 = vector.load %arg9[%c4_134, %c0_135, %c0_136] : memref<24x32x8xbf16, #tpu.memory_space<vmem>>, vector<1x32x8xbf16>
    %219 = vector.shape_cast %218 : vector<1x32x8xbf16> to vector<32x8xbf16>
    %cst_137 = arith.constant dense<0.000000e+00> : vector<32x8xf32>
    %220 = tpu.matmul %2, %219, %cst_137 {dimension_numbers = #tpu.dot_dimension_numbers<[1], [0], [0], [1], [0, 0, 1, 1], [], []>} : vector<32x32xbf16>, vector<32x8xbf16>, vector<32x8xf32> -> vector<32x8xf32>
    %c4_138 = arith.constant 4 : index
    %c0_139 = arith.constant 0 : index
    %c0_140 = arith.constant 0 : index
    %221 = vector.load %arg10[%c4_138, %c0_139, %c0_140] : memref<24x1x8xf32, #tpu.memory_space<vmem>>, vector<1x1x8xf32>
    %222 = vector.shape_cast %221 : vector<1x1x8xf32> to vector<1x8xf32>
    %223 = vector.broadcast %222 : vector<1x8xf32> to vector<32x8xf32>
    %224 = arith.addf %220, %223 : vector<32x8xf32>
    %c8_141 = arith.constant 8 : index
    %c0_142 = arith.constant 0 : index
    %c0_143 = arith.constant 0 : index
    %225 = vector.load %arg9[%c8_141, %c0_142, %c0_143] : memref<24x32x8xbf16, #tpu.memory_space<vmem>>, vector<1x32x8xbf16>
    %226 = vector.shape_cast %225 : vector<1x32x8xbf16> to vector<32x8xbf16>
    %cst_144 = arith.constant dense<0.000000e+00> : vector<32x8xf32>
    %227 = tpu.matmul %2, %226, %cst_144 {dimension_numbers = #tpu.dot_dimension_numbers<[1], [0], [0], [1], [0, 0, 1, 1], [], []>} : vector<32x32xbf16>, vector<32x8xbf16>, vector<32x8xf32> -> vector<32x8xf32>
    %c8_145 = arith.constant 8 : index
    %c0_146 = arith.constant 0 : index
    %c0_147 = arith.constant 0 : index
    %228 = vector.load %arg10[%c8_145, %c0_146, %c0_147] : memref<24x1x8xf32, #tpu.memory_space<vmem>>, vector<1x1x8xf32>
    %229 = vector.shape_cast %228 : vector<1x1x8xf32> to vector<1x8xf32>
    %230 = vector.broadcast %229 : vector<1x8xf32> to vector<32x8xf32>
    %231 = arith.addf %227, %230 : vector<32x8xf32>
    %232 = arith.truncf %217 : vector<16x8xf32> to vector<16x8xbf16>
    %233 = arith.truncf %224 : vector<32x8xf32> to vector<32x8xbf16>
    %cst_148 = arith.constant dense<0.000000e+00> : vector<16x32xf32>
    %234 = tpu.matmul %232, %233, %cst_148 {dimension_numbers = #tpu.dot_dimension_numbers<[1], [1], [0], [0], [0, 0, 1, 0], [], []>} : vector<16x8xbf16>, vector<32x8xbf16>, vector<16x32xf32> -> vector<16x32xf32>
    %235 = arith.addf %234, %6 : vector<16x32xf32>
    %cst_149 = arith.constant dense<0xFF800000> : vector<16xf32>
    %236 = vector.multi_reduction <maximumf>, %235, %cst_149 [1] : vector<16x32xf32> to vector<16xf32>
    %237 = vector.shape_cast %236 : vector<16xf32> to vector<16x1xf32>
    %238 = vector.broadcast %237 : vector<16x1xf32> to vector<16x32xf32>
    %239 = arith.subf %235, %238 : vector<16x32xf32>
    %240 = math.exp %239 : vector<16x32xf32>
    %cst_150 = arith.constant dense<0.000000e+00> : vector<16xf32>
    %241 = vector.multi_reduction <add>, %240, %cst_150 [1] : vector<16x32xf32> to vector<16xf32>
    %242 = vector.shape_cast %241 : vector<16xf32> to vector<16x1xf32>
    %243 = tpu.reciprocal %242 {approx = true} : vector<16x1xf32> -> vector<16x1xf32>
    %244 = vector.broadcast %243 : vector<16x1xf32> to vector<16x32xf32>
    %245 = arith.mulf %240, %244 : vector<16x32xf32>
    %246 = arith.truncf %245 : vector<16x32xf32> to vector<16x32xbf16>
    %247 = arith.truncf %231 : vector<32x8xf32> to vector<32x8xbf16>
    %cst_151 = arith.constant dense<0.000000e+00> : vector<16x8xf32>
    %248 = tpu.matmul %246, %247, %cst_151 {dimension_numbers = #tpu.dot_dimension_numbers<[1], [0], [0], [1], [0, 0, 1, 1], [], []>} : vector<16x32xbf16>, vector<32x8xbf16>, vector<16x8xf32> -> vector<16x8xf32>
    %249 = arith.truncf %248 : vector<16x8xf32> to vector<16x8xbf16>
    %c0_152 = arith.constant 0 : index
    %c0_153 = arith.constant 0 : index
    %c0_154 = arith.constant 0 : index
    %250 = vector.load %arg11[%c0_152, %c0_153, %c0_154] : memref<8x8x32xbf16, #tpu.memory_space<vmem>>, vector<1x8x32xbf16>
    %251 = vector.shape_cast %250 : vector<1x8x32xbf16> to vector<8x32xbf16>
    %cst_155 = arith.constant dense<0.000000e+00> : vector<16x32xf32>
    %252 = tpu.matmul %249, %251, %cst_155 {dimension_numbers = #tpu.dot_dimension_numbers<[1], [0], [0], [1], [0, 0, 1, 1], [], []>} : vector<16x8xbf16>, vector<8x32xbf16>, vector<16x32xf32> -> vector<16x32xf32>
    %c1_156 = arith.constant 1 : index
    %c0_157 = arith.constant 0 : index
    %c0_158 = arith.constant 0 : index
    %253 = vector.load %arg9[%c1_156, %c0_157, %c0_158] : memref<24x32x8xbf16, #tpu.memory_space<vmem>>, vector<1x32x8xbf16>
    %254 = vector.shape_cast %253 : vector<1x32x8xbf16> to vector<32x8xbf16>
    %cst_159 = arith.constant dense<0.000000e+00> : vector<16x8xf32>
    %255 = tpu.matmul %210, %254, %cst_159 {dimension_numbers = #tpu.dot_dimension_numbers<[1], [0], [0], [1], [0, 0, 1, 1], [], []>} : vector<16x32xbf16>, vector<32x8xbf16>, vector<16x8xf32> -> vector<16x8xf32>
    %c1_160 = arith.constant 1 : index
    %c0_161 = arith.constant 0 : index
    %c0_162 = arith.constant 0 : index
    %256 = vector.load %arg10[%c1_160, %c0_161, %c0_162] : memref<24x1x8xf32, #tpu.memory_space<vmem>>, vector<1x1x8xf32>
    %257 = vector.shape_cast %256 : vector<1x1x8xf32> to vector<1x8xf32>
    %258 = vector.broadcast %257 : vector<1x8xf32> to vector<16x8xf32>
    %259 = arith.addf %255, %258 : vector<16x8xf32>
    %c5_163 = arith.constant 5 : index
    %c0_164 = arith.constant 0 : index
    %c0_165 = arith.constant 0 : index
    %260 = vector.load %arg9[%c5_163, %c0_164, %c0_165] : memref<24x32x8xbf16, #tpu.memory_space<vmem>>, vector<1x32x8xbf16>
    %261 = vector.shape_cast %260 : vector<1x32x8xbf16> to vector<32x8xbf16>
    %cst_166 = arith.constant dense<0.000000e+00> : vector<32x8xf32>
    %262 = tpu.matmul %2, %261, %cst_166 {dimension_numbers = #tpu.dot_dimension_numbers<[1], [0], [0], [1], [0, 0, 1, 1], [], []>} : vector<32x32xbf16>, vector<32x8xbf16>, vector<32x8xf32> -> vector<32x8xf32>
    %c5_167 = arith.constant 5 : index
    %c0_168 = arith.constant 0 : index
    %c0_169 = arith.constant 0 : index
    %263 = vector.load %arg10[%c5_167, %c0_168, %c0_169] : memref<24x1x8xf32, #tpu.memory_space<vmem>>, vector<1x1x8xf32>
    %264 = vector.shape_cast %263 : vector<1x1x8xf32> to vector<1x8xf32>
    %265 = vector.broadcast %264 : vector<1x8xf32> to vector<32x8xf32>
    %266 = arith.addf %262, %265 : vector<32x8xf32>
    %c9_170 = arith.constant 9 : index
    %c0_171 = arith.constant 0 : index
    %c0_172 = arith.constant 0 : index
    %267 = vector.load %arg9[%c9_170, %c0_171, %c0_172] : memref<24x32x8xbf16, #tpu.memory_space<vmem>>, vector<1x32x8xbf16>
    %268 = vector.shape_cast %267 : vector<1x32x8xbf16> to vector<32x8xbf16>
    %cst_173 = arith.constant dense<0.000000e+00> : vector<32x8xf32>
    %269 = tpu.matmul %2, %268, %cst_173 {dimension_numbers = #tpu.dot_dimension_numbers<[1], [0], [0], [1], [0, 0, 1, 1], [], []>} : vector<32x32xbf16>, vector<32x8xbf16>, vector<32x8xf32> -> vector<32x8xf32>
    %c9_174 = arith.constant 9 : index
    %c0_175 = arith.constant 0 : index
    %c0_176 = arith.constant 0 : index
    %270 = vector.load %arg10[%c9_174, %c0_175, %c0_176] : memref<24x1x8xf32, #tpu.memory_space<vmem>>, vector<1x1x8xf32>
    %271 = vector.shape_cast %270 : vector<1x1x8xf32> to vector<1x8xf32>
    %272 = vector.broadcast %271 : vector<1x8xf32> to vector<32x8xf32>
    %273 = arith.addf %269, %272 : vector<32x8xf32>
    %274 = arith.truncf %259 : vector<16x8xf32> to vector<16x8xbf16>
    %275 = arith.truncf %266 : vector<32x8xf32> to vector<32x8xbf16>
    %cst_177 = arith.constant dense<0.000000e+00> : vector<16x32xf32>
    %276 = tpu.matmul %274, %275, %cst_177 {dimension_numbers = #tpu.dot_dimension_numbers<[1], [1], [0], [0], [0, 0, 1, 0], [], []>} : vector<16x8xbf16>, vector<32x8xbf16>, vector<16x32xf32> -> vector<16x32xf32>
    %277 = arith.addf %276, %6 : vector<16x32xf32>
    %cst_178 = arith.constant dense<0xFF800000> : vector<16xf32>
    %278 = vector.multi_reduction <maximumf>, %277, %cst_178 [1] : vector<16x32xf32> to vector<16xf32>
    %279 = vector.shape_cast %278 : vector<16xf32> to vector<16x1xf32>
    %280 = vector.broadcast %279 : vector<16x1xf32> to vector<16x32xf32>
    %281 = arith.subf %277, %280 : vector<16x32xf32>
    %282 = math.exp %281 : vector<16x32xf32>
    %cst_179 = arith.constant dense<0.000000e+00> : vector<16xf32>
    %283 = vector.multi_reduction <add>, %282, %cst_179 [1] : vector<16x32xf32> to vector<16xf32>
    %284 = vector.shape_cast %283 : vector<16xf32> to vector<16x1xf32>
    %285 = tpu.reciprocal %284 {approx = true} : vector<16x1xf32> -> vector<16x1xf32>
    %286 = vector.broadcast %285 : vector<16x1xf32> to vector<16x32xf32>
    %287 = arith.mulf %282, %286 : vector<16x32xf32>
    %288 = arith.truncf %287 : vector<16x32xf32> to vector<16x32xbf16>
    %289 = arith.truncf %273 : vector<32x8xf32> to vector<32x8xbf16>
    %cst_180 = arith.constant dense<0.000000e+00> : vector<16x8xf32>
    %290 = tpu.matmul %288, %289, %cst_180 {dimension_numbers = #tpu.dot_dimension_numbers<[1], [0], [0], [1], [0, 0, 1, 1], [], []>} : vector<16x32xbf16>, vector<32x8xbf16>, vector<16x8xf32> -> vector<16x8xf32>
    %291 = arith.truncf %290 : vector<16x8xf32> to vector<16x8xbf16>
    %c1_181 = arith.constant 1 : index
    %c0_182 = arith.constant 0 : index
    %c0_183 = arith.constant 0 : index
    %292 = vector.load %arg11[%c1_181, %c0_182, %c0_183] : memref<8x8x32xbf16, #tpu.memory_space<vmem>>, vector<1x8x32xbf16>
    %293 = vector.shape_cast %292 : vector<1x8x32xbf16> to vector<8x32xbf16>
    %cst_184 = arith.constant dense<0.000000e+00> : vector<16x32xf32>
    %294 = tpu.matmul %291, %293, %cst_184 {dimension_numbers = #tpu.dot_dimension_numbers<[1], [0], [0], [1], [0, 0, 1, 1], [], []>} : vector<16x8xbf16>, vector<8x32xbf16>, vector<16x32xf32> -> vector<16x32xf32>
    %295 = arith.addf %252, %294 : vector<16x32xf32>
    %c2_185 = arith.constant 2 : index
    %c0_186 = arith.constant 0 : index
    %c0_187 = arith.constant 0 : index
    %296 = vector.load %arg9[%c2_185, %c0_186, %c0_187] : memref<24x32x8xbf16, #tpu.memory_space<vmem>>, vector<1x32x8xbf16>
    %297 = vector.shape_cast %296 : vector<1x32x8xbf16> to vector<32x8xbf16>
    %cst_188 = arith.constant dense<0.000000e+00> : vector<16x8xf32>
    %298 = tpu.matmul %210, %297, %cst_188 {dimension_numbers = #tpu.dot_dimension_numbers<[1], [0], [0], [1], [0, 0, 1, 1], [], []>} : vector<16x32xbf16>, vector<32x8xbf16>, vector<16x8xf32> -> vector<16x8xf32>
    %c2_189 = arith.constant 2 : index
    %c0_190 = arith.constant 0 : index
    %c0_191 = arith.constant 0 : index
    %299 = vector.load %arg10[%c2_189, %c0_190, %c0_191] : memref<24x1x8xf32, #tpu.memory_space<vmem>>, vector<1x1x8xf32>
    %300 = vector.shape_cast %299 : vector<1x1x8xf32> to vector<1x8xf32>
    %301 = vector.broadcast %300 : vector<1x8xf32> to vector<16x8xf32>
    %302 = arith.addf %298, %301 : vector<16x8xf32>
    %c6_192 = arith.constant 6 : index
    %c0_193 = arith.constant 0 : index
    %c0_194 = arith.constant 0 : index
    %303 = vector.load %arg9[%c6_192, %c0_193, %c0_194] : memref<24x32x8xbf16, #tpu.memory_space<vmem>>, vector<1x32x8xbf16>
    %304 = vector.shape_cast %303 : vector<1x32x8xbf16> to vector<32x8xbf16>
    %cst_195 = arith.constant dense<0.000000e+00> : vector<32x8xf32>
    %305 = tpu.matmul %2, %304, %cst_195 {dimension_numbers = #tpu.dot_dimension_numbers<[1], [0], [0], [1], [0, 0, 1, 1], [], []>} : vector<32x32xbf16>, vector<32x8xbf16>, vector<32x8xf32> -> vector<32x8xf32>
    %c6_196 = arith.constant 6 : index
    %c0_197 = arith.constant 0 : index
    %c0_198 = arith.constant 0 : index
    %306 = vector.load %arg10[%c6_196, %c0_197, %c0_198] : memref<24x1x8xf32, #tpu.memory_space<vmem>>, vector<1x1x8xf32>
    %307 = vector.shape_cast %306 : vector<1x1x8xf32> to vector<1x8xf32>
    %308 = vector.broadcast %307 : vector<1x8xf32> to vector<32x8xf32>
    %309 = arith.addf %305, %308 : vector<32x8xf32>
    %c10_199 = arith.constant 10 : index
    %c0_200 = arith.constant 0 : index
    %c0_201 = arith.constant 0 : index
    %310 = vector.load %arg9[%c10_199, %c0_200, %c0_201] : memref<24x32x8xbf16, #tpu.memory_space<vmem>>, vector<1x32x8xbf16>
    %311 = vector.shape_cast %310 : vector<1x32x8xbf16> to vector<32x8xbf16>
    %cst_202 = arith.constant dense<0.000000e+00> : vector<32x8xf32>
    %312 = tpu.matmul %2, %311, %cst_202 {dimension_numbers = #tpu.dot_dimension_numbers<[1], [0], [0], [1], [0, 0, 1, 1], [], []>} : vector<32x32xbf16>, vector<32x8xbf16>, vector<32x8xf32> -> vector<32x8xf32>
    %c10_203 = arith.constant 10 : index
    %c0_204 = arith.constant 0 : index
    %c0_205 = arith.constant 0 : index
    %313 = vector.load %arg10[%c10_203, %c0_204, %c0_205] : memref<24x1x8xf32, #tpu.memory_space<vmem>>, vector<1x1x8xf32>
    %314 = vector.shape_cast %313 : vector<1x1x8xf32> to vector<1x8xf32>
    %315 = vector.broadcast %314 : vector<1x8xf32> to vector<32x8xf32>
    %316 = arith.addf %312, %315 : vector<32x8xf32>
    %317 = arith.truncf %302 : vector<16x8xf32> to vector<16x8xbf16>
    %318 = arith.truncf %309 : vector<32x8xf32> to vector<32x8xbf16>
    %cst_206 = arith.constant dense<0.000000e+00> : vector<16x32xf32>
    %319 = tpu.matmul %317, %318, %cst_206 {dimension_numbers = #tpu.dot_dimension_numbers<[1], [1], [0], [0], [0, 0, 1, 0], [], []>} : vector<16x8xbf16>, vector<32x8xbf16>, vector<16x32xf32> -> vector<16x32xf32>
    %320 = arith.addf %319, %6 : vector<16x32xf32>
    %cst_207 = arith.constant dense<0xFF800000> : vector<16xf32>
    %321 = vector.multi_reduction <maximumf>, %320, %cst_207 [1] : vector<16x32xf32> to vector<16xf32>
    %322 = vector.shape_cast %321 : vector<16xf32> to vector<16x1xf32>
    %323 = vector.broadcast %322 : vector<16x1xf32> to vector<16x32xf32>
    %324 = arith.subf %320, %323 : vector<16x32xf32>
    %325 = math.exp %324 : vector<16x32xf32>
    %cst_208 = arith.constant dense<0.000000e+00> : vector<16xf32>
    %326 = vector.multi_reduction <add>, %325, %cst_208 [1] : vector<16x32xf32> to vector<16xf32>
    %327 = vector.shape_cast %326 : vector<16xf32> to vector<16x1xf32>
    %328 = tpu.reciprocal %327 {approx = true} : vector<16x1xf32> -> vector<16x1xf32>
    %329 = vector.broadcast %328 : vector<16x1xf32> to vector<16x32xf32>
    %330 = arith.mulf %325, %329 : vector<16x32xf32>
    %331 = arith.truncf %330 : vector<16x32xf32> to vector<16x32xbf16>
    %332 = arith.truncf %316 : vector<32x8xf32> to vector<32x8xbf16>
    %cst_209 = arith.constant dense<0.000000e+00> : vector<16x8xf32>
    %333 = tpu.matmul %331, %332, %cst_209 {dimension_numbers = #tpu.dot_dimension_numbers<[1], [0], [0], [1], [0, 0, 1, 1], [], []>} : vector<16x32xbf16>, vector<32x8xbf16>, vector<16x8xf32> -> vector<16x8xf32>
    %334 = arith.truncf %333 : vector<16x8xf32> to vector<16x8xbf16>
    %c2_210 = arith.constant 2 : index
    %c0_211 = arith.constant 0 : index
    %c0_212 = arith.constant 0 : index
    %335 = vector.load %arg11[%c2_210, %c0_211, %c0_212] : memref<8x8x32xbf16, #tpu.memory_space<vmem>>, vector<1x8x32xbf16>
    %336 = vector.shape_cast %335 : vector<1x8x32xbf16> to vector<8x32xbf16>
    %cst_213 = arith.constant dense<0.000000e+00> : vector<16x32xf32>
    %337 = tpu.matmul %334, %336, %cst_213 {dimension_numbers = #tpu.dot_dimension_numbers<[1], [0], [0], [1], [0, 0, 1, 1], [], []>} : vector<16x8xbf16>, vector<8x32xbf16>, vector<16x32xf32> -> vector<16x32xf32>
    %338 = arith.addf %295, %337 : vector<16x32xf32>
    %c3_214 = arith.constant 3 : index
    %c0_215 = arith.constant 0 : index
    %c0_216 = arith.constant 0 : index
    %339 = vector.load %arg9[%c3_214, %c0_215, %c0_216] : memref<24x32x8xbf16, #tpu.memory_space<vmem>>, vector<1x32x8xbf16>
    %340 = vector.shape_cast %339 : vector<1x32x8xbf16> to vector<32x8xbf16>
    %cst_217 = arith.constant dense<0.000000e+00> : vector<16x8xf32>
    %341 = tpu.matmul %210, %340, %cst_217 {dimension_numbers = #tpu.dot_dimension_numbers<[1], [0], [0], [1], [0, 0, 1, 1], [], []>} : vector<16x32xbf16>, vector<32x8xbf16>, vector<16x8xf32> -> vector<16x8xf32>
    %c3_218 = arith.constant 3 : index
    %c0_219 = arith.constant 0 : index
    %c0_220 = arith.constant 0 : index
    %342 = vector.load %arg10[%c3_218, %c0_219, %c0_220] : memref<24x1x8xf32, #tpu.memory_space<vmem>>, vector<1x1x8xf32>
    %343 = vector.shape_cast %342 : vector<1x1x8xf32> to vector<1x8xf32>
    %344 = vector.broadcast %343 : vector<1x8xf32> to vector<16x8xf32>
    %345 = arith.addf %341, %344 : vector<16x8xf32>
    %c7_221 = arith.constant 7 : index
    %c0_222 = arith.constant 0 : index
    %c0_223 = arith.constant 0 : index
    %346 = vector.load %arg9[%c7_221, %c0_222, %c0_223] : memref<24x32x8xbf16, #tpu.memory_space<vmem>>, vector<1x32x8xbf16>
    %347 = vector.shape_cast %346 : vector<1x32x8xbf16> to vector<32x8xbf16>
    %cst_224 = arith.constant dense<0.000000e+00> : vector<32x8xf32>
    %348 = tpu.matmul %2, %347, %cst_224 {dimension_numbers = #tpu.dot_dimension_numbers<[1], [0], [0], [1], [0, 0, 1, 1], [], []>} : vector<32x32xbf16>, vector<32x8xbf16>, vector<32x8xf32> -> vector<32x8xf32>
    %c7_225 = arith.constant 7 : index
    %c0_226 = arith.constant 0 : index
    %c0_227 = arith.constant 0 : index
    %349 = vector.load %arg10[%c7_225, %c0_226, %c0_227] : memref<24x1x8xf32, #tpu.memory_space<vmem>>, vector<1x1x8xf32>
    %350 = vector.shape_cast %349 : vector<1x1x8xf32> to vector<1x8xf32>
    %351 = vector.broadcast %350 : vector<1x8xf32> to vector<32x8xf32>
    %352 = arith.addf %348, %351 : vector<32x8xf32>
    %c11_228 = arith.constant 11 : index
    %c0_229 = arith.constant 0 : index
    %c0_230 = arith.constant 0 : index
    %353 = vector.load %arg9[%c11_228, %c0_229, %c0_230] : memref<24x32x8xbf16, #tpu.memory_space<vmem>>, vector<1x32x8xbf16>
    %354 = vector.shape_cast %353 : vector<1x32x8xbf16> to vector<32x8xbf16>
    %cst_231 = arith.constant dense<0.000000e+00> : vector<32x8xf32>
    %355 = tpu.matmul %2, %354, %cst_231 {dimension_numbers = #tpu.dot_dimension_numbers<[1], [0], [0], [1], [0, 0, 1, 1], [], []>} : vector<32x32xbf16>, vector<32x8xbf16>, vector<32x8xf32> -> vector<32x8xf32>
    %c11_232 = arith.constant 11 : index
    %c0_233 = arith.constant 0 : index
    %c0_234 = arith.constant 0 : index
    %356 = vector.load %arg10[%c11_232, %c0_233, %c0_234] : memref<24x1x8xf32, #tpu.memory_space<vmem>>, vector<1x1x8xf32>
    %357 = vector.shape_cast %356 : vector<1x1x8xf32> to vector<1x8xf32>
    %358 = vector.broadcast %357 : vector<1x8xf32> to vector<32x8xf32>
    %359 = arith.addf %355, %358 : vector<32x8xf32>
    %360 = arith.truncf %345 : vector<16x8xf32> to vector<16x8xbf16>
    %361 = arith.truncf %352 : vector<32x8xf32> to vector<32x8xbf16>
    %cst_235 = arith.constant dense<0.000000e+00> : vector<16x32xf32>
    %362 = tpu.matmul %360, %361, %cst_235 {dimension_numbers = #tpu.dot_dimension_numbers<[1], [1], [0], [0], [0, 0, 1, 0], [], []>} : vector<16x8xbf16>, vector<32x8xbf16>, vector<16x32xf32> -> vector<16x32xf32>
    %363 = arith.addf %362, %6 : vector<16x32xf32>
    %cst_236 = arith.constant dense<0xFF800000> : vector<16xf32>
    %364 = vector.multi_reduction <maximumf>, %363, %cst_236 [1] : vector<16x32xf32> to vector<16xf32>
    %365 = vector.shape_cast %364 : vector<16xf32> to vector<16x1xf32>
    %366 = vector.broadcast %365 : vector<16x1xf32> to vector<16x32xf32>
    %367 = arith.subf %363, %366 : vector<16x32xf32>
    %368 = math.exp %367 : vector<16x32xf32>
    %cst_237 = arith.constant dense<0.000000e+00> : vector<16xf32>
    %369 = vector.multi_reduction <add>, %368, %cst_237 [1] : vector<16x32xf32> to vector<16xf32>
    %370 = vector.shape_cast %369 : vector<16xf32> to vector<16x1xf32>
    %371 = tpu.reciprocal %370 {approx = true} : vector<16x1xf32> -> vector<16x1xf32>
    %372 = vector.broadcast %371 : vector<16x1xf32> to vector<16x32xf32>
    %373 = arith.mulf %368, %372 : vector<16x32xf32>
    %374 = arith.truncf %373 : vector<16x32xf32> to vector<16x32xbf16>
    %375 = arith.truncf %359 : vector<32x8xf32> to vector<32x8xbf16>
    %cst_238 = arith.constant dense<0.000000e+00> : vector<16x8xf32>
    %376 = tpu.matmul %374, %375, %cst_238 {dimension_numbers = #tpu.dot_dimension_numbers<[1], [0], [0], [1], [0, 0, 1, 1], [], []>} : vector<16x32xbf16>, vector<32x8xbf16>, vector<16x8xf32> -> vector<16x8xf32>
    %377 = arith.truncf %376 : vector<16x8xf32> to vector<16x8xbf16>
    %c3_239 = arith.constant 3 : index
    %c0_240 = arith.constant 0 : index
    %c0_241 = arith.constant 0 : index
    %378 = vector.load %arg11[%c3_239, %c0_240, %c0_241] : memref<8x8x32xbf16, #tpu.memory_space<vmem>>, vector<1x8x32xbf16>
    %379 = vector.shape_cast %378 : vector<1x8x32xbf16> to vector<8x32xbf16>
    %cst_242 = arith.constant dense<0.000000e+00> : vector<16x32xf32>
    %380 = tpu.matmul %377, %379, %cst_242 {dimension_numbers = #tpu.dot_dimension_numbers<[1], [0], [0], [1], [0, 0, 1, 1], [], []>} : vector<16x8xbf16>, vector<8x32xbf16>, vector<16x32xf32> -> vector<16x32xf32>
    %381 = arith.addf %338, %380 : vector<16x32xf32>
    %c0_243 = arith.constant 0 : index
    %c0_244 = arith.constant 0 : index
    %c0_245 = arith.constant 0 : index
    %382 = vector.load %arg12[%c0_243, %c0_244, %c0_245] : memref<2x1x32xf32, #tpu.memory_space<vmem>>, vector<1x1x32xf32>
    %383 = vector.shape_cast %382 : vector<1x1x32xf32> to vector<1x32xf32>
    %384 = vector.broadcast %383 : vector<1x32xf32> to vector<16x32xf32>
    %385 = arith.addf %381, %384 : vector<16x32xf32>
    %386 = arith.addf %209, %385 : vector<16x32xf32>
    %cst_246 = arith.constant dense<0.000000e+00> : vector<16xf32>
    %387 = vector.multi_reduction <add>, %386, %cst_246 [1] : vector<16x32xf32> to vector<16xf32>
    %388 = vector.shape_cast %387 : vector<16xf32> to vector<16x1xf32>
    %cst_247 = arith.constant 3.200000e+01 : f32
    %389 = vector.broadcast %cst_247 : f32 to vector<16x1xf32>
    %390 = arith.divf %388, %389 : vector<16x1xf32>
    %391 = vector.broadcast %390 : vector<16x1xf32> to vector<16x32xf32>
    %392 = arith.subf %386, %391 : vector<16x32xf32>
    %393 = arith.mulf %392, %392 : vector<16x32xf32>
    %cst_248 = arith.constant dense<0.000000e+00> : vector<16xf32>
    %394 = vector.multi_reduction <add>, %393, %cst_248 [1] : vector<16x32xf32> to vector<16xf32>
    %395 = vector.shape_cast %394 : vector<16xf32> to vector<16x1xf32>
    %cst_249 = arith.constant 3.200000e+01 : f32
    %396 = vector.broadcast %cst_249 : f32 to vector<16x1xf32>
    %397 = arith.divf %395, %396 : vector<16x1xf32>
    %398 = vector.broadcast %390 : vector<16x1xf32> to vector<16x32xf32>
    %399 = arith.subf %386, %398 : vector<16x32xf32>
    %cst_250 = arith.constant 9.99999974E-6 : f32
    %400 = vector.broadcast %cst_250 : f32 to vector<16x1xf32>
    %401 = arith.addf %397, %400 : vector<16x1xf32>
    %402 = math.rsqrt %401 : vector<16x1xf32>
    %403 = vector.broadcast %402 : vector<16x1xf32> to vector<16x32xf32>
    %404 = arith.mulf %399, %403 : vector<16x32xf32>
    %405 = vector.broadcast %8 : vector<1x32xf32> to vector<16x32xf32>
    %406 = arith.mulf %404, %405 : vector<16x32xf32>
    %407 = vector.broadcast %10 : vector<1x32xf32> to vector<16x32xf32>
    %408 = arith.addf %406, %407 : vector<16x32xf32>
    %409 = arith.truncf %408 : vector<16x32xf32> to vector<16x32xbf16>
    %c0_251 = arith.constant 0 : index
    %c0_252 = arith.constant 0 : index
    %c0_253 = arith.constant 0 : index
    %410 = vector.load %arg13[%c0_251, %c0_252, %c0_253] : memref<2x32x64xbf16, #tpu.memory_space<vmem>>, vector<1x32x64xbf16>
    %411 = vector.shape_cast %410 : vector<1x32x64xbf16> to vector<32x64xbf16>
    %cst_254 = arith.constant dense<0.000000e+00> : vector<16x64xf32>
    %412 = tpu.matmul %409, %411, %cst_254 {dimension_numbers = #tpu.dot_dimension_numbers<[1], [0], [0], [1], [0, 0, 1, 1], [], []>} : vector<16x32xbf16>, vector<32x64xbf16>, vector<16x64xf32> -> vector<16x64xf32>
    %c0_255 = arith.constant 0 : index
    %c0_256 = arith.constant 0 : index
    %c0_257 = arith.constant 0 : index
    %413 = vector.load %arg14[%c0_255, %c0_256, %c0_257] : memref<2x1x64xf32, #tpu.memory_space<vmem>>, vector<1x1x64xf32>
    %414 = vector.shape_cast %413 : vector<1x1x64xf32> to vector<1x64xf32>
    %415 = vector.broadcast %414 : vector<1x64xf32> to vector<16x64xf32>
    %416 = arith.addf %412, %415 : vector<16x64xf32>
    %cst_258 = arith.constant 0.000000e+00 : f32
    %417 = vector.broadcast %cst_258 : f32 to vector<16x64xf32>
    %418 = arith.maximumf %416, %417 : vector<16x64xf32>
    %419 = arith.truncf %418 : vector<16x64xf32> to vector<16x64xbf16>
    %c0_259 = arith.constant 0 : index
    %c0_260 = arith.constant 0 : index
    %c0_261 = arith.constant 0 : index
    %420 = vector.load %arg15[%c0_259, %c0_260, %c0_261] : memref<2x64x32xbf16, #tpu.memory_space<vmem>>, vector<1x64x32xbf16>
    %421 = vector.shape_cast %420 : vector<1x64x32xbf16> to vector<64x32xbf16>
    %cst_262 = arith.constant dense<0.000000e+00> : vector<16x32xf32>
    %422 = tpu.matmul %419, %421, %cst_262 {dimension_numbers = #tpu.dot_dimension_numbers<[1], [0], [0], [1], [0, 0, 1, 1], [], []>} : vector<16x64xbf16>, vector<64x32xbf16>, vector<16x32xf32> -> vector<16x32xf32>
    %c0_263 = arith.constant 0 : index
    %c0_264 = arith.constant 0 : index
    %c0_265 = arith.constant 0 : index
    %423 = vector.load %arg16[%c0_263, %c0_264, %c0_265] : memref<2x1x32xf32, #tpu.memory_space<vmem>>, vector<1x1x32xf32>
    %424 = vector.shape_cast %423 : vector<1x1x32xf32> to vector<1x32xf32>
    %425 = vector.broadcast %424 : vector<1x32xf32> to vector<16x32xf32>
    %426 = arith.addf %422, %425 : vector<16x32xf32>
    %427 = arith.addf %408, %426 : vector<16x32xf32>
    %cst_266 = arith.constant dense<0.000000e+00> : vector<16xf32>
    %428 = vector.multi_reduction <add>, %427, %cst_266 [1] : vector<16x32xf32> to vector<16xf32>
    %429 = vector.shape_cast %428 : vector<16xf32> to vector<16x1xf32>
    %cst_267 = arith.constant 3.200000e+01 : f32
    %430 = vector.broadcast %cst_267 : f32 to vector<16x1xf32>
    %431 = arith.divf %429, %430 : vector<16x1xf32>
    %432 = vector.broadcast %431 : vector<16x1xf32> to vector<16x32xf32>
    %433 = arith.subf %427, %432 : vector<16x32xf32>
    %434 = arith.mulf %433, %433 : vector<16x32xf32>
    %cst_268 = arith.constant dense<0.000000e+00> : vector<16xf32>
    %435 = vector.multi_reduction <add>, %434, %cst_268 [1] : vector<16x32xf32> to vector<16xf32>
    %436 = vector.shape_cast %435 : vector<16xf32> to vector<16x1xf32>
    %cst_269 = arith.constant 3.200000e+01 : f32
    %437 = vector.broadcast %cst_269 : f32 to vector<16x1xf32>
    %438 = arith.divf %436, %437 : vector<16x1xf32>
    %439 = vector.broadcast %431 : vector<16x1xf32> to vector<16x32xf32>
    %440 = arith.subf %427, %439 : vector<16x32xf32>
    %cst_270 = arith.constant 9.99999974E-6 : f32
    %441 = vector.broadcast %cst_270 : f32 to vector<16x1xf32>
    %442 = arith.addf %438, %441 : vector<16x1xf32>
    %443 = math.rsqrt %442 : vector<16x1xf32>
    %444 = vector.broadcast %443 : vector<16x1xf32> to vector<16x32xf32>
    %445 = arith.mulf %440, %444 : vector<16x32xf32>
    %446 = vector.broadcast %8 : vector<1x32xf32> to vector<16x32xf32>
    %447 = arith.mulf %445, %446 : vector<16x32xf32>
    %448 = vector.broadcast %10 : vector<1x32xf32> to vector<16x32xf32>
    %449 = arith.addf %447, %448 : vector<16x32xf32>
    %c1_271 = arith.constant 1 : index
    %c0_272 = arith.constant 0 : index
    %c0_273 = arith.constant 0 : index
    %450 = vector.load %arg17[%c1_271, %c0_272, %c0_273] : memref<2x1x32xf32, #tpu.memory_space<vmem>>, vector<1x1x32xf32>
    %451 = vector.shape_cast %450 : vector<1x1x32xf32> to vector<1x32xf32>
    %c1_274 = arith.constant 1 : index
    %c0_275 = arith.constant 0 : index
    %c0_276 = arith.constant 0 : index
    %452 = vector.load %arg18[%c1_274, %c0_275, %c0_276] : memref<2x1x32xf32, #tpu.memory_space<vmem>>, vector<1x1x32xf32>
    %453 = vector.shape_cast %452 : vector<1x1x32xf32> to vector<1x32xf32>
    %454 = arith.truncf %449 : vector<16x32xf32> to vector<16x32xbf16>
    %c12 = arith.constant 12 : index
    %c0_277 = arith.constant 0 : index
    %c0_278 = arith.constant 0 : index
    %455 = vector.load %arg5[%c12, %c0_277, %c0_278] : memref<24x32x8xbf16, #tpu.memory_space<vmem>>, vector<1x32x8xbf16>
    %456 = vector.shape_cast %455 : vector<1x32x8xbf16> to vector<32x8xbf16>
    %cst_279 = arith.constant dense<0.000000e+00> : vector<16x8xf32>
    %457 = tpu.matmul %454, %456, %cst_279 {dimension_numbers = #tpu.dot_dimension_numbers<[1], [0], [0], [1], [0, 0, 1, 1], [], []>} : vector<16x32xbf16>, vector<32x8xbf16>, vector<16x8xf32> -> vector<16x8xf32>
    %c12_280 = arith.constant 12 : index
    %c0_281 = arith.constant 0 : index
    %c0_282 = arith.constant 0 : index
    %458 = vector.load %arg6[%c12_280, %c0_281, %c0_282] : memref<24x1x8xf32, #tpu.memory_space<vmem>>, vector<1x1x8xf32>
    %459 = vector.shape_cast %458 : vector<1x1x8xf32> to vector<1x8xf32>
    %460 = vector.broadcast %459 : vector<1x8xf32> to vector<16x8xf32>
    %461 = arith.addf %457, %460 : vector<16x8xf32>
    %c16 = arith.constant 16 : index
    %c0_283 = arith.constant 0 : index
    %c0_284 = arith.constant 0 : index
    %462 = vector.load %arg5[%c16, %c0_283, %c0_284] : memref<24x32x8xbf16, #tpu.memory_space<vmem>>, vector<1x32x8xbf16>
    %463 = vector.shape_cast %462 : vector<1x32x8xbf16> to vector<32x8xbf16>
    %cst_285 = arith.constant dense<0.000000e+00> : vector<16x8xf32>
    %464 = tpu.matmul %454, %463, %cst_285 {dimension_numbers = #tpu.dot_dimension_numbers<[1], [0], [0], [1], [0, 0, 1, 1], [], []>} : vector<16x32xbf16>, vector<32x8xbf16>, vector<16x8xf32> -> vector<16x8xf32>
    %c16_286 = arith.constant 16 : index
    %c0_287 = arith.constant 0 : index
    %c0_288 = arith.constant 0 : index
    %465 = vector.load %arg6[%c16_286, %c0_287, %c0_288] : memref<24x1x8xf32, #tpu.memory_space<vmem>>, vector<1x1x8xf32>
    %466 = vector.shape_cast %465 : vector<1x1x8xf32> to vector<1x8xf32>
    %467 = vector.broadcast %466 : vector<1x8xf32> to vector<16x8xf32>
    %468 = arith.addf %464, %467 : vector<16x8xf32>
    %c20 = arith.constant 20 : index
    %c0_289 = arith.constant 0 : index
    %c0_290 = arith.constant 0 : index
    %469 = vector.load %arg5[%c20, %c0_289, %c0_290] : memref<24x32x8xbf16, #tpu.memory_space<vmem>>, vector<1x32x8xbf16>
    %470 = vector.shape_cast %469 : vector<1x32x8xbf16> to vector<32x8xbf16>
    %cst_291 = arith.constant dense<0.000000e+00> : vector<16x8xf32>
    %471 = tpu.matmul %454, %470, %cst_291 {dimension_numbers = #tpu.dot_dimension_numbers<[1], [0], [0], [1], [0, 0, 1, 1], [], []>} : vector<16x32xbf16>, vector<32x8xbf16>, vector<16x8xf32> -> vector<16x8xf32>
    %c20_292 = arith.constant 20 : index
    %c0_293 = arith.constant 0 : index
    %c0_294 = arith.constant 0 : index
    %472 = vector.load %arg6[%c20_292, %c0_293, %c0_294] : memref<24x1x8xf32, #tpu.memory_space<vmem>>, vector<1x1x8xf32>
    %473 = vector.shape_cast %472 : vector<1x1x8xf32> to vector<1x8xf32>
    %474 = vector.broadcast %473 : vector<1x8xf32> to vector<16x8xf32>
    %475 = arith.addf %471, %474 : vector<16x8xf32>
    %476 = arith.truncf %461 : vector<16x8xf32> to vector<16x8xbf16>
    %477 = arith.truncf %468 : vector<16x8xf32> to vector<16x8xbf16>
    %cst_295 = arith.constant dense<0.000000e+00> : vector<16x16xf32>
    %478 = tpu.matmul %476, %477, %cst_295 {dimension_numbers = #tpu.dot_dimension_numbers<[1], [1], [0], [0], [0, 0, 1, 0], [], []>} : vector<16x8xbf16>, vector<16x8xbf16>, vector<16x16xf32> -> vector<16x16xf32>
    %479 = arith.addf %478, %4 : vector<16x16xf32>
    %cst_296 = arith.constant dense<0xFF800000> : vector<16xf32>
    %480 = vector.multi_reduction <maximumf>, %479, %cst_296 [1] : vector<16x16xf32> to vector<16xf32>
    %481 = vector.shape_cast %480 : vector<16xf32> to vector<16x1xf32>
    %482 = vector.broadcast %481 : vector<16x1xf32> to vector<16x16xf32>
    %483 = arith.subf %479, %482 : vector<16x16xf32>
    %484 = math.exp %483 : vector<16x16xf32>
    %cst_297 = arith.constant dense<0.000000e+00> : vector<16xf32>
    %485 = vector.multi_reduction <add>, %484, %cst_297 [1] : vector<16x16xf32> to vector<16xf32>
    %486 = vector.shape_cast %485 : vector<16xf32> to vector<16x1xf32>
    %487 = tpu.reciprocal %486 {approx = true} : vector<16x1xf32> -> vector<16x1xf32>
    %488 = vector.broadcast %487 : vector<16x1xf32> to vector<16x16xf32>
    %489 = arith.mulf %484, %488 : vector<16x16xf32>
    %490 = arith.truncf %489 : vector<16x16xf32> to vector<16x16xbf16>
    %491 = arith.truncf %475 : vector<16x8xf32> to vector<16x8xbf16>
    %cst_298 = arith.constant dense<0.000000e+00> : vector<16x8xf32>
    %492 = tpu.matmul %490, %491, %cst_298 {dimension_numbers = #tpu.dot_dimension_numbers<[1], [0], [0], [1], [0, 0, 1, 1], [], []>} : vector<16x16xbf16>, vector<16x8xbf16>, vector<16x8xf32> -> vector<16x8xf32>
    %493 = arith.truncf %492 : vector<16x8xf32> to vector<16x8xbf16>
    %c4_299 = arith.constant 4 : index
    %c0_300 = arith.constant 0 : index
    %c0_301 = arith.constant 0 : index
    %494 = vector.load %arg7[%c4_299, %c0_300, %c0_301] : memref<8x8x32xbf16, #tpu.memory_space<vmem>>, vector<1x8x32xbf16>
    %495 = vector.shape_cast %494 : vector<1x8x32xbf16> to vector<8x32xbf16>
    %cst_302 = arith.constant dense<0.000000e+00> : vector<16x32xf32>
    %496 = tpu.matmul %493, %495, %cst_302 {dimension_numbers = #tpu.dot_dimension_numbers<[1], [0], [0], [1], [0, 0, 1, 1], [], []>} : vector<16x8xbf16>, vector<8x32xbf16>, vector<16x32xf32> -> vector<16x32xf32>
    %c13 = arith.constant 13 : index
    %c0_303 = arith.constant 0 : index
    %c0_304 = arith.constant 0 : index
    %497 = vector.load %arg5[%c13, %c0_303, %c0_304] : memref<24x32x8xbf16, #tpu.memory_space<vmem>>, vector<1x32x8xbf16>
    %498 = vector.shape_cast %497 : vector<1x32x8xbf16> to vector<32x8xbf16>
    %cst_305 = arith.constant dense<0.000000e+00> : vector<16x8xf32>
    %499 = tpu.matmul %454, %498, %cst_305 {dimension_numbers = #tpu.dot_dimension_numbers<[1], [0], [0], [1], [0, 0, 1, 1], [], []>} : vector<16x32xbf16>, vector<32x8xbf16>, vector<16x8xf32> -> vector<16x8xf32>
    %c13_306 = arith.constant 13 : index
    %c0_307 = arith.constant 0 : index
    %c0_308 = arith.constant 0 : index
    %500 = vector.load %arg6[%c13_306, %c0_307, %c0_308] : memref<24x1x8xf32, #tpu.memory_space<vmem>>, vector<1x1x8xf32>
    %501 = vector.shape_cast %500 : vector<1x1x8xf32> to vector<1x8xf32>
    %502 = vector.broadcast %501 : vector<1x8xf32> to vector<16x8xf32>
    %503 = arith.addf %499, %502 : vector<16x8xf32>
    %c17 = arith.constant 17 : index
    %c0_309 = arith.constant 0 : index
    %c0_310 = arith.constant 0 : index
    %504 = vector.load %arg5[%c17, %c0_309, %c0_310] : memref<24x32x8xbf16, #tpu.memory_space<vmem>>, vector<1x32x8xbf16>
    %505 = vector.shape_cast %504 : vector<1x32x8xbf16> to vector<32x8xbf16>
    %cst_311 = arith.constant dense<0.000000e+00> : vector<16x8xf32>
    %506 = tpu.matmul %454, %505, %cst_311 {dimension_numbers = #tpu.dot_dimension_numbers<[1], [0], [0], [1], [0, 0, 1, 1], [], []>} : vector<16x32xbf16>, vector<32x8xbf16>, vector<16x8xf32> -> vector<16x8xf32>
    %c17_312 = arith.constant 17 : index
    %c0_313 = arith.constant 0 : index
    %c0_314 = arith.constant 0 : index
    %507 = vector.load %arg6[%c17_312, %c0_313, %c0_314] : memref<24x1x8xf32, #tpu.memory_space<vmem>>, vector<1x1x8xf32>
    %508 = vector.shape_cast %507 : vector<1x1x8xf32> to vector<1x8xf32>
    %509 = vector.broadcast %508 : vector<1x8xf32> to vector<16x8xf32>
    %510 = arith.addf %506, %509 : vector<16x8xf32>
    %c21 = arith.constant 21 : index
    %c0_315 = arith.constant 0 : index
    %c0_316 = arith.constant 0 : index
    %511 = vector.load %arg5[%c21, %c0_315, %c0_316] : memref<24x32x8xbf16, #tpu.memory_space<vmem>>, vector<1x32x8xbf16>
    %512 = vector.shape_cast %511 : vector<1x32x8xbf16> to vector<32x8xbf16>
    %cst_317 = arith.constant dense<0.000000e+00> : vector<16x8xf32>
    %513 = tpu.matmul %454, %512, %cst_317 {dimension_numbers = #tpu.dot_dimension_numbers<[1], [0], [0], [1], [0, 0, 1, 1], [], []>} : vector<16x32xbf16>, vector<32x8xbf16>, vector<16x8xf32> -> vector<16x8xf32>
    %c21_318 = arith.constant 21 : index
    %c0_319 = arith.constant 0 : index
    %c0_320 = arith.constant 0 : index
    %514 = vector.load %arg6[%c21_318, %c0_319, %c0_320] : memref<24x1x8xf32, #tpu.memory_space<vmem>>, vector<1x1x8xf32>
    %515 = vector.shape_cast %514 : vector<1x1x8xf32> to vector<1x8xf32>
    %516 = vector.broadcast %515 : vector<1x8xf32> to vector<16x8xf32>
    %517 = arith.addf %513, %516 : vector<16x8xf32>
    %518 = arith.truncf %503 : vector<16x8xf32> to vector<16x8xbf16>
    %519 = arith.truncf %510 : vector<16x8xf32> to vector<16x8xbf16>
    %cst_321 = arith.constant dense<0.000000e+00> : vector<16x16xf32>
    %520 = tpu.matmul %518, %519, %cst_321 {dimension_numbers = #tpu.dot_dimension_numbers<[1], [1], [0], [0], [0, 0, 1, 0], [], []>} : vector<16x8xbf16>, vector<16x8xbf16>, vector<16x16xf32> -> vector<16x16xf32>
    %521 = arith.addf %520, %4 : vector<16x16xf32>
    %cst_322 = arith.constant dense<0xFF800000> : vector<16xf32>
    %522 = vector.multi_reduction <maximumf>, %521, %cst_322 [1] : vector<16x16xf32> to vector<16xf32>
    %523 = vector.shape_cast %522 : vector<16xf32> to vector<16x1xf32>
    %524 = vector.broadcast %523 : vector<16x1xf32> to vector<16x16xf32>
    %525 = arith.subf %521, %524 : vector<16x16xf32>
    %526 = math.exp %525 : vector<16x16xf32>
    %cst_323 = arith.constant dense<0.000000e+00> : vector<16xf32>
    %527 = vector.multi_reduction <add>, %526, %cst_323 [1] : vector<16x16xf32> to vector<16xf32>
    %528 = vector.shape_cast %527 : vector<16xf32> to vector<16x1xf32>
    %529 = tpu.reciprocal %528 {approx = true} : vector<16x1xf32> -> vector<16x1xf32>
    %530 = vector.broadcast %529 : vector<16x1xf32> to vector<16x16xf32>
    %531 = arith.mulf %526, %530 : vector<16x16xf32>
    %532 = arith.truncf %531 : vector<16x16xf32> to vector<16x16xbf16>
    %533 = arith.truncf %517 : vector<16x8xf32> to vector<16x8xbf16>
    %cst_324 = arith.constant dense<0.000000e+00> : vector<16x8xf32>
    %534 = tpu.matmul %532, %533, %cst_324 {dimension_numbers = #tpu.dot_dimension_numbers<[1], [0], [0], [1], [0, 0, 1, 1], [], []>} : vector<16x16xbf16>, vector<16x8xbf16>, vector<16x8xf32> -> vector<16x8xf32>
    %535 = arith.truncf %534 : vector<16x8xf32> to vector<16x8xbf16>
    %c5_325 = arith.constant 5 : index
    %c0_326 = arith.constant 0 : index
    %c0_327 = arith.constant 0 : index
    %536 = vector.load %arg7[%c5_325, %c0_326, %c0_327] : memref<8x8x32xbf16, #tpu.memory_space<vmem>>, vector<1x8x32xbf16>
    %537 = vector.shape_cast %536 : vector<1x8x32xbf16> to vector<8x32xbf16>
    %cst_328 = arith.constant dense<0.000000e+00> : vector<16x32xf32>
    %538 = tpu.matmul %535, %537, %cst_328 {dimension_numbers = #tpu.dot_dimension_numbers<[1], [0], [0], [1], [0, 0, 1, 1], [], []>} : vector<16x8xbf16>, vector<8x32xbf16>, vector<16x32xf32> -> vector<16x32xf32>
    %539 = arith.addf %496, %538 : vector<16x32xf32>
    %c14 = arith.constant 14 : index
    %c0_329 = arith.constant 0 : index
    %c0_330 = arith.constant 0 : index
    %540 = vector.load %arg5[%c14, %c0_329, %c0_330] : memref<24x32x8xbf16, #tpu.memory_space<vmem>>, vector<1x32x8xbf16>
    %541 = vector.shape_cast %540 : vector<1x32x8xbf16> to vector<32x8xbf16>
    %cst_331 = arith.constant dense<0.000000e+00> : vector<16x8xf32>
    %542 = tpu.matmul %454, %541, %cst_331 {dimension_numbers = #tpu.dot_dimension_numbers<[1], [0], [0], [1], [0, 0, 1, 1], [], []>} : vector<16x32xbf16>, vector<32x8xbf16>, vector<16x8xf32> -> vector<16x8xf32>
    %c14_332 = arith.constant 14 : index
    %c0_333 = arith.constant 0 : index
    %c0_334 = arith.constant 0 : index
    %543 = vector.load %arg6[%c14_332, %c0_333, %c0_334] : memref<24x1x8xf32, #tpu.memory_space<vmem>>, vector<1x1x8xf32>
    %544 = vector.shape_cast %543 : vector<1x1x8xf32> to vector<1x8xf32>
    %545 = vector.broadcast %544 : vector<1x8xf32> to vector<16x8xf32>
    %546 = arith.addf %542, %545 : vector<16x8xf32>
    %c18 = arith.constant 18 : index
    %c0_335 = arith.constant 0 : index
    %c0_336 = arith.constant 0 : index
    %547 = vector.load %arg5[%c18, %c0_335, %c0_336] : memref<24x32x8xbf16, #tpu.memory_space<vmem>>, vector<1x32x8xbf16>
    %548 = vector.shape_cast %547 : vector<1x32x8xbf16> to vector<32x8xbf16>
    %cst_337 = arith.constant dense<0.000000e+00> : vector<16x8xf32>
    %549 = tpu.matmul %454, %548, %cst_337 {dimension_numbers = #tpu.dot_dimension_numbers<[1], [0], [0], [1], [0, 0, 1, 1], [], []>} : vector<16x32xbf16>, vector<32x8xbf16>, vector<16x8xf32> -> vector<16x8xf32>
    %c18_338 = arith.constant 18 : index
    %c0_339 = arith.constant 0 : index
    %c0_340 = arith.constant 0 : index
    %550 = vector.load %arg6[%c18_338, %c0_339, %c0_340] : memref<24x1x8xf32, #tpu.memory_space<vmem>>, vector<1x1x8xf32>
    %551 = vector.shape_cast %550 : vector<1x1x8xf32> to vector<1x8xf32>
    %552 = vector.broadcast %551 : vector<1x8xf32> to vector<16x8xf32>
    %553 = arith.addf %549, %552 : vector<16x8xf32>
    %c22 = arith.constant 22 : index
    %c0_341 = arith.constant 0 : index
    %c0_342 = arith.constant 0 : index
    %554 = vector.load %arg5[%c22, %c0_341, %c0_342] : memref<24x32x8xbf16, #tpu.memory_space<vmem>>, vector<1x32x8xbf16>
    %555 = vector.shape_cast %554 : vector<1x32x8xbf16> to vector<32x8xbf16>
    %cst_343 = arith.constant dense<0.000000e+00> : vector<16x8xf32>
    %556 = tpu.matmul %454, %555, %cst_343 {dimension_numbers = #tpu.dot_dimension_numbers<[1], [0], [0], [1], [0, 0, 1, 1], [], []>} : vector<16x32xbf16>, vector<32x8xbf16>, vector<16x8xf32> -> vector<16x8xf32>
    %c22_344 = arith.constant 22 : index
    %c0_345 = arith.constant 0 : index
    %c0_346 = arith.constant 0 : index
    %557 = vector.load %arg6[%c22_344, %c0_345, %c0_346] : memref<24x1x8xf32, #tpu.memory_space<vmem>>, vector<1x1x8xf32>
    %558 = vector.shape_cast %557 : vector<1x1x8xf32> to vector<1x8xf32>
    %559 = vector.broadcast %558 : vector<1x8xf32> to vector<16x8xf32>
    %560 = arith.addf %556, %559 : vector<16x8xf32>
    %561 = arith.truncf %546 : vector<16x8xf32> to vector<16x8xbf16>
    %562 = arith.truncf %553 : vector<16x8xf32> to vector<16x8xbf16>
    %cst_347 = arith.constant dense<0.000000e+00> : vector<16x16xf32>
    %563 = tpu.matmul %561, %562, %cst_347 {dimension_numbers = #tpu.dot_dimension_numbers<[1], [1], [0], [0], [0, 0, 1, 0], [], []>} : vector<16x8xbf16>, vector<16x8xbf16>, vector<16x16xf32> -> vector<16x16xf32>
    %564 = arith.addf %563, %4 : vector<16x16xf32>
    %cst_348 = arith.constant dense<0xFF800000> : vector<16xf32>
    %565 = vector.multi_reduction <maximumf>, %564, %cst_348 [1] : vector<16x16xf32> to vector<16xf32>
    %566 = vector.shape_cast %565 : vector<16xf32> to vector<16x1xf32>
    %567 = vector.broadcast %566 : vector<16x1xf32> to vector<16x16xf32>
    %568 = arith.subf %564, %567 : vector<16x16xf32>
    %569 = math.exp %568 : vector<16x16xf32>
    %cst_349 = arith.constant dense<0.000000e+00> : vector<16xf32>
    %570 = vector.multi_reduction <add>, %569, %cst_349 [1] : vector<16x16xf32> to vector<16xf32>
    %571 = vector.shape_cast %570 : vector<16xf32> to vector<16x1xf32>
    %572 = tpu.reciprocal %571 {approx = true} : vector<16x1xf32> -> vector<16x1xf32>
    %573 = vector.broadcast %572 : vector<16x1xf32> to vector<16x16xf32>
    %574 = arith.mulf %569, %573 : vector<16x16xf32>
    %575 = arith.truncf %574 : vector<16x16xf32> to vector<16x16xbf16>
    %576 = arith.truncf %560 : vector<16x8xf32> to vector<16x8xbf16>
    %cst_350 = arith.constant dense<0.000000e+00> : vector<16x8xf32>
    %577 = tpu.matmul %575, %576, %cst_350 {dimension_numbers = #tpu.dot_dimension_numbers<[1], [0], [0], [1], [0, 0, 1, 1], [], []>} : vector<16x16xbf16>, vector<16x8xbf16>, vector<16x8xf32> -> vector<16x8xf32>
    %578 = arith.truncf %577 : vector<16x8xf32> to vector<16x8xbf16>
    %c6_351 = arith.constant 6 : index
    %c0_352 = arith.constant 0 : index
    %c0_353 = arith.constant 0 : index
    %579 = vector.load %arg7[%c6_351, %c0_352, %c0_353] : memref<8x8x32xbf16, #tpu.memory_space<vmem>>, vector<1x8x32xbf16>
    %580 = vector.shape_cast %579 : vector<1x8x32xbf16> to vector<8x32xbf16>
    %cst_354 = arith.constant dense<0.000000e+00> : vector<16x32xf32>
    %581 = tpu.matmul %578, %580, %cst_354 {dimension_numbers = #tpu.dot_dimension_numbers<[1], [0], [0], [1], [0, 0, 1, 1], [], []>} : vector<16x8xbf16>, vector<8x32xbf16>, vector<16x32xf32> -> vector<16x32xf32>
    %582 = arith.addf %539, %581 : vector<16x32xf32>
    %c15 = arith.constant 15 : index
    %c0_355 = arith.constant 0 : index
    %c0_356 = arith.constant 0 : index
    %583 = vector.load %arg5[%c15, %c0_355, %c0_356] : memref<24x32x8xbf16, #tpu.memory_space<vmem>>, vector<1x32x8xbf16>
    %584 = vector.shape_cast %583 : vector<1x32x8xbf16> to vector<32x8xbf16>
    %cst_357 = arith.constant dense<0.000000e+00> : vector<16x8xf32>
    %585 = tpu.matmul %454, %584, %cst_357 {dimension_numbers = #tpu.dot_dimension_numbers<[1], [0], [0], [1], [0, 0, 1, 1], [], []>} : vector<16x32xbf16>, vector<32x8xbf16>, vector<16x8xf32> -> vector<16x8xf32>
    %c15_358 = arith.constant 15 : index
    %c0_359 = arith.constant 0 : index
    %c0_360 = arith.constant 0 : index
    %586 = vector.load %arg6[%c15_358, %c0_359, %c0_360] : memref<24x1x8xf32, #tpu.memory_space<vmem>>, vector<1x1x8xf32>
    %587 = vector.shape_cast %586 : vector<1x1x8xf32> to vector<1x8xf32>
    %588 = vector.broadcast %587 : vector<1x8xf32> to vector<16x8xf32>
    %589 = arith.addf %585, %588 : vector<16x8xf32>
    %c19 = arith.constant 19 : index
    %c0_361 = arith.constant 0 : index
    %c0_362 = arith.constant 0 : index
    %590 = vector.load %arg5[%c19, %c0_361, %c0_362] : memref<24x32x8xbf16, #tpu.memory_space<vmem>>, vector<1x32x8xbf16>
    %591 = vector.shape_cast %590 : vector<1x32x8xbf16> to vector<32x8xbf16>
    %cst_363 = arith.constant dense<0.000000e+00> : vector<16x8xf32>
    %592 = tpu.matmul %454, %591, %cst_363 {dimension_numbers = #tpu.dot_dimension_numbers<[1], [0], [0], [1], [0, 0, 1, 1], [], []>} : vector<16x32xbf16>, vector<32x8xbf16>, vector<16x8xf32> -> vector<16x8xf32>
    %c19_364 = arith.constant 19 : index
    %c0_365 = arith.constant 0 : index
    %c0_366 = arith.constant 0 : index
    %593 = vector.load %arg6[%c19_364, %c0_365, %c0_366] : memref<24x1x8xf32, #tpu.memory_space<vmem>>, vector<1x1x8xf32>
    %594 = vector.shape_cast %593 : vector<1x1x8xf32> to vector<1x8xf32>
    %595 = vector.broadcast %594 : vector<1x8xf32> to vector<16x8xf32>
    %596 = arith.addf %592, %595 : vector<16x8xf32>
    %c23 = arith.constant 23 : index
    %c0_367 = arith.constant 0 : index
    %c0_368 = arith.constant 0 : index
    %597 = vector.load %arg5[%c23, %c0_367, %c0_368] : memref<24x32x8xbf16, #tpu.memory_space<vmem>>, vector<1x32x8xbf16>
    %598 = vector.shape_cast %597 : vector<1x32x8xbf16> to vector<32x8xbf16>
    %cst_369 = arith.constant dense<0.000000e+00> : vector<16x8xf32>
    %599 = tpu.matmul %454, %598, %cst_369 {dimension_numbers = #tpu.dot_dimension_numbers<[1], [0], [0], [1], [0, 0, 1, 1], [], []>} : vector<16x32xbf16>, vector<32x8xbf16>, vector<16x8xf32> -> vector<16x8xf32>
    %c23_370 = arith.constant 23 : index
    %c0_371 = arith.constant 0 : index
    %c0_372 = arith.constant 0 : index
    %600 = vector.load %arg6[%c23_370, %c0_371, %c0_372] : memref<24x1x8xf32, #tpu.memory_space<vmem>>, vector<1x1x8xf32>
    %601 = vector.shape_cast %600 : vector<1x1x8xf32> to vector<1x8xf32>
    %602 = vector.broadcast %601 : vector<1x8xf32> to vector<16x8xf32>
    %603 = arith.addf %599, %602 : vector<16x8xf32>
    %604 = arith.truncf %589 : vector<16x8xf32> to vector<16x8xbf16>
    %605 = arith.truncf %596 : vector<16x8xf32> to vector<16x8xbf16>
    %cst_373 = arith.constant dense<0.000000e+00> : vector<16x16xf32>
    %606 = tpu.matmul %604, %605, %cst_373 {dimension_numbers = #tpu.dot_dimension_numbers<[1], [1], [0], [0], [0, 0, 1, 0], [], []>} : vector<16x8xbf16>, vector<16x8xbf16>, vector<16x16xf32> -> vector<16x16xf32>
    %607 = arith.addf %606, %4 : vector<16x16xf32>
    %cst_374 = arith.constant dense<0xFF800000> : vector<16xf32>
    %608 = vector.multi_reduction <maximumf>, %607, %cst_374 [1] : vector<16x16xf32> to vector<16xf32>
    %609 = vector.shape_cast %608 : vector<16xf32> to vector<16x1xf32>
    %610 = vector.broadcast %609 : vector<16x1xf32> to vector<16x16xf32>
    %611 = arith.subf %607, %610 : vector<16x16xf32>
    %612 = math.exp %611 : vector<16x16xf32>
    %cst_375 = arith.constant dense<0.000000e+00> : vector<16xf32>
    %613 = vector.multi_reduction <add>, %612, %cst_375 [1] : vector<16x16xf32> to vector<16xf32>
    %614 = vector.shape_cast %613 : vector<16xf32> to vector<16x1xf32>
    %615 = tpu.reciprocal %614 {approx = true} : vector<16x1xf32> -> vector<16x1xf32>
    %616 = vector.broadcast %615 : vector<16x1xf32> to vector<16x16xf32>
    %617 = arith.mulf %612, %616 : vector<16x16xf32>
    %618 = arith.truncf %617 : vector<16x16xf32> to vector<16x16xbf16>
    %619 = arith.truncf %603 : vector<16x8xf32> to vector<16x8xbf16>
    %cst_376 = arith.constant dense<0.000000e+00> : vector<16x8xf32>
    %620 = tpu.matmul %618, %619, %cst_376 {dimension_numbers = #tpu.dot_dimension_numbers<[1], [0], [0], [1], [0, 0, 1, 1], [], []>} : vector<16x16xbf16>, vector<16x8xbf16>, vector<16x8xf32> -> vector<16x8xf32>
    %621 = arith.truncf %620 : vector<16x8xf32> to vector<16x8xbf16>
    %c7_377 = arith.constant 7 : index
    %c0_378 = arith.constant 0 : index
    %c0_379 = arith.constant 0 : index
    %622 = vector.load %arg7[%c7_377, %c0_378, %c0_379] : memref<8x8x32xbf16, #tpu.memory_space<vmem>>, vector<1x8x32xbf16>
    %623 = vector.shape_cast %622 : vector<1x8x32xbf16> to vector<8x32xbf16>
    %cst_380 = arith.constant dense<0.000000e+00> : vector<16x32xf32>
    %624 = tpu.matmul %621, %623, %cst_380 {dimension_numbers = #tpu.dot_dimension_numbers<[1], [0], [0], [1], [0, 0, 1, 1], [], []>} : vector<16x8xbf16>, vector<8x32xbf16>, vector<16x32xf32> -> vector<16x32xf32>
    %625 = arith.addf %582, %624 : vector<16x32xf32>
    %c1_381 = arith.constant 1 : index
    %c0_382 = arith.constant 0 : index
    %c0_383 = arith.constant 0 : index
    %626 = vector.load %arg8[%c1_381, %c0_382, %c0_383] : memref<2x1x32xf32, #tpu.memory_space<vmem>>, vector<1x1x32xf32>
    %627 = vector.shape_cast %626 : vector<1x1x32xf32> to vector<1x32xf32>
    %628 = vector.broadcast %627 : vector<1x32xf32> to vector<16x32xf32>
    %629 = arith.addf %625, %628 : vector<16x32xf32>
    %630 = arith.addf %449, %629 : vector<16x32xf32>
    %cst_384 = arith.constant dense<0.000000e+00> : vector<16xf32>
    %631 = vector.multi_reduction <add>, %630, %cst_384 [1] : vector<16x32xf32> to vector<16xf32>
    %632 = vector.shape_cast %631 : vector<16xf32> to vector<16x1xf32>
    %cst_385 = arith.constant 3.200000e+01 : f32
    %633 = vector.broadcast %cst_385 : f32 to vector<16x1xf32>
    %634 = arith.divf %632, %633 : vector<16x1xf32>
    %635 = vector.broadcast %634 : vector<16x1xf32> to vector<16x32xf32>
    %636 = arith.subf %630, %635 : vector<16x32xf32>
    %637 = arith.mulf %636, %636 : vector<16x32xf32>
    %cst_386 = arith.constant dense<0.000000e+00> : vector<16xf32>
    %638 = vector.multi_reduction <add>, %637, %cst_386 [1] : vector<16x32xf32> to vector<16xf32>
    %639 = vector.shape_cast %638 : vector<16xf32> to vector<16x1xf32>
    %cst_387 = arith.constant 3.200000e+01 : f32
    %640 = vector.broadcast %cst_387 : f32 to vector<16x1xf32>
    %641 = arith.divf %639, %640 : vector<16x1xf32>
    %642 = vector.broadcast %634 : vector<16x1xf32> to vector<16x32xf32>
    %643 = arith.subf %630, %642 : vector<16x32xf32>
    %cst_388 = arith.constant 9.99999974E-6 : f32
    %644 = vector.broadcast %cst_388 : f32 to vector<16x1xf32>
    %645 = arith.addf %641, %644 : vector<16x1xf32>
    %646 = math.rsqrt %645 : vector<16x1xf32>
    %647 = vector.broadcast %646 : vector<16x1xf32> to vector<16x32xf32>
    %648 = arith.mulf %643, %647 : vector<16x32xf32>
    %649 = vector.broadcast %451 : vector<1x32xf32> to vector<16x32xf32>
    %650 = arith.mulf %648, %649 : vector<16x32xf32>
    %651 = vector.broadcast %453 : vector<1x32xf32> to vector<16x32xf32>
    %652 = arith.addf %650, %651 : vector<16x32xf32>
    %653 = arith.truncf %652 : vector<16x32xf32> to vector<16x32xbf16>
    %c12_389 = arith.constant 12 : index
    %c0_390 = arith.constant 0 : index
    %c0_391 = arith.constant 0 : index
    %654 = vector.load %arg9[%c12_389, %c0_390, %c0_391] : memref<24x32x8xbf16, #tpu.memory_space<vmem>>, vector<1x32x8xbf16>
    %655 = vector.shape_cast %654 : vector<1x32x8xbf16> to vector<32x8xbf16>
    %cst_392 = arith.constant dense<0.000000e+00> : vector<16x8xf32>
    %656 = tpu.matmul %653, %655, %cst_392 {dimension_numbers = #tpu.dot_dimension_numbers<[1], [0], [0], [1], [0, 0, 1, 1], [], []>} : vector<16x32xbf16>, vector<32x8xbf16>, vector<16x8xf32> -> vector<16x8xf32>
    %c12_393 = arith.constant 12 : index
    %c0_394 = arith.constant 0 : index
    %c0_395 = arith.constant 0 : index
    %657 = vector.load %arg10[%c12_393, %c0_394, %c0_395] : memref<24x1x8xf32, #tpu.memory_space<vmem>>, vector<1x1x8xf32>
    %658 = vector.shape_cast %657 : vector<1x1x8xf32> to vector<1x8xf32>
    %659 = vector.broadcast %658 : vector<1x8xf32> to vector<16x8xf32>
    %660 = arith.addf %656, %659 : vector<16x8xf32>
    %c16_396 = arith.constant 16 : index
    %c0_397 = arith.constant 0 : index
    %c0_398 = arith.constant 0 : index
    %661 = vector.load %arg9[%c16_396, %c0_397, %c0_398] : memref<24x32x8xbf16, #tpu.memory_space<vmem>>, vector<1x32x8xbf16>
    %662 = vector.shape_cast %661 : vector<1x32x8xbf16> to vector<32x8xbf16>
    %cst_399 = arith.constant dense<0.000000e+00> : vector<32x8xf32>
    %663 = tpu.matmul %2, %662, %cst_399 {dimension_numbers = #tpu.dot_dimension_numbers<[1], [0], [0], [1], [0, 0, 1, 1], [], []>} : vector<32x32xbf16>, vector<32x8xbf16>, vector<32x8xf32> -> vector<32x8xf32>
    %c16_400 = arith.constant 16 : index
    %c0_401 = arith.constant 0 : index
    %c0_402 = arith.constant 0 : index
    %664 = vector.load %arg10[%c16_400, %c0_401, %c0_402] : memref<24x1x8xf32, #tpu.memory_space<vmem>>, vector<1x1x8xf32>
    %665 = vector.shape_cast %664 : vector<1x1x8xf32> to vector<1x8xf32>
    %666 = vector.broadcast %665 : vector<1x8xf32> to vector<32x8xf32>
    %667 = arith.addf %663, %666 : vector<32x8xf32>
    %c20_403 = arith.constant 20 : index
    %c0_404 = arith.constant 0 : index
    %c0_405 = arith.constant 0 : index
    %668 = vector.load %arg9[%c20_403, %c0_404, %c0_405] : memref<24x32x8xbf16, #tpu.memory_space<vmem>>, vector<1x32x8xbf16>
    %669 = vector.shape_cast %668 : vector<1x32x8xbf16> to vector<32x8xbf16>
    %cst_406 = arith.constant dense<0.000000e+00> : vector<32x8xf32>
    %670 = tpu.matmul %2, %669, %cst_406 {dimension_numbers = #tpu.dot_dimension_numbers<[1], [0], [0], [1], [0, 0, 1, 1], [], []>} : vector<32x32xbf16>, vector<32x8xbf16>, vector<32x8xf32> -> vector<32x8xf32>
    %c20_407 = arith.constant 20 : index
    %c0_408 = arith.constant 0 : index
    %c0_409 = arith.constant 0 : index
    %671 = vector.load %arg10[%c20_407, %c0_408, %c0_409] : memref<24x1x8xf32, #tpu.memory_space<vmem>>, vector<1x1x8xf32>
    %672 = vector.shape_cast %671 : vector<1x1x8xf32> to vector<1x8xf32>
    %673 = vector.broadcast %672 : vector<1x8xf32> to vector<32x8xf32>
    %674 = arith.addf %670, %673 : vector<32x8xf32>
    %675 = arith.truncf %660 : vector<16x8xf32> to vector<16x8xbf16>
    %676 = arith.truncf %667 : vector<32x8xf32> to vector<32x8xbf16>
    %cst_410 = arith.constant dense<0.000000e+00> : vector<16x32xf32>
    %677 = tpu.matmul %675, %676, %cst_410 {dimension_numbers = #tpu.dot_dimension_numbers<[1], [1], [0], [0], [0, 0, 1, 0], [], []>} : vector<16x8xbf16>, vector<32x8xbf16>, vector<16x32xf32> -> vector<16x32xf32>
    %678 = arith.addf %677, %6 : vector<16x32xf32>
    %cst_411 = arith.constant dense<0xFF800000> : vector<16xf32>
    %679 = vector.multi_reduction <maximumf>, %678, %cst_411 [1] : vector<16x32xf32> to vector<16xf32>
    %680 = vector.shape_cast %679 : vector<16xf32> to vector<16x1xf32>
    %681 = vector.broadcast %680 : vector<16x1xf32> to vector<16x32xf32>
    %682 = arith.subf %678, %681 : vector<16x32xf32>
    %683 = math.exp %682 : vector<16x32xf32>
    %cst_412 = arith.constant dense<0.000000e+00> : vector<16xf32>
    %684 = vector.multi_reduction <add>, %683, %cst_412 [1] : vector<16x32xf32> to vector<16xf32>
    %685 = vector.shape_cast %684 : vector<16xf32> to vector<16x1xf32>
    %686 = tpu.reciprocal %685 {approx = true} : vector<16x1xf32> -> vector<16x1xf32>
    %687 = vector.broadcast %686 : vector<16x1xf32> to vector<16x32xf32>
    %688 = arith.mulf %683, %687 : vector<16x32xf32>
    %689 = arith.truncf %688 : vector<16x32xf32> to vector<16x32xbf16>
    %690 = arith.truncf %674 : vector<32x8xf32> to vector<32x8xbf16>
    %cst_413 = arith.constant dense<0.000000e+00> : vector<16x8xf32>
    %691 = tpu.matmul %689, %690, %cst_413 {dimension_numbers = #tpu.dot_dimension_numbers<[1], [0], [0], [1], [0, 0, 1, 1], [], []>} : vector<16x32xbf16>, vector<32x8xbf16>, vector<16x8xf32> -> vector<16x8xf32>
    %692 = arith.truncf %691 : vector<16x8xf32> to vector<16x8xbf16>
    %c4_414 = arith.constant 4 : index
    %c0_415 = arith.constant 0 : index
    %c0_416 = arith.constant 0 : index
    %693 = vector.load %arg11[%c4_414, %c0_415, %c0_416] : memref<8x8x32xbf16, #tpu.memory_space<vmem>>, vector<1x8x32xbf16>
    %694 = vector.shape_cast %693 : vector<1x8x32xbf16> to vector<8x32xbf16>
    %cst_417 = arith.constant dense<0.000000e+00> : vector<16x32xf32>
    %695 = tpu.matmul %692, %694, %cst_417 {dimension_numbers = #tpu.dot_dimension_numbers<[1], [0], [0], [1], [0, 0, 1, 1], [], []>} : vector<16x8xbf16>, vector<8x32xbf16>, vector<16x32xf32> -> vector<16x32xf32>
    %c13_418 = arith.constant 13 : index
    %c0_419 = arith.constant 0 : index
    %c0_420 = arith.constant 0 : index
    %696 = vector.load %arg9[%c13_418, %c0_419, %c0_420] : memref<24x32x8xbf16, #tpu.memory_space<vmem>>, vector<1x32x8xbf16>
    %697 = vector.shape_cast %696 : vector<1x32x8xbf16> to vector<32x8xbf16>
    %cst_421 = arith.constant dense<0.000000e+00> : vector<16x8xf32>
    %698 = tpu.matmul %653, %697, %cst_421 {dimension_numbers = #tpu.dot_dimension_numbers<[1], [0], [0], [1], [0, 0, 1, 1], [], []>} : vector<16x32xbf16>, vector<32x8xbf16>, vector<16x8xf32> -> vector<16x8xf32>
    %c13_422 = arith.constant 13 : index
    %c0_423 = arith.constant 0 : index
    %c0_424 = arith.constant 0 : index
    %699 = vector.load %arg10[%c13_422, %c0_423, %c0_424] : memref<24x1x8xf32, #tpu.memory_space<vmem>>, vector<1x1x8xf32>
    %700 = vector.shape_cast %699 : vector<1x1x8xf32> to vector<1x8xf32>
    %701 = vector.broadcast %700 : vector<1x8xf32> to vector<16x8xf32>
    %702 = arith.addf %698, %701 : vector<16x8xf32>
    %c17_425 = arith.constant 17 : index
    %c0_426 = arith.constant 0 : index
    %c0_427 = arith.constant 0 : index
    %703 = vector.load %arg9[%c17_425, %c0_426, %c0_427] : memref<24x32x8xbf16, #tpu.memory_space<vmem>>, vector<1x32x8xbf16>
    %704 = vector.shape_cast %703 : vector<1x32x8xbf16> to vector<32x8xbf16>
    %cst_428 = arith.constant dense<0.000000e+00> : vector<32x8xf32>
    %705 = tpu.matmul %2, %704, %cst_428 {dimension_numbers = #tpu.dot_dimension_numbers<[1], [0], [0], [1], [0, 0, 1, 1], [], []>} : vector<32x32xbf16>, vector<32x8xbf16>, vector<32x8xf32> -> vector<32x8xf32>
    %c17_429 = arith.constant 17 : index
    %c0_430 = arith.constant 0 : index
    %c0_431 = arith.constant 0 : index
    %706 = vector.load %arg10[%c17_429, %c0_430, %c0_431] : memref<24x1x8xf32, #tpu.memory_space<vmem>>, vector<1x1x8xf32>
    %707 = vector.shape_cast %706 : vector<1x1x8xf32> to vector<1x8xf32>
    %708 = vector.broadcast %707 : vector<1x8xf32> to vector<32x8xf32>
    %709 = arith.addf %705, %708 : vector<32x8xf32>
    %c21_432 = arith.constant 21 : index
    %c0_433 = arith.constant 0 : index
    %c0_434 = arith.constant 0 : index
    %710 = vector.load %arg9[%c21_432, %c0_433, %c0_434] : memref<24x32x8xbf16, #tpu.memory_space<vmem>>, vector<1x32x8xbf16>
    %711 = vector.shape_cast %710 : vector<1x32x8xbf16> to vector<32x8xbf16>
    %cst_435 = arith.constant dense<0.000000e+00> : vector<32x8xf32>
    %712 = tpu.matmul %2, %711, %cst_435 {dimension_numbers = #tpu.dot_dimension_numbers<[1], [0], [0], [1], [0, 0, 1, 1], [], []>} : vector<32x32xbf16>, vector<32x8xbf16>, vector<32x8xf32> -> vector<32x8xf32>
    %c21_436 = arith.constant 21 : index
    %c0_437 = arith.constant 0 : index
    %c0_438 = arith.constant 0 : index
    %713 = vector.load %arg10[%c21_436, %c0_437, %c0_438] : memref<24x1x8xf32, #tpu.memory_space<vmem>>, vector<1x1x8xf32>
    %714 = vector.shape_cast %713 : vector<1x1x8xf32> to vector<1x8xf32>
    %715 = vector.broadcast %714 : vector<1x8xf32> to vector<32x8xf32>
    %716 = arith.addf %712, %715 : vector<32x8xf32>
    %717 = arith.truncf %702 : vector<16x8xf32> to vector<16x8xbf16>
    %718 = arith.truncf %709 : vector<32x8xf32> to vector<32x8xbf16>
    %cst_439 = arith.constant dense<0.000000e+00> : vector<16x32xf32>
    %719 = tpu.matmul %717, %718, %cst_439 {dimension_numbers = #tpu.dot_dimension_numbers<[1], [1], [0], [0], [0, 0, 1, 0], [], []>} : vector<16x8xbf16>, vector<32x8xbf16>, vector<16x32xf32> -> vector<16x32xf32>
    %720 = arith.addf %719, %6 : vector<16x32xf32>
    %cst_440 = arith.constant dense<0xFF800000> : vector<16xf32>
    %721 = vector.multi_reduction <maximumf>, %720, %cst_440 [1] : vector<16x32xf32> to vector<16xf32>
    %722 = vector.shape_cast %721 : vector<16xf32> to vector<16x1xf32>
    %723 = vector.broadcast %722 : vector<16x1xf32> to vector<16x32xf32>
    %724 = arith.subf %720, %723 : vector<16x32xf32>
    %725 = math.exp %724 : vector<16x32xf32>
    %cst_441 = arith.constant dense<0.000000e+00> : vector<16xf32>
    %726 = vector.multi_reduction <add>, %725, %cst_441 [1] : vector<16x32xf32> to vector<16xf32>
    %727 = vector.shape_cast %726 : vector<16xf32> to vector<16x1xf32>
    %728 = tpu.reciprocal %727 {approx = true} : vector<16x1xf32> -> vector<16x1xf32>
    %729 = vector.broadcast %728 : vector<16x1xf32> to vector<16x32xf32>
    %730 = arith.mulf %725, %729 : vector<16x32xf32>
    %731 = arith.truncf %730 : vector<16x32xf32> to vector<16x32xbf16>
    %732 = arith.truncf %716 : vector<32x8xf32> to vector<32x8xbf16>
    %cst_442 = arith.constant dense<0.000000e+00> : vector<16x8xf32>
    %733 = tpu.matmul %731, %732, %cst_442 {dimension_numbers = #tpu.dot_dimension_numbers<[1], [0], [0], [1], [0, 0, 1, 1], [], []>} : vector<16x32xbf16>, vector<32x8xbf16>, vector<16x8xf32> -> vector<16x8xf32>
    %734 = arith.truncf %733 : vector<16x8xf32> to vector<16x8xbf16>
    %c5_443 = arith.constant 5 : index
    %c0_444 = arith.constant 0 : index
    %c0_445 = arith.constant 0 : index
    %735 = vector.load %arg11[%c5_443, %c0_444, %c0_445] : memref<8x8x32xbf16, #tpu.memory_space<vmem>>, vector<1x8x32xbf16>
    %736 = vector.shape_cast %735 : vector<1x8x32xbf16> to vector<8x32xbf16>
    %cst_446 = arith.constant dense<0.000000e+00> : vector<16x32xf32>
    %737 = tpu.matmul %734, %736, %cst_446 {dimension_numbers = #tpu.dot_dimension_numbers<[1], [0], [0], [1], [0, 0, 1, 1], [], []>} : vector<16x8xbf16>, vector<8x32xbf16>, vector<16x32xf32> -> vector<16x32xf32>
    %738 = arith.addf %695, %737 : vector<16x32xf32>
    %c14_447 = arith.constant 14 : index
    %c0_448 = arith.constant 0 : index
    %c0_449 = arith.constant 0 : index
    %739 = vector.load %arg9[%c14_447, %c0_448, %c0_449] : memref<24x32x8xbf16, #tpu.memory_space<vmem>>, vector<1x32x8xbf16>
    %740 = vector.shape_cast %739 : vector<1x32x8xbf16> to vector<32x8xbf16>
    %cst_450 = arith.constant dense<0.000000e+00> : vector<16x8xf32>
    %741 = tpu.matmul %653, %740, %cst_450 {dimension_numbers = #tpu.dot_dimension_numbers<[1], [0], [0], [1], [0, 0, 1, 1], [], []>} : vector<16x32xbf16>, vector<32x8xbf16>, vector<16x8xf32> -> vector<16x8xf32>
    %c14_451 = arith.constant 14 : index
    %c0_452 = arith.constant 0 : index
    %c0_453 = arith.constant 0 : index
    %742 = vector.load %arg10[%c14_451, %c0_452, %c0_453] : memref<24x1x8xf32, #tpu.memory_space<vmem>>, vector<1x1x8xf32>
    %743 = vector.shape_cast %742 : vector<1x1x8xf32> to vector<1x8xf32>
    %744 = vector.broadcast %743 : vector<1x8xf32> to vector<16x8xf32>
    %745 = arith.addf %741, %744 : vector<16x8xf32>
    %c18_454 = arith.constant 18 : index
    %c0_455 = arith.constant 0 : index
    %c0_456 = arith.constant 0 : index
    %746 = vector.load %arg9[%c18_454, %c0_455, %c0_456] : memref<24x32x8xbf16, #tpu.memory_space<vmem>>, vector<1x32x8xbf16>
    %747 = vector.shape_cast %746 : vector<1x32x8xbf16> to vector<32x8xbf16>
    %cst_457 = arith.constant dense<0.000000e+00> : vector<32x8xf32>
    %748 = tpu.matmul %2, %747, %cst_457 {dimension_numbers = #tpu.dot_dimension_numbers<[1], [0], [0], [1], [0, 0, 1, 1], [], []>} : vector<32x32xbf16>, vector<32x8xbf16>, vector<32x8xf32> -> vector<32x8xf32>
    %c18_458 = arith.constant 18 : index
    %c0_459 = arith.constant 0 : index
    %c0_460 = arith.constant 0 : index
    %749 = vector.load %arg10[%c18_458, %c0_459, %c0_460] : memref<24x1x8xf32, #tpu.memory_space<vmem>>, vector<1x1x8xf32>
    %750 = vector.shape_cast %749 : vector<1x1x8xf32> to vector<1x8xf32>
    %751 = vector.broadcast %750 : vector<1x8xf32> to vector<32x8xf32>
    %752 = arith.addf %748, %751 : vector<32x8xf32>
    %c22_461 = arith.constant 22 : index
    %c0_462 = arith.constant 0 : index
    %c0_463 = arith.constant 0 : index
    %753 = vector.load %arg9[%c22_461, %c0_462, %c0_463] : memref<24x32x8xbf16, #tpu.memory_space<vmem>>, vector<1x32x8xbf16>
    %754 = vector.shape_cast %753 : vector<1x32x8xbf16> to vector<32x8xbf16>
    %cst_464 = arith.constant dense<0.000000e+00> : vector<32x8xf32>
    %755 = tpu.matmul %2, %754, %cst_464 {dimension_numbers = #tpu.dot_dimension_numbers<[1], [0], [0], [1], [0, 0, 1, 1], [], []>} : vector<32x32xbf16>, vector<32x8xbf16>, vector<32x8xf32> -> vector<32x8xf32>
    %c22_465 = arith.constant 22 : index
    %c0_466 = arith.constant 0 : index
    %c0_467 = arith.constant 0 : index
    %756 = vector.load %arg10[%c22_465, %c0_466, %c0_467] : memref<24x1x8xf32, #tpu.memory_space<vmem>>, vector<1x1x8xf32>
    %757 = vector.shape_cast %756 : vector<1x1x8xf32> to vector<1x8xf32>
    %758 = vector.broadcast %757 : vector<1x8xf32> to vector<32x8xf32>
    %759 = arith.addf %755, %758 : vector<32x8xf32>
    %760 = arith.truncf %745 : vector<16x8xf32> to vector<16x8xbf16>
    %761 = arith.truncf %752 : vector<32x8xf32> to vector<32x8xbf16>
    %cst_468 = arith.constant dense<0.000000e+00> : vector<16x32xf32>
    %762 = tpu.matmul %760, %761, %cst_468 {dimension_numbers = #tpu.dot_dimension_numbers<[1], [1], [0], [0], [0, 0, 1, 0], [], []>} : vector<16x8xbf16>, vector<32x8xbf16>, vector<16x32xf32> -> vector<16x32xf32>
    %763 = arith.addf %762, %6 : vector<16x32xf32>
    %cst_469 = arith.constant dense<0xFF800000> : vector<16xf32>
    %764 = vector.multi_reduction <maximumf>, %763, %cst_469 [1] : vector<16x32xf32> to vector<16xf32>
    %765 = vector.shape_cast %764 : vector<16xf32> to vector<16x1xf32>
    %766 = vector.broadcast %765 : vector<16x1xf32> to vector<16x32xf32>
    %767 = arith.subf %763, %766 : vector<16x32xf32>
    %768 = math.exp %767 : vector<16x32xf32>
    %cst_470 = arith.constant dense<0.000000e+00> : vector<16xf32>
    %769 = vector.multi_reduction <add>, %768, %cst_470 [1] : vector<16x32xf32> to vector<16xf32>
    %770 = vector.shape_cast %769 : vector<16xf32> to vector<16x1xf32>
    %771 = tpu.reciprocal %770 {approx = true} : vector<16x1xf32> -> vector<16x1xf32>
    %772 = vector.broadcast %771 : vector<16x1xf32> to vector<16x32xf32>
    %773 = arith.mulf %768, %772 : vector<16x32xf32>
    %774 = arith.truncf %773 : vector<16x32xf32> to vector<16x32xbf16>
    %775 = arith.truncf %759 : vector<32x8xf32> to vector<32x8xbf16>
    %cst_471 = arith.constant dense<0.000000e+00> : vector<16x8xf32>
    %776 = tpu.matmul %774, %775, %cst_471 {dimension_numbers = #tpu.dot_dimension_numbers<[1], [0], [0], [1], [0, 0, 1, 1], [], []>} : vector<16x32xbf16>, vector<32x8xbf16>, vector<16x8xf32> -> vector<16x8xf32>
    %777 = arith.truncf %776 : vector<16x8xf32> to vector<16x8xbf16>
    %c6_472 = arith.constant 6 : index
    %c0_473 = arith.constant 0 : index
    %c0_474 = arith.constant 0 : index
    %778 = vector.load %arg11[%c6_472, %c0_473, %c0_474] : memref<8x8x32xbf16, #tpu.memory_space<vmem>>, vector<1x8x32xbf16>
    %779 = vector.shape_cast %778 : vector<1x8x32xbf16> to vector<8x32xbf16>
    %cst_475 = arith.constant dense<0.000000e+00> : vector<16x32xf32>
    %780 = tpu.matmul %777, %779, %cst_475 {dimension_numbers = #tpu.dot_dimension_numbers<[1], [0], [0], [1], [0, 0, 1, 1], [], []>} : vector<16x8xbf16>, vector<8x32xbf16>, vector<16x32xf32> -> vector<16x32xf32>
    %781 = arith.addf %738, %780 : vector<16x32xf32>
    %c15_476 = arith.constant 15 : index
    %c0_477 = arith.constant 0 : index
    %c0_478 = arith.constant 0 : index
    %782 = vector.load %arg9[%c15_476, %c0_477, %c0_478] : memref<24x32x8xbf16, #tpu.memory_space<vmem>>, vector<1x32x8xbf16>
    %783 = vector.shape_cast %782 : vector<1x32x8xbf16> to vector<32x8xbf16>
    %cst_479 = arith.constant dense<0.000000e+00> : vector<16x8xf32>
    %784 = tpu.matmul %653, %783, %cst_479 {dimension_numbers = #tpu.dot_dimension_numbers<[1], [0], [0], [1], [0, 0, 1, 1], [], []>} : vector<16x32xbf16>, vector<32x8xbf16>, vector<16x8xf32> -> vector<16x8xf32>
    %c15_480 = arith.constant 15 : index
    %c0_481 = arith.constant 0 : index
    %c0_482 = arith.constant 0 : index
    %785 = vector.load %arg10[%c15_480, %c0_481, %c0_482] : memref<24x1x8xf32, #tpu.memory_space<vmem>>, vector<1x1x8xf32>
    %786 = vector.shape_cast %785 : vector<1x1x8xf32> to vector<1x8xf32>
    %787 = vector.broadcast %786 : vector<1x8xf32> to vector<16x8xf32>
    %788 = arith.addf %784, %787 : vector<16x8xf32>
    %c19_483 = arith.constant 19 : index
    %c0_484 = arith.constant 0 : index
    %c0_485 = arith.constant 0 : index
    %789 = vector.load %arg9[%c19_483, %c0_484, %c0_485] : memref<24x32x8xbf16, #tpu.memory_space<vmem>>, vector<1x32x8xbf16>
    %790 = vector.shape_cast %789 : vector<1x32x8xbf16> to vector<32x8xbf16>
    %cst_486 = arith.constant dense<0.000000e+00> : vector<32x8xf32>
    %791 = tpu.matmul %2, %790, %cst_486 {dimension_numbers = #tpu.dot_dimension_numbers<[1], [0], [0], [1], [0, 0, 1, 1], [], []>} : vector<32x32xbf16>, vector<32x8xbf16>, vector<32x8xf32> -> vector<32x8xf32>
    %c19_487 = arith.constant 19 : index
    %c0_488 = arith.constant 0 : index
    %c0_489 = arith.constant 0 : index
    %792 = vector.load %arg10[%c19_487, %c0_488, %c0_489] : memref<24x1x8xf32, #tpu.memory_space<vmem>>, vector<1x1x8xf32>
    %793 = vector.shape_cast %792 : vector<1x1x8xf32> to vector<1x8xf32>
    %794 = vector.broadcast %793 : vector<1x8xf32> to vector<32x8xf32>
    %795 = arith.addf %791, %794 : vector<32x8xf32>
    %c23_490 = arith.constant 23 : index
    %c0_491 = arith.constant 0 : index
    %c0_492 = arith.constant 0 : index
    %796 = vector.load %arg9[%c23_490, %c0_491, %c0_492] : memref<24x32x8xbf16, #tpu.memory_space<vmem>>, vector<1x32x8xbf16>
    %797 = vector.shape_cast %796 : vector<1x32x8xbf16> to vector<32x8xbf16>
    %cst_493 = arith.constant dense<0.000000e+00> : vector<32x8xf32>
    %798 = tpu.matmul %2, %797, %cst_493 {dimension_numbers = #tpu.dot_dimension_numbers<[1], [0], [0], [1], [0, 0, 1, 1], [], []>} : vector<32x32xbf16>, vector<32x8xbf16>, vector<32x8xf32> -> vector<32x8xf32>
    %c23_494 = arith.constant 23 : index
    %c0_495 = arith.constant 0 : index
    %c0_496 = arith.constant 0 : index
    %799 = vector.load %arg10[%c23_494, %c0_495, %c0_496] : memref<24x1x8xf32, #tpu.memory_space<vmem>>, vector<1x1x8xf32>
    %800 = vector.shape_cast %799 : vector<1x1x8xf32> to vector<1x8xf32>
    %801 = vector.broadcast %800 : vector<1x8xf32> to vector<32x8xf32>
    %802 = arith.addf %798, %801 : vector<32x8xf32>
    %803 = arith.truncf %788 : vector<16x8xf32> to vector<16x8xbf16>
    %804 = arith.truncf %795 : vector<32x8xf32> to vector<32x8xbf16>
    %cst_497 = arith.constant dense<0.000000e+00> : vector<16x32xf32>
    %805 = tpu.matmul %803, %804, %cst_497 {dimension_numbers = #tpu.dot_dimension_numbers<[1], [1], [0], [0], [0, 0, 1, 0], [], []>} : vector<16x8xbf16>, vector<32x8xbf16>, vector<16x32xf32> -> vector<16x32xf32>
    %806 = arith.addf %805, %6 : vector<16x32xf32>
    %cst_498 = arith.constant dense<0xFF800000> : vector<16xf32>
    %807 = vector.multi_reduction <maximumf>, %806, %cst_498 [1] : vector<16x32xf32> to vector<16xf32>
    %808 = vector.shape_cast %807 : vector<16xf32> to vector<16x1xf32>
    %809 = vector.broadcast %808 : vector<16x1xf32> to vector<16x32xf32>
    %810 = arith.subf %806, %809 : vector<16x32xf32>
    %811 = math.exp %810 : vector<16x32xf32>
    %cst_499 = arith.constant dense<0.000000e+00> : vector<16xf32>
    %812 = vector.multi_reduction <add>, %811, %cst_499 [1] : vector<16x32xf32> to vector<16xf32>
    %813 = vector.shape_cast %812 : vector<16xf32> to vector<16x1xf32>
    %814 = tpu.reciprocal %813 {approx = true} : vector<16x1xf32> -> vector<16x1xf32>
    %815 = vector.broadcast %814 : vector<16x1xf32> to vector<16x32xf32>
    %816 = arith.mulf %811, %815 : vector<16x32xf32>
    %817 = arith.truncf %816 : vector<16x32xf32> to vector<16x32xbf16>
    %818 = arith.truncf %802 : vector<32x8xf32> to vector<32x8xbf16>
    %cst_500 = arith.constant dense<0.000000e+00> : vector<16x8xf32>
    %819 = tpu.matmul %817, %818, %cst_500 {dimension_numbers = #tpu.dot_dimension_numbers<[1], [0], [0], [1], [0, 0, 1, 1], [], []>} : vector<16x32xbf16>, vector<32x8xbf16>, vector<16x8xf32> -> vector<16x8xf32>
    %820 = arith.truncf %819 : vector<16x8xf32> to vector<16x8xbf16>
    %c7_501 = arith.constant 7 : index
    %c0_502 = arith.constant 0 : index
    %c0_503 = arith.constant 0 : index
    %821 = vector.load %arg11[%c7_501, %c0_502, %c0_503] : memref<8x8x32xbf16, #tpu.memory_space<vmem>>, vector<1x8x32xbf16>
    %822 = vector.shape_cast %821 : vector<1x8x32xbf16> to vector<8x32xbf16>
    %cst_504 = arith.constant dense<0.000000e+00> : vector<16x32xf32>
    %823 = tpu.matmul %820, %822, %cst_504 {dimension_numbers = #tpu.dot_dimension_numbers<[1], [0], [0], [1], [0, 0, 1, 1], [], []>} : vector<16x8xbf16>, vector<8x32xbf16>, vector<16x32xf32> -> vector<16x32xf32>
    %824 = arith.addf %781, %823 : vector<16x32xf32>
    %c1_505 = arith.constant 1 : index
    %c0_506 = arith.constant 0 : index
    %c0_507 = arith.constant 0 : index
    %825 = vector.load %arg12[%c1_505, %c0_506, %c0_507] : memref<2x1x32xf32, #tpu.memory_space<vmem>>, vector<1x1x32xf32>
    %826 = vector.shape_cast %825 : vector<1x1x32xf32> to vector<1x32xf32>
    %827 = vector.broadcast %826 : vector<1x32xf32> to vector<16x32xf32>
    %828 = arith.addf %824, %827 : vector<16x32xf32>
    %829 = arith.addf %652, %828 : vector<16x32xf32>
    %cst_508 = arith.constant dense<0.000000e+00> : vector<16xf32>
    %830 = vector.multi_reduction <add>, %829, %cst_508 [1] : vector<16x32xf32> to vector<16xf32>
    %831 = vector.shape_cast %830 : vector<16xf32> to vector<16x1xf32>
    %cst_509 = arith.constant 3.200000e+01 : f32
    %832 = vector.broadcast %cst_509 : f32 to vector<16x1xf32>
    %833 = arith.divf %831, %832 : vector<16x1xf32>
    %834 = vector.broadcast %833 : vector<16x1xf32> to vector<16x32xf32>
    %835 = arith.subf %829, %834 : vector<16x32xf32>
    %836 = arith.mulf %835, %835 : vector<16x32xf32>
    %cst_510 = arith.constant dense<0.000000e+00> : vector<16xf32>
    %837 = vector.multi_reduction <add>, %836, %cst_510 [1] : vector<16x32xf32> to vector<16xf32>
    %838 = vector.shape_cast %837 : vector<16xf32> to vector<16x1xf32>
    %cst_511 = arith.constant 3.200000e+01 : f32
    %839 = vector.broadcast %cst_511 : f32 to vector<16x1xf32>
    %840 = arith.divf %838, %839 : vector<16x1xf32>
    %841 = vector.broadcast %833 : vector<16x1xf32> to vector<16x32xf32>
    %842 = arith.subf %829, %841 : vector<16x32xf32>
    %cst_512 = arith.constant 9.99999974E-6 : f32
    %843 = vector.broadcast %cst_512 : f32 to vector<16x1xf32>
    %844 = arith.addf %840, %843 : vector<16x1xf32>
    %845 = math.rsqrt %844 : vector<16x1xf32>
    %846 = vector.broadcast %845 : vector<16x1xf32> to vector<16x32xf32>
    %847 = arith.mulf %842, %846 : vector<16x32xf32>
    %848 = vector.broadcast %451 : vector<1x32xf32> to vector<16x32xf32>
    %849 = arith.mulf %847, %848 : vector<16x32xf32>
    %850 = vector.broadcast %453 : vector<1x32xf32> to vector<16x32xf32>
    %851 = arith.addf %849, %850 : vector<16x32xf32>
    %852 = arith.truncf %851 : vector<16x32xf32> to vector<16x32xbf16>
    %c1_513 = arith.constant 1 : index
    %c0_514 = arith.constant 0 : index
    %c0_515 = arith.constant 0 : index
    %853 = vector.load %arg13[%c1_513, %c0_514, %c0_515] : memref<2x32x64xbf16, #tpu.memory_space<vmem>>, vector<1x32x64xbf16>
    %854 = vector.shape_cast %853 : vector<1x32x64xbf16> to vector<32x64xbf16>
    %cst_516 = arith.constant dense<0.000000e+00> : vector<16x64xf32>
    %855 = tpu.matmul %852, %854, %cst_516 {dimension_numbers = #tpu.dot_dimension_numbers<[1], [0], [0], [1], [0, 0, 1, 1], [], []>} : vector<16x32xbf16>, vector<32x64xbf16>, vector<16x64xf32> -> vector<16x64xf32>
    %c1_517 = arith.constant 1 : index
    %c0_518 = arith.constant 0 : index
    %c0_519 = arith.constant 0 : index
    %856 = vector.load %arg14[%c1_517, %c0_518, %c0_519] : memref<2x1x64xf32, #tpu.memory_space<vmem>>, vector<1x1x64xf32>
    %857 = vector.shape_cast %856 : vector<1x1x64xf32> to vector<1x64xf32>
    %858 = vector.broadcast %857 : vector<1x64xf32> to vector<16x64xf32>
    %859 = arith.addf %855, %858 : vector<16x64xf32>
    %cst_520 = arith.constant 0.000000e+00 : f32
    %860 = vector.broadcast %cst_520 : f32 to vector<16x64xf32>
    %861 = arith.maximumf %859, %860 : vector<16x64xf32>
    %862 = arith.truncf %861 : vector<16x64xf32> to vector<16x64xbf16>
    %c1_521 = arith.constant 1 : index
    %c0_522 = arith.constant 0 : index
    %c0_523 = arith.constant 0 : index
    %863 = vector.load %arg15[%c1_521, %c0_522, %c0_523] : memref<2x64x32xbf16, #tpu.memory_space<vmem>>, vector<1x64x32xbf16>
    %864 = vector.shape_cast %863 : vector<1x64x32xbf16> to vector<64x32xbf16>
    %cst_524 = arith.constant dense<0.000000e+00> : vector<16x32xf32>
    %865 = tpu.matmul %862, %864, %cst_524 {dimension_numbers = #tpu.dot_dimension_numbers<[1], [0], [0], [1], [0, 0, 1, 1], [], []>} : vector<16x64xbf16>, vector<64x32xbf16>, vector<16x32xf32> -> vector<16x32xf32>
    %c1_525 = arith.constant 1 : index
    %c0_526 = arith.constant 0 : index
    %c0_527 = arith.constant 0 : index
    %866 = vector.load %arg16[%c1_525, %c0_526, %c0_527] : memref<2x1x32xf32, #tpu.memory_space<vmem>>, vector<1x1x32xf32>
    %867 = vector.shape_cast %866 : vector<1x1x32xf32> to vector<1x32xf32>
    %868 = vector.broadcast %867 : vector<1x32xf32> to vector<16x32xf32>
    %869 = arith.addf %865, %868 : vector<16x32xf32>
    %870 = arith.addf %851, %869 : vector<16x32xf32>
    %cst_528 = arith.constant dense<0.000000e+00> : vector<16xf32>
    %871 = vector.multi_reduction <add>, %870, %cst_528 [1] : vector<16x32xf32> to vector<16xf32>
    %872 = vector.shape_cast %871 : vector<16xf32> to vector<16x1xf32>
    %cst_529 = arith.constant 3.200000e+01 : f32
    %873 = vector.broadcast %cst_529 : f32 to vector<16x1xf32>
    %874 = arith.divf %872, %873 : vector<16x1xf32>
    %875 = vector.broadcast %874 : vector<16x1xf32> to vector<16x32xf32>
    %876 = arith.subf %870, %875 : vector<16x32xf32>
    %877 = arith.mulf %876, %876 : vector<16x32xf32>
    %cst_530 = arith.constant dense<0.000000e+00> : vector<16xf32>
    %878 = vector.multi_reduction <add>, %877, %cst_530 [1] : vector<16x32xf32> to vector<16xf32>
    %879 = vector.shape_cast %878 : vector<16xf32> to vector<16x1xf32>
    %cst_531 = arith.constant 3.200000e+01 : f32
    %880 = vector.broadcast %cst_531 : f32 to vector<16x1xf32>
    %881 = arith.divf %879, %880 : vector<16x1xf32>
    %882 = vector.broadcast %874 : vector<16x1xf32> to vector<16x32xf32>
    %883 = arith.subf %870, %882 : vector<16x32xf32>
    %cst_532 = arith.constant 9.99999974E-6 : f32
    %884 = vector.broadcast %cst_532 : f32 to vector<16x1xf32>
    %885 = arith.addf %881, %884 : vector<16x1xf32>
    %886 = math.rsqrt %885 : vector<16x1xf32>
    %887 = vector.broadcast %886 : vector<16x1xf32> to vector<16x32xf32>
    %888 = arith.mulf %883, %887 : vector<16x32xf32>
    %889 = vector.broadcast %451 : vector<1x32xf32> to vector<16x32xf32>
    %890 = arith.mulf %888, %889 : vector<16x32xf32>
    %891 = vector.broadcast %453 : vector<1x32xf32> to vector<16x32xf32>
    %892 = arith.addf %890, %891 : vector<16x32xf32>
    %893 = arith.truncf %892 : vector<16x32xf32> to vector<16x32xbf16>
    %c0_533 = arith.constant 0 : index
    %c0_534 = arith.constant 0 : index
    %894 = vector.load %arg19[%c0_533, %c0_534] : memref<32x128xbf16, #tpu.memory_space<vmem>>, vector<32x128xbf16>
    %cst_535 = arith.constant dense<0.000000e+00> : vector<16x128xf32>
    %895 = tpu.matmul %893, %894, %cst_535 {dimension_numbers = #tpu.dot_dimension_numbers<[1], [0], [0], [1], [0, 0, 1, 1], [], []>} : vector<16x32xbf16>, vector<32x128xbf16>, vector<16x128xf32> -> vector<16x128xf32>
    %c0_536 = arith.constant 0 : index
    %c0_537 = arith.constant 0 : index
    %896 = vector.load %arg20[%c0_536, %c0_537] : memref<1x128xf32, #tpu.memory_space<vmem>>, vector<1x128xf32>
    %897 = vector.broadcast %896 : vector<1x128xf32> to vector<16x128xf32>
    %898 = arith.addf %895, %897 : vector<16x128xf32>
    %c0_538 = arith.constant 0 : index
    %c0_539 = arith.constant 0 : index
    %899 = vector.load %arg21[%c0_538, %c0_539] : memref<16x128xf32, #tpu.memory_space<vmem>>, vector<16x128xf32>
    tpu.vector_store %arg21[%c0_538, %c0_539], %898 {strides = array<i32>} : memref<16x128xf32, #tpu.memory_space<vmem>>, vector<16x128xf32>,
    return
  }
  func.func @transform_0(%arg0: i32) -> (i32, i32) {
    %c0_i32 = arith.constant 0 : i32
    %c0_i32_0 = arith.constant 0 : i32
    return %arg0, %c0_i32 : i32, i32
  }
  func.func @transform_1(%arg0: i32) -> (i32, i32) {
    %c0_i32 = arith.constant 0 : i32
    %c0_i32_0 = arith.constant 0 : i32
    return %arg0, %c0_i32 : i32, i32
  }
  func.func @transform_2(%arg0: i32) -> (i32, i32, i32) {
    %c0_i32 = arith.constant 0 : i32
    %c0_i32_0 = arith.constant 0 : i32
    %c0_i32_1 = arith.constant 0 : i32
    return %arg0, %c0_i32, %c0_i32_0 : i32, i32, i32
  }
  func.func @transform_3(%arg0: i32) -> (i32, i32, i32) {
    %c0_i32 = arith.constant 0 : i32
    %c0_i32_0 = arith.constant 0 : i32
    %c0_i32_1 = arith.constant 0 : i32
    return %arg0, %c0_i32, %c0_i32_0 : i32, i32, i32
  }
  func.func @transform_4(%arg0: i32) -> (i32, i32, i32) {
    %c0_i32 = arith.constant 0 : i32
    %c0_i32_0 = arith.constant 0 : i32
    %c0_i32_1 = arith.constant 0 : i32
    %c0_i32_2 = arith.constant 0 : i32
    return %c0_i32, %c0_i32_0, %c0_i32_1 : i32, i32, i32
  }
  func.func @transform_5(%arg0: i32) -> (i32, i32, i32) {
    %c0_i32 = arith.constant 0 : i32
    %c0_i32_0 = arith.constant 0 : i32
    %c0_i32_1 = arith.constant 0 : i32
    %c0_i32_2 = arith.constant 0 : i32
    return %c0_i32, %c0_i32_0, %c0_i32_1 : i32, i32, i32
  }
  func.func @transform_6(%arg0: i32) -> (i32, i32, i32) {
    %c0_i32 = arith.constant 0 : i32
    %c0_i32_0 = arith.constant 0 : i32
    %c0_i32_1 = arith.constant 0 : i32
    %c0_i32_2 = arith.constant 0 : i32
    return %c0_i32, %c0_i32_0, %c0_i32_1 : i32, i32, i32
  }
  func.func @transform_7(%arg0: i32) -> (i32, i32, i32) {
    %c0_i32 = arith.constant 0 : i32
    %c0_i32_0 = arith.constant 0 : i32
    %c0_i32_1 = arith.constant 0 : i32
    %c0_i32_2 = arith.constant 0 : i32
    return %c0_i32, %c0_i32_0, %c0_i32_1 : i32, i32, i32
  }
  func.func @transform_8(%arg0: i32) -> (i32, i32, i32) {
    %c0_i32 = arith.constant 0 : i32
    %c0_i32_0 = arith.constant 0 : i32
    %c0_i32_1 = arith.constant 0 : i32
    %c0_i32_2 = arith.constant 0 : i32
    return %c0_i32, %c0_i32_0, %c0_i32_1 : i32, i32, i32
  }
  func.func @transform_9(%arg0: i32) -> (i32, i32, i32) {
    %c0_i32 = arith.constant 0 : i32
    %c0_i32_0 = arith.constant 0 : i32
    %c0_i32_1 = arith.constant 0 : i32
    %c0_i32_2 = arith.constant 0 : i32
    return %c0_i32, %c0_i32_0, %c0_i32_1 : i32, i32, i32
  }
  func.func @transform_10(%arg0: i32) -> (i32, i32, i32) {
    %c0_i32 = arith.constant 0 : i32
    %c0_i32_0 = arith.constant 0 : i32
    %c0_i32_1 = arith.constant 0 : i32
    %c0_i32_2 = arith.constant 0 : i32
    return %c0_i32, %c0_i32_0, %c0_i32_1 : i32, i32, i32
  }
  func.func @transform_11(%arg0: i32) -> (i32, i32, i32) {
    %c0_i32 = arith.constant 0 : i32
    %c0_i32_0 = arith.constant 0 : i32
    %c0_i32_1 = arith.constant 0 : i32
    %c0_i32_2 = arith.constant 0 : i32
    return %c0_i32, %c0_i32_0, %c0_i32_1 : i32, i32, i32
  }
  func.func @transform_12(%arg0: i32) -> (i32, i32, i32) {
    %c0_i32 = arith.constant 0 : i32
    %c0_i32_0 = arith.constant 0 : i32
    %c0_i32_1 = arith.constant 0 : i32
    %c0_i32_2 = arith.constant 0 : i32
    return %c0_i32, %c0_i32_0, %c0_i32_1 : i32, i32, i32
  }
  func.func @transform_13(%arg0: i32) -> (i32, i32, i32) {
    %c0_i32 = arith.constant 0 : i32
    %c0_i32_0 = arith.constant 0 : i32
    %c0_i32_1 = arith.constant 0 : i32
    %c0_i32_2 = arith.constant 0 : i32
    return %c0_i32, %c0_i32_0, %c0_i32_1 : i32, i32, i32
  }
  func.func @transform_14(%arg0: i32) -> (i32, i32, i32) {
    %c0_i32 = arith.constant 0 : i32
    %c0_i32_0 = arith.constant 0 : i32
    %c0_i32_1 = arith.constant 0 : i32
    %c0_i32_2 = arith.constant 0 : i32
    return %c0_i32, %c0_i32_0, %c0_i32_1 : i32, i32, i32
  }
  func.func @transform_15(%arg0: i32) -> (i32, i32, i32) {
    %c0_i32 = arith.constant 0 : i32
    %c0_i32_0 = arith.constant 0 : i32
    %c0_i32_1 = arith.constant 0 : i32
    %c0_i32_2 = arith.constant 0 : i32
    return %c0_i32, %c0_i32_0, %c0_i32_1 : i32, i32, i32
  }
  func.func @transform_16(%arg0: i32) -> (i32, i32, i32) {
    %c0_i32 = arith.constant 0 : i32
    %c0_i32_0 = arith.constant 0 : i32
    %c0_i32_1 = arith.constant 0 : i32
    %c0_i32_2 = arith.constant 0 : i32
    return %c0_i32, %c0_i32_0, %c0_i32_1 : i32, i32, i32
  }
  func.func @transform_17(%arg0: i32) -> (i32, i32, i32) {
    %c0_i32 = arith.constant 0 : i32
    %c0_i32_0 = arith.constant 0 : i32
    %c0_i32_1 = arith.constant 0 : i32
    %c0_i32_2 = arith.constant 0 : i32
    return %c0_i32, %c0_i32_0, %c0_i32_1 : i32, i32, i32
  }
  func.func @transform_18(%arg0: i32) -> (i32, i32) {
    %c0_i32 = arith.constant 0 : i32
    %c0_i32_0 = arith.constant 0 : i32
    %c0_i32_1 = arith.constant 0 : i32
    return %c0_i32, %c0_i32_0 : i32, i32
  }
  func.func @transform_19(%arg0: i32) -> (i32, i32) {
    %c0_i32 = arith.constant 0 : i32
    %c0_i32_0 = arith.constant 0 : i32
    %c0_i32_1 = arith.constant 0 : i32
    return %c0_i32, %c0_i32_0 : i32, i32
  }
  func.func @transform_20(%arg0: i32) -> (i32, i32) {
    %c0_i32 = arith.constant 0 : i32
    %c0_i32_0 = arith.constant 0 : i32
    return %arg0, %c0_i32 : i32, i32
  }
}

</mosaic_0001>

<bundles_post_ra>
// kernel: decoder_forward.1
= control target key start
LH: loop header
LB: loop body
LE: loop exit
PB: predicated region body
PF: predicated region fallthrough
CT: control target
= control target key end

     0   :  { %s7249_s0 = inlined_call_operand.vmem [shape: f32[32,32], index: 0, kind: input, shape index: {}]   ;;  %s7250_s1 = inlined_call_operand.vmem [shape: f32[64,32], index: 1, kind: input, shape index: {}]   ;;  %s7251_s2 = inlined_call_operand.vmem [shape: f32[2,16,16], index: 2, kind: input, shape index: {}]   ;;  %s7252_s3 = inlined_call_operand.vmem [shape: f32[2,16,32], index: 3, kind: input, shape index: {}]   ;;  %s7253_s4 = inlined_call_operand.vmem [shape: bf16[24,32,8], index: 4, kind: input, shape index: {}]   ;;  %s7254_s5 = inlined_call_operand.vmem [shape: f32[24,1,8], index: 5, kind: input, shape index: {}]   ;;  %s7255_s6 = inlined_call_operand.vmem [shape: bf16[8,8,32], index: 6, kind: input, shape index: {}]   ;;  %s7256_s7 = inlined_call_operand.vmem [shape: f32[2,1,32], index: 7, kind: input, shape index: {}]   ;;  %s7257_s8 = inlined_call_operand.vmem [shape: bf16[24,32,8], index: 8, kind: input, shape index: {}]   ;;  %s7258_s9 = inlined_call_operand.vmem [shape: f32[24,1,8], index: 9, kind: input, shape index: {}]   ;;  %s7259_s10 = inlined_call_operand.vmem [shape: bf16[8,8,32], index: 10, kind: input, shape index: {}]   ;;  %s7260_s11 = inlined_call_operand.vmem [shape: f32[2,1,32], index: 11, kind: input, shape index: {}]   ;;  %s7261_s12 = inlined_call_operand.vmem [shape: bf16[2,32,64], index: 12, kind: input, shape index: {}]   ;;  %s7262_s13 = inlined_call_operand.vmem [shape: f32[2,1,64], index: 13, kind: input, shape index: {}]   ;;  %s7263_s14 = inlined_call_operand.vmem [shape: bf16[2,64,32], index: 14, kind: input, shape index: {}]   ;;  %s7264_s15 = inlined_call_operand.vmem [shape: f32[2,1,32], index: 15, kind: input, shape index: {}]   ;;  %s7265_s16 = inlined_call_operand.vmem [shape: f32[2,1,32], index: 16, kind: input, shape index: {}]   ;;  %s7266_s17 = inlined_call_operand.vmem [shape: f32[2,1,32], index: 17, kind: input, shape index: {}]   ;;  %s7267_s18 = inlined_call_operand.vmem [shape: bf16[32,128], index: 18, kind: input, shape index: {}]   ;;  %s7268_s19 = inlined_call_operand.vmem [shape: f32[1,128], index: 19, kind: input, shape index: {}]   ;;  %s7269_s20 = inlined_call_operand.hbm [shape: f32[32,128], index: 20, kind: output, shape index: {}]  }
   0x1   :  { %7279 = sst [smem:[#allocation11_spill]] %s7249_s0 }
   0x2   :  { %7280 = sst [smem:[#allocation12_spill]] %s7250_s1 }
   0x3   :  { %7281 = sst [smem:[#allocation13_spill]] %s7251_s2 }
   0x4   :  { %7282 = sst [smem:[#allocation14_spill]] %s7252_s3 }
   0x5   :  { %7283 = sst [smem:[#allocation15_spill]] %s7253_s4 }
   0x6   :  { %7284 = sst [smem:[#allocation16_spill]] %s7254_s5 }
   0x7   :  { %7285 = sst [smem:[#allocation17_spill]] %s7255_s6 }
   0x8   :  { %7286 = sst [smem:[#allocation18_spill]] %s7256_s7 }
   0x9   :  { %7287 = sst [smem:[#allocation19_spill]] %s7269_s20 }
   0xa   :  { %25 = vsyncpa [#allocation3], 0 }
   0xb   :  { %27 = vsyncpa [#allocation3 + $0x1], 0  ;;  %s6050_s1 = smov 0   ;;  %s6052_s22 = smov 0  }
   0xc   :  { %s6054_s23 = smov 0   ;;  %s6056_s24 = smov 0  }
   0xd LB: > { %7288 = sst [smem:[#allocation5_spill]] %s5928_s1  ;;  %s6071_s2 = sadd.s32 4294967295, %s5940_s24   ;;  %s5940_s24 = sphi %s6056_s24, %s7309_s24   ;;  %s5936_s23 = sphi %s6054_s23, %s7311_s23   ;;  %s5932_s22 = sphi %s6052_s22, %s7313_s22   ;;  %s5928_s1 = sphi %s6050_s1, %s7312_s1  }
   0xe   : > { %7289 = sst [smem:[#allocation6_spill]] %s5936_s23  ;;  %s4664_s25 = sadd.s32 4294967294, %s5940_s24  }
   0xf   : > { %7290 = sst [smem:[#allocation7_spill]] %s5940_s24  ;;  %s6075_s3 = sadd.s32 1, %s5940_s24  }
  0x10   : > { %7291 = sst [smem:[#allocation8_spill]] %s6075_s3  ;;  %s480_s26 = sadd.s32 1, %s5936_s23 }
  0x11   : > { %s477_s27 = ssub.s32 %s5940_s24, %s6075_s3  ;;  %p490_p0 = scmp.ne.s32.totalorder %s5936_s23, %s5932_s22 }
  0x12   : > { %p478_p1 = scmp.eq.s32.totalorder %s477_s27, 0  ;;  %p491_p2 = scmp.eq.s32.totalorder %s6071_s2, 1 }
  0x13   : > { %p496_p3 = scmp.ne.s32.totalorder %s5932_s22, %s5928_s1  ;;  %p497_p4 = scmp.eq.s32.totalorder %s4664_s25, 1 }
  0x14   : > { %s6086_s28 = scalar_select %p478_p1, %s5936_s23, %s480_s26  }
  0x15   : > { %p6088_p5 = por %p491_p2, %p490_p0  ;;  %p6092_p6 = por %p497_p4, %p496_p3 }
  0x16   : > { %7292 = sst [smem:[#allocation9_spill]] %s6086_s28  ;;  %p4667_p7 = scmp.ge.s32.totalorder %s5940_s24, 1 }
  0x17   : > { %s7294_s29 = scalar_select %p6092_p6, 1, 0 }
  0x18   : > { %p597_p8 = scmp.lt.s32.totalorder %s5940_s24, 3 }
  0x19   : > { %7295 = sst [smem:[#allocation10_spill]] %s7294_s29 }
  0x1a   : > { %p598_p9 = pnand %p4667_p7, %p597_p8 }
  0x1b   : > { %s7296_s21 = sld [smem:[#allocation15_spill]] (!%p598_p9)  ;;  %s4669_s27 = sshll.u32 (!%p598_p9), %s6071_s2, 1 }
  0x1c   : > { %601 = sbr.rel (%p598_p9) target bundleno = 11826 (0x2e32), region = 100  ;;  %p671_p10 = scmp.lt.s32.totalorder (!%p598_p9), %s4669_s27, 3 }
  0x1d   : > { %s7297_s25 = sld [smem:[#allocation11_spill]] (!%p598_p9)  ;;  %p682_p11 = scmp.lt.s32.totalorder (!%p598_p9), %s6071_s2, 1 }
  0x1e   : > { %s7298_s5 = sld [smem:[#allocation16_spill]] (!%p598_p9) }
  0x1f   : > { %s7299_s29 = sld [smem:[#allocation13_spill]] (!%p598_p9) }
  0x20   : > { %s7300_s6 = sld [smem:[#allocation17_spill]] (!%p598_p9) }
  0x21   : > { %v5504_v0 = vld [vmem:[%s7296_s21 + $0x8] sm:$0xff]  ;;  %v5503_v2 = vld [vmem:[%s7296_s21] sm:$0xff]  ;;  %s7315_s27 = smov (!%p671_p10, %s4669_s27), 3  ;;  %vm729_vm0 = vcmask 261120   ;;  %vm821_vm1 = vcmask 64512   ;;  %v5512_v22 = vld [vmem:[%s7296_s21 + $0x58] sm:$0xff] }
  0x22   : > { %v5506_v1 = vld [vmem:[%s7296_s21 + $0x48] sm:$0xff]  ;;  %v5505_v3 = vld [vmem:[%s7296_s21 + $0x40] sm:$0xff]  ;;  %739 = vmatpush.bf16.msra.mxu0 %v5504_v0  ;;  %s4670_s30 = sshll.u32 %s7315_s27, 3  ;;  %vm842_vm2 = vcmask 130048   ;;  %v5511_v31 = vld [vmem:[%s7296_s21 + $0x50] sm:$0xff]  ;;  %vm1063_vm3 = vcmask 1043456  }
  0x23   : > { %775 = vmatpush.bf16.msra.mxu1 %v5506_v1  ;;  %s674_s26 = scalar_lea.vmem %s7297_s25, %s4670_s30  ;;  %v5508_v20 = vld [vmem:[%s7296_s21 + $0x88] sm:$0xff]  ;;  %v5507_v21 = vld [vmem:[%s7296_s21 + $0x80] sm:$0xff]  ;;  %v5510_v32 = vld [vmem:[%s7296_s21 + $0x18] sm:$0xff]  ;;  %s7301_s7 = sld [smem:[#allocation18_spill]] }
  0x24   : > { %v6114_v4 = vld [vmem:[%s674_s26] sm:$0xff]  ;;  %v6116_v5 = vld [vmem:[%s674_s26 + $0x8] sm:$0xff]  ;;  %811 = vmatpush.bf16.msra.mxu2 %v5508_v20  ;;  %s6145_s23 = scalar_select %p682_p11, %s6071_s2, 1  ;;  %v5509_v33 = vld [vmem:[%s7296_s21 + $0x10] sm:$0xff] }
  0x25   : > { %v6120_v6 = vpack.c.bf16 %v6116_v5, %v6114_v4  ;;  %v5657_v9 = vld [vmem:[%s7298_s5 + $0x4] ss:$0 sm:$0xff]  ;;  %v5656_v13 = vld [vmem:[%s7298_s5] ss:$0 sm:$0xff]  ;;  %v5658_v45 = vld [vmem:[%s7298_s5 + $0x8] ss:$0 sm:$0xff] }
  0x26   : > { %740 = vmatpush.bf16.msra.mxu0 %v5503_v2  ;;  %s7276_s1 = sshll.u32 %s6145_s23, 4  ;;  %v5659_v51 = vld [vmem:[%s7298_s5 + $0x5] ss:$0 sm:$0xff]  ;;  %v5514_v58 = vld [vmem:[%s7296_s21 + $0x98] sm:$0xff]  ;;  %v5513_v59 = vld [vmem:[%s7296_s21 + $0x90] sm:$0xff]  ;;  %s4671_s25 = sshll.u32 %s6071_s2, 2 }
  0x27   : > { %776 = vmatpush.bf16.msra.mxu1 %v5505_v3  ;;  %s6155_s27 = scalar_lea.vmem %s7299_s29, %s7276_s1  ;;  %v5660_v3 = vld [vmem:[%s7298_s5 + $0x1] ss:$0 sm:$0xff]  ;;  %p677_p12 = scmp.lt.s32.totalorder %s4671_s25, 7 }
  0x28   : > { %812 = vmatpush.bf16.msra.mxu2 %v5507_v21  ;;  %v6158_v23 = vld [vmem:[%s6155_s27] sm:$0xff]  ;;  %v6163_v27 = vld [vmem:[%s6155_s27 + $0x8] sm:$0xff]  ;;  %s7302_s1 = sld [smem:[#allocation12_spill]]  ;;  %s5613_s30 = sshll.u32 %s6071_s2, 4 }
  0x29   : > { %4685 = vmatmul.msk.bf16.vlgmr.msra.gmra.mxu0 %vm729_vm0, %v6120_v6  ;;  %s7317_s25 = smov (!%p677_p12, %s4671_s25), 7  ;;  %s7304_s0 = sld [smem:[#allocation14_spill]] }
  0x2a   : > { %4699 = vmatmul.msk.bf16.vlgmr.msra.gmra.mxu1 %vm729_vm0, %v6120_v6  ;;  %s4672_s26 = sshll.u32 %s7317_s25, 3  ;;  %s7305_s25 = sld [smem:[#allocation19_spill]] }
  0x2b   : > { %4713 = vmatmul.msk.bf16.vlgmr.msra.gmra.mxu2 %vm729_vm0, %v6120_v6  ;;  %914 = vmatpush.bf16.msrb.mxu1 %v5510_v32 }
  0x2c   : > { %950 = vmatpush.bf16.msrb.mxu2 %v5512_v22 }
  0x2e   : > { %s680_s29 = scalar_lea.vmem %s7302_s1, %s4672_s26  ;;  %s7303_s1 = sshll.u32 %s6145_s23, 4 }
  0x2f   : > { %915 = vmatpush.bf16.msrb.mxu1 %v5509_v33  ;;  %s6410_s20 = scalar_lea.vmem %s7304_s0, %s7303_s1 }
  0x30   : > { %951 = vmatpush.bf16.msrb.mxu2 %v5511_v31  ;;  %s4562_s26 = scalar_lea.hbm %s7305_s25, %s5613_s30 }
  0x31   : > { %s4565_s23 = sshll.u32 %s4562_s26, 4  ;;  %s4566_s23 = int_to_ptr.hbm [resolvable:$true] %s4565_s23 }
  0x32   : > { %s5892_s1 = sshra.s32 %s4566_s23, 4  ;;  %s5893_s1 = int_to_ptr.hbm [resolvable:$true] %s5892_s1 }
  0x33   : > { %p5899_p2 = scmp.lt.s32.totalorder %s5893_s1, %s7305_s25 }
  0x3a   : > { %4729 = vmatmul.msk.bf16.vlgmr.msrb.gmra.mxu1 %vm729_vm0, %v6120_v6 }
  0x3b   : > { %4743 = vmatmul.msk.bf16.vlgmr.msrb.gmra.mxu2 %vm729_vm0, %v6120_v6 }
  0xa6   : > { %v742_v8 = vpop.f32.mrf.mxu0 }
  0xa7   : > { %v778_v7 = vpop.f32.mrf.mxu1  ;;  %v743_v17 = vadd.f32 %v5656_v13, %v742_v8 }
  0xa8   : > { %v779_v11 = vadd.f32 %v5657_v9, %v778_v7 }
  0xae   : > { %v744_v15 = vpop.f32.mrf.mxu0  ;;  %v814_v44 = vpop.f32.mrf.mxu2 }
  0xaf   : > { %v780_v10 = vpop.f32.mrf.mxu1  ;;  %v745_v18 = vadd.f32 %v5656_v13, %v744_v15  ;;  %v815_v47 = vadd.f32 %v5658_v45, %v814_v44  ;;  %v5661_v15 = vld [vmem:[%s7298_s5 + $0x9] ss:$0 sm:$0xff] }
  0xb0   : > { %v781_v12 = vadd.f32 %v5657_v9, %v780_v10 }
  0xb1   : > { %v819_v19 = vpack.c.bf16 %v745_v18, %v743_v17 }
  0xb2   : > { %v820_v14 = vpack.c.bf16 %v781_v12, %v779_v11  ;;  %v885_v11 = vld [vmem:[%s7300_s6] sm:$0xf] }
  0xb3   : > { %v1085_v12 = vsel %vm1063_vm3, %v885_v11, 0 }
  0xb4   : > { %v826_v16 = vsel %vm821_vm1, %v820_v14, 0 }
  0xb5   : > { %835 = vmatpush.bf16.xpose.msra.mxu3 %v826_v16 }
  0xb6   : > { %v816_v46 = vpop.f32.mrf.mxu2 }
  0xb7   : > { %v817_v48 = vadd.f32 %v5658_v45, %v816_v46  ;;  %v917_v1 = vpop.f32.mrf.mxu1 }
  0xb8   : > { %v918_v8 = vadd.f32 %v5660_v3, %v917_v1 }
  0xb9   : > { %v866_v49 = vpack.c.bf16 %v817_v48, %v815_v47 }
  0xbb   : > { %877 = vmatpush.bf16.msrb.mxu0 %v866_v49 }
  0xbc   : > { %4714 = vmatmul.msk.bf16.vlgmr.msra.gmra.mxu3 %vm821_vm1, %v819_v19 }
  0xbd   : > { %986 = vmatpush.bf16.msrb.mxu3 %v5514_v58  ;;  %v5663_v58 = vld [vmem:[%s7298_s5 + $0x6] ss:$0 sm:$0xff] }
  0xbe   : > { %v953_v50 = vpop.f32.mrf.mxu2 }
  0xbf   : > { %v954_v52 = vadd.f32 %v5659_v51, %v953_v50  ;;  %v919_v7 = vpop.f32.mrf.mxu1 }
  0xc0   : > { %v920_v9 = vadd.f32 %v5660_v3, %v919_v7 }
  0xc1   : > { %987 = vmatpush.bf16.msrb.mxu3 %v5513_v59 }
  0xc2   : > { %v994_v10 = vpack.c.bf16 %v920_v9, %v918_v8  ;;  %v5520_v8 = vld [vmem:[%s7296_s21 + $0xa8] sm:$0xff] }
  0xc5   : > { %1094 = vmatpush.bf16.msra.mxu3 %v1085_v12 }
  0xc6   : > { %v955_v53 = vpop.f32.mrf.mxu2 }
  0xc7   : > { %v956_v54 = vadd.f32 %v5659_v51, %v955_v53  ;;  %v4760_v51 = vld [vmem:[%s7300_s6 + $0x4] sm:$0xf] }
  0xc9   : > { %v995_v55 = vpack.c.bf16 %v956_v54, %v954_v52  ;;  %v1065_v52 = vsel %vm1063_vm3, %v4760_v51, 0 }
  0xca   : > { %1074 = vmatpush.bf16.msra.mxu2 %v1065_v52 }
  0xcb   : > { %v1000_v56 = vsel %vm821_vm1, %v995_v55, 0 }
  0xcc   : > { %1009 = vmatpush.bf16.xpose.msra.mxu0 %v1000_v56  ;;  %4757 = vmatmul.msk.bf16.vlgmr.msrb.gmra.mxu3 %vm729_vm0, %v6120_v6 }
  0xce   : > { %1201 = vmatpush.bf16.msrb.mxu2 %v5520_v8 }
 0x13f   : > { %v837_v24 = vpop.f32.mrf.mxu3 }
 0x140   : > { %v838_v25 = vadd.f32 %v837_v24, %v6158_v23 }
 0x142   : > { %v843_v26 = vsel %vm842_vm2, %v838_v25, -inf }
 0x143   : > { %844 = vmax.xlane.f32.xlu0 %v843_v26 }
 0x147   : > { %v839_v28 = vpop.f32.mrf.mxu3 }
 0x148   : > { %v840_v29 = vadd.f32 %v839_v28, %v6163_v27 }
 0x14a   : > { %v846_v30 = vsel %vm842_vm2, %v840_v29, -inf }
 0x14b   : > { %847 = vmax.xlane.f32.xlu0 %v846_v30 }
 0x14f   : > { %v989_v13 = vpop.f32.mrf.mxu3 }
 0x150   : > { %v990_v16 = vadd.f32 %v5661_v15, %v989_v13 }
 0x157   : > { %v991_v17 = vpop.f32.mrf.mxu3 }
 0x158   : > { %v992_v19 = vadd.f32 %v5661_v15, %v991_v17 }
 0x15a   : > { %v1039_v21 = vpack.c.bf16 %v992_v19, %v990_v16 }
 0x15c   : > { %1050 = vmatpush.bf16.msra.mxu1 %v1039_v21 }
 0x1b6   : > { %v845_v34 = vpop.xlane.xlu0 %844 }
 0x1b7   : > { %v849_v35 = vsub.f32 %v838_v25, %v845_v34 }
 0x1b9   : > { %v851_v36 = vmul.f32 1.442695, %v849_v35 }
 0x1bb   : > { %5717 = vpow2.f32 %v851_v36 }
 0x1be   : > { %v848_v37 = vpop.xlane.xlu0 %847 }
 0x1bf   : > { %v850_v38 = vsub.f32 %v840_v29, %v848_v37 }
 0x1c1   : > { %v5718_v39 = vpop.eup %5717  ;;  %v853_v40 = vmul.f32 1.442695, %v850_v38 }
 0x1c2   : > { %v855_v41 = vsel %vm842_vm2, %v5718_v39, 0.0 }
 0x1c3   : > { %5719 = vpow2.f32 %v853_v40  ;;  %856 = vadd.xlane.f32.xlu1 %v855_v41  ;;  %v5516_v40 = vld [vmem:[%s7296_s21 + $0x28] sm:$0xff] }
 0x1c4   : > { %v5518_v41 = vld [vmem:[%s7296_s21 + $0x68] sm:$0xff] }
 0x1c5   : > { %1165 = vmatpush.bf16.msrb.mxu1 %v5518_v41  ;;  %v5521_v41 = vld [vmem:[%s7296_s21 + $0x30] sm:$0xff] }
 0x1c9   : > { %v5720_v42 = vpop.eup %5719 }
 0x1ca   : > { %v858_v43 = vsel %vm842_vm2, %v5720_v42, 0.0 }
 0x1cb   : > { %859 = vadd.xlane.f32.xlu1 %v858_v43  ;;  %v5517_v43 = vld [vmem:[%s7296_s21 + $0x60] sm:$0xff] }
 0x1cc   : > { %1166 = vmatpush.bf16.msrb.mxu1 %v5517_v43 }
 0x236   : > { %v857_v57 = vpop.xlane.xlu1 %856 }
 0x237   : > { %5721 = vrcp.f32 %v857_v57 }
 0x23d   : > { %v5722_v61 = vpop.eup %5721 }
 0x23e   : > { %v860_v60 = vpop.xlane.xlu1 %859  ;;  %v863_v63 = vmul.f32 %v5722_v61, %v5718_v39 }
 0x23f   : > { %5723 = vrcp.f32 %v860_v60 }
 0x245   : > { %v5724_v62 = vpop.eup %5723 }
 0x246   : > { %v864_v0 = vmul.f32 %v5724_v62, %v5720_v42  ;;  %v5515_v42 = vld [vmem:[%s7296_s21 + $0x20] sm:$0xff] }
 0x247   : > { %v5662_v62 = vld [vmem:[%s7298_s5 + $0x2] ss:$0 sm:$0xff] }
 0x248   : > { %v865_v2 = vpack.c.bf16 %v864_v0, %v863_v63 }
 0x24a   : > { %4715 = vmatmul.msk.bf16.vlgmr.msrb.gmra.mxu0 %vm842_vm2, %v865_v2 }
 0x24b   : > { %1129 = vmatpush.bf16.msrb.mxu0 %v5516_v40  ;;  %v5522_v40 = vld [vmem:[%s7296_s21 + $0x38] sm:$0xff] }
 0x24f   : > { %1130 = vmatpush.bf16.msrb.mxu0 %v5515_v42 }
 0x25a   : > { %4758 = vmatmul.msk.bf16.vlgmr.msra.gmra.mxu0 %vm821_vm1, %v994_v10  ;;  %v5519_v10 = vld [vmem:[%s7296_s21 + $0xa0] sm:$0xff] }
 0x25b   : > { %1202 = vmatpush.bf16.msrb.mxu2 %v5519_v10 }
 0x26a   : > { %4776 = vmatmul.msk.bf16.vlgmr.msrb.gmra.mxu0 %vm729_vm0, %v6120_v6 }
 0x2c7   : > { %v879_v14 = vpop.f32.mrf.mxu0 }
 0x2cf   : > { %v881_v18 = vpop.f32.mrf.mxu0 }
 0x2d0   : > { %v884_v20 = vpack.c.bf16 %v881_v18, %v879_v14 }
 0x2d2   : > { %4762 = vmatmul.msk.bf16.vlgmr.msra.gmra.mxu3 %vm821_vm1, %v884_v20 }
 0x2d7   : > { %v1011_v22 = vpop.f32.mrf.mxu0 }
 0x2d8   : > { %v1012_v24 = vadd.f32 %v1011_v22, %v6158_v23 }
 0x2da   : > { %v1016_v25 = vsel %vm842_vm2, %v1012_v24, -inf }
 0x2db   : > { %1017 = vmax.xlane.f32.xlu2 %v1016_v25 }
 0x2df   : > { %v1013_v26 = vpop.f32.mrf.mxu0 }
 0x2e0   : > { %v1014_v28 = vadd.f32 %v1013_v26, %v6163_v27 }
 0x2e2   : > { %v1019_v29 = vsel %vm842_vm2, %v1014_v28, -inf }
 0x2e3   : > { %1020 = vmax.xlane.f32.xlu2 %v1019_v29 }
 0x2e7   : > { %v1132_v57 = vpop.f32.mrf.mxu0 }
 0x2e8   : > { %v1133_v2 = vadd.f32 %v5662_v62, %v1132_v57 }
 0x2ef   : > { %v1134_v0 = vpop.f32.mrf.mxu0 }
 0x2f0   : > { %v1135_v3 = vadd.f32 %v5662_v62, %v1134_v0  ;;  %v5666_v62 = vld [vmem:[%s7298_s5 + $0x3] ss:$0 sm:$0xff] }
 0x2f2   : > { %v1209_v7 = vpack.c.bf16 %v1135_v3, %v1133_v2  ;;  %v5526_v3 = vld [vmem:[%s7296_s21 + $0xb8] sm:$0xff] }
 0x34e   : > { %v1018_v30 = vpop.xlane.xlu2 %1017 }
 0x34f   : > { %v1022_v31 = vsub.f32 %v1012_v24, %v1018_v30 }
 0x351   : > { %v1024_v32 = vmul.f32 1.442695, %v1022_v31 }
 0x353   : > { %5725 = vpow2.f32 %v1024_v32 }
 0x355   : > { %v6249_v9 = vpop.f32.mrf.mxu3 }
 0x356   : > { %v1021_v33 = vpop.xlane.xlu2 %1020 }
 0x357   : > { %v1023_v34 = vsub.f32 %v1014_v28, %v1021_v33  ;;  %v5664_v33 = vld [vmem:[%s7298_s5 + $0xa] ss:$0 sm:$0xff] }
 0x359   : > { %v5726_v35 = vpop.eup %5725  ;;  %v1026_v36 = vmul.f32 1.442695, %v1023_v34 }
 0x35a   : > { %v1028_v37 = vsel %vm842_vm2, %v5726_v35, 0.0 }
 0x35b   : > { %5727 = vpow2.f32 %v1026_v36  ;;  %1029 = vadd.xlane.f32.xlu0 %v1028_v37 }
 0x35d   : > { %v6256_v11 = vpop.f32.mrf.mxu3 }
 0x361   : > { %v5728_v38 = vpop.eup %5727 }
 0x362   : > { %v1031_v39 = vsel %vm842_vm2, %v5728_v38, 0.0 }
 0x363   : > { %1032 = vadd.xlane.f32.xlu1 %v1031_v39  ;;  %v5523_v39 = vld [vmem:[%s7296_s21 + $0x70] sm:$0xff] }
 0x3ce   : > { %v1030_v44 = vpop.xlane.xlu0 %1029 }
 0x3cf   : > { %5729 = vrcp.f32 %v1030_v44 }
 0x3d5   : > { %v5730_v46 = vpop.eup %5729 }
 0x3d6   : > { %v1033_v45 = vpop.xlane.xlu1 %1032  ;;  %v1036_v48 = vmul.f32 %v5730_v46, %v5726_v35  ;;  %v5524_v35 = vld [vmem:[%s7296_s21 + $0x78] sm:$0xff] }
 0x3d7   : > { %5731 = vrcp.f32 %v1033_v45 }
 0x3dd   : > { %v5732_v47 = vpop.eup %5731 }
 0x3de   : > { %v1037_v49 = vmul.f32 %v5732_v47, %v5728_v38 }
 0x3e0   : > { %v1038_v50 = vpack.c.bf16 %v1037_v49, %v1036_v48 }
 0x3e2   : > { %4759 = vmatmul.msk.bf16.vlgmr.msra.gmra.mxu1 %vm842_vm2, %v1038_v50  ;;  %v5665_v50 = vld [vmem:[%s7298_s5 + $0x7] ss:$0 sm:$0xff] }
 0x3f2   : > { %4790 = vmatmul.msk.bf16.vlgmr.msrb.gmra.mxu1 %vm729_vm0, %v6120_v6 }
 0x45f   : > { %v1052_v53 = vpop.f32.mrf.mxu1 }
 0x467   : > { %v1054_v54 = vpop.f32.mrf.mxu1 }
 0x468   : > { %v1057_v55 = vpack.c.bf16 %v1054_v54, %v1052_v53  ;;  %v4807_v53 = vld [vmem:[%s7300_s6 + $0x8] sm:$0xf] }
 0x46a   : > { %4761 = vmatmul.msk.bf16.vlgmr.msra.gmra.mxu2 %vm821_vm1, %v1057_v55  ;;  %v1279_v55 = vsel %vm1063_vm3, %v4807_v53, 0 }
 0x46b   : > { %1325 = vmatpush.bf16.msra.mxu2 %v5522_v40  ;;  %1288 = vmatpush.bf16.msra.mxu1 %v1279_v55 }
 0x46f   : > { %v1168_v56 = vpop.f32.mrf.mxu1  ;;  %1326 = vmatpush.bf16.msra.mxu2 %v5521_v41 }
 0x470   : > { %v1169_v60 = vadd.f32 %v5663_v58, %v1168_v56 }
 0x477   : > { %v1170_v59 = vpop.f32.mrf.mxu1 }
 0x478   : > { %v1171_v61 = vadd.f32 %v5663_v58, %v1170_v59 }
 0x47a   : > { %v1210_v63 = vpack.c.bf16 %v1171_v61, %v1169_v60  ;;  %4804 = vmatmul.msk.bf16.vlgmr.msrb.gmra.mxu2 %vm729_vm0, %v6120_v6 }
 0x47c   : > { %v1215_v1 = vsel %vm821_vm1, %v1210_v63, 0 }
 0x47d   : > { %1224 = vmatpush.bf16.xpose.msrb.mxu3 %v1215_v1 }
 0x484   : > { %4805 = vmatmul.msk.bf16.vlgmr.msrb.gmra.mxu3 %vm821_vm1, %v1209_v7  ;;  %v5525_v7 = vld [vmem:[%s7296_s21 + $0xb0] sm:$0xff] }
 0x485   : > { %1361 = vmatpush.bf16.msra.mxu3 %v5524_v35 }
 0x489   : > { %1362 = vmatpush.bf16.msra.mxu3 %v5523_v39 }
 0x48a   : > { %4822 = vmatmul.msk.bf16.vlgmr.msra.gmra.mxu2 %vm729_vm0, %v6120_v6 }
 0x494   : > { %4836 = vmatmul.msk.bf16.vlgmr.msra.gmra.mxu3 %vm729_vm0, %v6120_v6 }
 0x4ed   : > { %v1076_v30 = vpop.f32.mrf.mxu2 }
 0x4ee   : > { %v1097_v8 = vadd.f32 %v6249_v9, %v1076_v30 }
 0x4f5   : > { %v6264_v31 = vpop.f32.mrf.mxu2 }
 0x4fd   : > { %v1204_v32 = vpop.f32.mrf.mxu2 }
 0x4fe   : > { %v1205_v34 = vadd.f32 %v5664_v33, %v1204_v32 }
 0x505   : > { %v1206_v36 = vpop.f32.mrf.mxu2 }
 0x506   : > { %v1207_v37 = vadd.f32 %v5664_v33, %v1206_v36 }
 0x507   : > { %v1226_v12 = vpop.f32.mrf.mxu3 }
 0x508   : > { %v1227_v13 = vadd.f32 %v1226_v12, %v6158_v23  ;;  %v1254_v38 = vpack.c.bf16 %v1207_v37, %v1205_v34 }
 0x50a   : > { %v1231_v14 = vsel %vm842_vm2, %v1227_v13, -inf  ;;  %1265 = vmatpush.bf16.msra.mxu0 %v1254_v38 }
 0x50b   : > { %1232 = vmax.xlane.f32.xlu2 %v1231_v14 }
 0x50d   : > { %v1328_v59 = vpop.f32.mrf.mxu2 }
 0x50e   : > { %v1329_v0 = vadd.f32 %v5666_v62, %v1328_v59  ;;  %1397 = vmatpush.bf16.msrb.mxu0 %v5526_v3 }
 0x50f   : > { %v1228_v15 = vpop.f32.mrf.mxu3 }
 0x510   : > { %v1229_v16 = vadd.f32 %v1228_v15, %v6163_v27 }
 0x512   : > { %v1234_v17 = vsel %vm842_vm2, %v1229_v16, -inf  ;;  %1398 = vmatpush.bf16.msrb.mxu0 %v5525_v7 }
 0x513   : > { %1235 = vmax.xlane.f32.xlu0 %v1234_v17 }
 0x515   : > { %v1330_v63 = vpop.f32.mrf.mxu2 }
 0x516   : > { %v1331_v1 = vadd.f32 %v5666_v62, %v1330_v63  ;;  %v696_v62 = vld [vmem:[%s680_s29] sm:$0xff]  ;;  %v697_v63 = vld [vmem:[%s680_s29 + $0x8] sm:$0xff] }
 0x517   : > { %v1364_v49 = vpop.f32.mrf.mxu3 }
 0x518   : > { %v1365_v51 = vadd.f32 %v5665_v50, %v1364_v49  ;;  %v1405_v2 = vpack.c.bf16 %v1331_v1, %v1329_v0  ;;  %v6342_v0 = vpack.c.bf16 %v697_v63, %v696_v62  ;;  %v5533_v62 = vld [vmem:[%s7257_s8 + $0x10] sm:$0xff] }
 0x51f   : > { %v1366_v52 = vpop.f32.mrf.mxu3 }
 0x520   : > { %v1367_v54 = vadd.f32 %v5665_v50, %v1366_v52 }
 0x522   : > { %v1406_v56 = vpack.c.bf16 %v1367_v54, %v1365_v51  ;;  %v1099_v51 = vadd.f32 %v6256_v11, %v6264_v31  ;;  %v5530_v31 = vld [vmem:[%s7257_s8 + $0x48] sm:$0xff] }
 0x524   : > { %v1411_v57 = vsel %vm821_vm1, %v1406_v56, 0 }
 0x525   : > { %1420 = vmatpush.bf16.xpose.msrb.mxu1 %v1411_v57 }
 0x57e   : > { %v1233_v18 = vpop.xlane.xlu2 %1232 }
 0x57f   : > { %v1237_v19 = vsub.f32 %v1227_v13, %v1233_v18 }
 0x581   : > { %v1239_v20 = vmul.f32 1.442695, %v1237_v19 }
 0x583   : > { %5733 = vpow2.f32 %v1239_v20 }
 0x586   : > { %v1236_v21 = vpop.xlane.xlu0 %1235 }
 0x587   : > { %v1238_v22 = vsub.f32 %v1229_v16, %v1236_v21 }
 0x589   : > { %v5734_v24 = vpop.eup %5733  ;;  %v1241_v25 = vmul.f32 1.442695, %v1238_v22 }
 0x58a   : > { %v1243_v26 = vsel %vm842_vm2, %v5734_v24, 0.0 }
 0x58b   : > { %5735 = vpow2.f32 %v1241_v25  ;;  %1244 = vadd.xlane.f32.xlu1 %v1243_v26 }
 0x591   : > { %v5736_v28 = vpop.eup %5735 }
 0x592   : > { %v1246_v29 = vsel %vm842_vm2, %v5736_v28, 0.0 }
 0x593   : > { %1247 = vadd.xlane.f32.xlu2 %v1246_v29  ;;  %v5667_v29 = vld [vmem:[%s7298_s5 + $0xb] ss:$0 sm:$0xff] }
 0x5fe   : > { %v1245_v42 = vpop.xlane.xlu1 %1244 }
 0x5ff   : > { %5737 = vrcp.f32 %v1245_v42  ;;  %v4853_v42 = vld [vmem:[%s7300_s6 + $0xc] sm:$0xf] }
 0x605   : > { %v5738_v44 = vpop.eup %5737 }
 0x606   : > { %v1248_v43 = vpop.xlane.xlu2 %1247  ;;  %v1251_v46 = vmul.f32 %v5738_v44, %v5734_v24 }
 0x607   : > { %5739 = vrcp.f32 %v1248_v43  ;;  %v1475_v43 = vsel %vm1063_vm3, %v4853_v42, 0 }
 0x608   : > { %1484 = vmatpush.bf16.msrb.mxu3 %v1475_v43 }
 0x60d   : > { %v5740_v45 = vpop.eup %5739 }
 0x60e   : > { %v1252_v47 = vmul.f32 %v5740_v45, %v5736_v28 }
 0x610   : > { %v1253_v48 = vpack.c.bf16 %v1252_v47, %v1251_v46  ;;  %v5668_v47 = vld [vmem:[%s7301_s7] ss:$0 sm:$0xff] }
 0x612   : > { %4806 = vmatmul.msk.bf16.vlgmr.msra.gmra.mxu0 %vm842_vm2, %v1253_v48 }
 0x622   : > { %4850 = vmatmul.msk.bf16.vlgmr.msrb.gmra.mxu0 %vm729_vm0, %v6120_v6 }
 0x68f   : > { %v1267_v58 = vpop.f32.mrf.mxu0 }
 0x697   : > { %v1269_v60 = vpop.f32.mrf.mxu0 }
 0x698   : > { %v1272_v61 = vpack.c.bf16 %v1269_v60, %v1267_v58  ;;  %v5942_v60 = vmov 32.0  }
 0x69a   : > { %4808 = vmatmul.msk.bf16.vlgmr.msra.gmra.mxu1 %vm821_vm1, %v1272_v61  ;;  %v5529_v61 = vld [vmem:[%s7257_s8 + $0x40] sm:$0xff] }
 0x69b   : > { %1634 = vmatpush.bf16.msra.mxu1 %v5530_v31 }
 0x69f   : > { %1635 = vmatpush.bf16.msra.mxu1 %v5529_v61  ;;  %v5534_v61 = vld [vmem:[%s7257_s8 + $0x18] sm:$0xff] }
 0x6aa   : > { %4851 = vmatmul.msk.bf16.vlgmr.msrb.gmra.mxu1 %vm821_vm1, %v1405_v2 }
 0x6ba   : > { %4877 = vmatmul.msk.bf16.vlgmr.msra.gmra.mxu1 %vm729_vm0, %v6342_v0 }
 0x717   : > { %v1290_v10 = vpop.f32.mrf.mxu1 }
 0x718   : > { %v1295_v12 = vadd.f32 %v1290_v10, %v1097_v8  ;;  %v698_v10 = vld [vmem:[%s680_s29 + $0x10] sm:$0xff] }
 0x71f   : > { %v1292_v13 = vpop.f32.mrf.mxu1 }
 0x720   : > { %v1296_v53 = vadd.f32 %v1292_v13, %v1099_v51 }
 0x727   : > { %v1422_v14 = vpop.f32.mrf.mxu1 }
 0x728   : > { %v1423_v15 = vadd.f32 %v1422_v14, %v6158_v23 }
 0x72a   : > { %v1427_v16 = vsel %vm842_vm2, %v1423_v15, -inf }
 0x72b   : > { %1428 = vmax.xlane.f32.xlu0 %v1427_v16 }
 0x72f   : > { %v1424_v17 = vpop.f32.mrf.mxu1 }
 0x730   : > { %v1425_v18 = vadd.f32 %v1424_v17, %v6163_v27  ;;  %v1400_v27 = vpop.f32.mrf.mxu0 }
 0x731   : > { %v1401_v30 = vadd.f32 %v5667_v29, %v1400_v27 }
 0x732   : > { %v1430_v19 = vsel %vm842_vm2, %v1425_v18, -inf }
 0x733   : > { %1431 = vmax.xlane.f32.xlu1 %v1430_v19 }
 0x738   : > { %v1402_v32 = vpop.f32.mrf.mxu0 }
 0x739   : > { %v1403_v33 = vadd.f32 %v5667_v29, %v1402_v32 }
 0x73b   : > { %v1450_v34 = vpack.c.bf16 %v1403_v33, %v1401_v30 }
 0x73d   : > { %1461 = vmatpush.bf16.msrb.mxu2 %v1450_v34 }
 0x79e   : > { %v1429_v9 = vpop.xlane.xlu0 %1428 }
 0x79f   : > { %v1433_v20 = vsub.f32 %v1423_v15, %v1429_v9 }
 0x7a1   : > { %v1435_v21 = vmul.f32 1.442695, %v1433_v20 }
 0x7a3   : > { %5741 = vpow2.f32 %v1435_v21  ;;  %v5528_v21 = vld [vmem:[%s7257_s8 + $0x8] sm:$0xff] }
 0x7a4   : > { %1592 = vmatpush.bf16.msra.mxu0 %v5528_v21 }
 0x7a6   : > { %v1432_v22 = vpop.xlane.xlu1 %1431 }
 0x7a7   : > { %v1434_v24 = vsub.f32 %v1425_v18, %v1432_v22 }
 0x7a9   : > { %v5742_v6 = vpop.eup %5741  ;;  %v1437_v25 = vmul.f32 1.442695, %v1434_v24 }
 0x7aa   : > { %v1439_v26 = vsel %vm842_vm2, %v5742_v6, 0.0 }
 0x7ab   : > { %5743 = vpow2.f32 %v1437_v25  ;;  %1440 = vadd.xlane.f32.xlu2 %v1439_v26  ;;  %v1637_v26 = vpop.f32.mrf.mxu1 }
 0x7b1   : > { %v5744_v23 = vpop.eup %5743 }
 0x7b2   : > { %v1442_v28 = vsel %vm842_vm2, %v5744_v23, 0.0 }
 0x7b3   : > { %1443 = vadd.xlane.f32.xlu0 %v1442_v28  ;;  %v1639_v33 = vpop.f32.mrf.mxu1 }
 0x81e   : > { %v1441_v35 = vpop.xlane.xlu2 %1440 }
 0x81f   : > { %5745 = vrcp.f32 %v1441_v35 }
 0x825   : > { %v5746_v37 = vpop.eup %5745 }
 0x826   : > { %v1444_v36 = vpop.xlane.xlu0 %1443  ;;  %v1447_v39 = vmul.f32 %v5746_v37, %v5742_v6  ;;  %v5527_v6 = vld [vmem:[%s7257_s8] sm:$0xff] }
 0x827   : > { %5747 = vrcp.f32 %v1444_v36  ;;  %1593 = vmatpush.bf16.msra.mxu0 %v5527_v6 }
 0x828   : > { %5749 = vrcp.f32 %v5942_v60 }
 0x82d   : > { %v5748_v38 = vpop.eup %5747 }
 0x82e   : > { %v1448_v40 = vmul.f32 %v5748_v38, %v5744_v23  ;;  %v5750_v11 = vpop.eup %5749 }
 0x82f   : > { %vm1512_vm4 = vweird.f32 %v5750_v11 }
 0x830   : > { %v1449_v41 = vpack.c.bf16 %v1448_v40, %v1447_v39 }
 0x832   : > { %4852 = vmatmul.msk.bf16.vlgmr.msrb.gmra.mxu2 %vm842_vm2, %v1449_v41 }
 0x8b5   : > { %v1463_v44 = vpop.f32.mrf.mxu2 }
 0x8bd   : > { %v1465_v45 = vpop.f32.mrf.mxu2 }
 0x8be   : > { %v1468_v46 = vpack.c.bf16 %v1465_v45, %v1463_v44  ;;  %v5671_v44 = vld [vmem:[%s7258_s9 + $0x4] ss:$0 sm:$0xff]  ;;  %v6370_v45 = vld [vmem:[%s7265_s16] ss:$0 sm:$0xff] }
 0x8c0   : > { %4854 = vmatmul.msk.bf16.vlgmr.msrb.gmra.mxu3 %vm821_vm1, %v1468_v46 }
 0x943   : > { %v1486_v48 = vpop.f32.mrf.mxu3 }
 0x944   : > { %v1491_v49 = vadd.f32 %v1486_v48, %v1295_v12  ;;  %v699_v12 = vld [vmem:[%s680_s29 + $0x18] sm:$0xff]  ;;  %s5894_s29 = scalar_lea.hbm %s5893_s1, 16 }
 0x945   : > { %v6349_v15 = vpack.c.bf16 %v699_v12, %v698_v10  ;;  %v5532_v12 = vld [vmem:[%s7257_s8 + $0x88] sm:$0xff]  ;;  %p5895_p13 = scmp.ne.s32.totalorder %s5893_s1, %s5894_s29 }
 0x946   : > { %v1497_v50 = vadd.f32 %v5668_v47, %v1491_v49  ;;  %1675 = vmatpush.bf16.msra.mxu2 %v5532_v12 }
 0x947   : > { %4878 = vmatmul.msk.bf16.gmra.mxu1 %vm729_vm0, %v6349_v15  ;;  %p5896_p0 = pnand %p5895_p13, %p6088_p5 }
 0x948   : > { %v1499_v52 = vadd.f32 %v1497_v50, %v6114_v4  ;;  %v1508_v4 = vmul.f32 32.0, %v5750_v11  ;;  %v6375_v50 = vld [vmem:[%s7266_s17] ss:$0 sm:$0xff] }
 0x949   : > { %p5897_p1 = pneg %p5896_p0 }
 0x94a   : > { %v1501_v54 = vsel %vm729_vm0, %v1499_v52, 0.0 }
 0x94b   : > { %v1488_v55 = vpop.f32.mrf.mxu3  ;;  %1502 = vadd.xlane.f32.xlu1 %v1501_v54 }
 0x94c   : > { %v1492_v56 = vadd.f32 %v1488_v55, %v1296_v53 }
 0x94e   : > { %v1498_v57 = vadd.f32 %v5668_v47, %v1492_v56  ;;  %v1638_v56 = vadd.f32 %v5671_v44, %v1637_v26 }
 0x950   : > { %v1500_v58 = vadd.f32 %v1498_v57, %v6116_v5  ;;  %v1509_v5 = vsub.f32 1.0, %v1508_v4  ;;  %v1640_v57 = vadd.f32 %v5671_v44, %v1639_v33 }
 0x952   : > { %v1504_v59 = vsel %vm729_vm0, %v1500_v58, 0.0  ;;  %v1510_v1 = vmul.f32 %v5750_v11, %v1509_v5  ;;  %v1689_v31 = vpack.c.bf16 %v1640_v57, %v1638_v56 }
 0x953   : > { %1505 = vadd.xlane.f32.xlu2 %v1504_v59 }
 0x954   : > { %v1511_v2 = vadd.f32 %v5750_v11, %v1510_v1  ;;  %v1695_v5 = vsel %vm821_vm1, %v1689_v31, 0  ;;  %v5672_v1 = vld [vmem:[%s7258_s9] ss:$0 sm:$0xff] }
 0x956   : > { %v6346_v3 = vsel %vm1512_vm4, %v5750_v11, %v1511_v2 }
 0x9be   : > { %v1503_v7 = vpop.xlane.xlu1 %1502 }
 0x9bf   : > { %v1514_v8 = vmul.f32 %v6346_v3, %v1503_v7 }
 0x9c1   : > { %v1516_v13 = vsub.f32 %v1499_v52, %v1514_v8 }
 0x9c3   : > { %v1518_v14 = vmul.f32 %v1516_v13, %v1516_v13 }
 0x9c4   : > { %v1642_v40 = vpop.f32.mrf.mxu1 }
 0x9c5   : > { %v1520_v16 = vsel %vm729_vm0, %v1518_v14, 0.0  ;;  %v1643_v49 = vadd.f32 %v5671_v44, %v1642_v40  ;;  %v6419_v14 = vld [vmem:[%s6410_s20] sm:$0xff] }
 0x9c6   : > { %v1506_v17 = vpop.xlane.xlu2 %1505  ;;  %1521 = vadd.xlane.f32.xlu0 %v1520_v16 }
 0x9c7   : > { %v1515_v18 = vmul.f32 %v6346_v3, %v1506_v17 }
 0x9c9   : > { %v1517_v19 = vsub.f32 %v1500_v58, %v1515_v18 }
 0x9cb   : > { %v1519_v9 = vmul.f32 %v1517_v19, %v1517_v19 }
 0x9cc   : > { %v1644_v53 = vpop.f32.mrf.mxu1 }
 0x9cd   : > { %v1523_v20 = vsel %vm729_vm0, %v1519_v9, 0.0  ;;  %v1645_v54 = vadd.f32 %v5671_v44, %v1644_v53  ;;  %v5535_v44 = vld [vmem:[%s7257_s8 + $0x50] sm:$0xff] }
 0x9ce   : > { %1524 = vadd.xlane.f32.xlu1 %v1523_v20 }
 0x9cf   : > { %v1690_v58 = vpack.c.bf16 %v1645_v54, %v1643_v49  ;;  %v5540_v54 = vld [vmem:[%s7257_s8 + $0x28] sm:$0xff] }
 0x9d1   : > { %v1698_v11 = vsel %vm821_vm1, %v1690_v58, 0 }
 0x9d2   : > { %1706 = vmatpush.bf16.xpose.msra.mxu3 %v1698_v11 }
 0x9da   : > { %1707 = vmatpush.bf16.xpose.msra.mxu3 %v1695_v5  ;;  %v5675_v5 = vld [vmem:[%s7258_s9 + $0x5] ss:$0 sm:$0xff] }
 0x9e2   : > { %1786 = vmatpush.bf16.msrb.mxu3 %v5534_v61 }
 0x9e6   : > { %1787 = vmatpush.bf16.msrb.mxu3 %v5533_v62 }
 0xa39   : > { %v1522_v22 = vpop.xlane.xlu0 %1521 }
 0xa3a   : > { %v1526_v24 = vmul.f32 %v1522_v22, %v6346_v3 }
 0xa3c   : > { %v1528_v25 = vadd.f32 1e-05, %v1526_v24 }
 0xa3e   : > { %5751 = vrsqrt.f32 %v1528_v25  ;;  %vm1536_vm6 = vweird.f32 %v1528_v25 }
 0xa41   : > { %v1525_v23 = vpop.xlane.xlu1 %1524 }
 0xa42   : > { %v1527_v28 = vmul.f32 %v1525_v23, %v6346_v3 }
 0xa44   : > { %v5752_v27 = vpop.eup %5751  ;;  %v1529_v29 = vadd.f32 1e-05, %v1527_v28 }
 0xa45   : > { %v1531_v30 = vmul.f32 %v5752_v27, %v1528_v25  ;;  %vm1537_vm5 = vweird.f32 %v5752_v27 }
 0xa46   : > { %5753 = vrsqrt.f32 %v1529_v29  ;;  %vm1538_vm7 = vmor %vm1536_vm6, %vm1537_vm5  ;;  %vm1546_vm9 = vweird.f32 %v1529_v29  ;;  %vm2542_vm5 = vcmask 523264  }
 0xa47   : > { %v1532_v32 = vmul.f32 %v5752_v27, %v1531_v30 }
 0xa49   : > { %v1533_v34 = vmul.f32 0.5, %v1532_v32 }
 0xa4b   : > { %v1534_v35 = vsub.f32 1.5, %v1533_v34 }
 0xa4c   : > { %v5754_v36 = vpop.eup %5753 }
 0xa4d   : > { %v1535_v37 = vmul.f32 %v5752_v27, %v1534_v35  ;;  %v1541_v38 = vmul.f32 %v5754_v36, %v1529_v29  ;;  %vm1547_vm8 = vweird.f32 %v5754_v36  ;;  %v5674_v35 = vld [vmem:[%s7258_s9 + $0x8] ss:$0 sm:$0xff] }
 0xa4e   : > { %vm1548_vm10 = vmor %vm1546_vm9, %vm1547_vm8 }
 0xa4f   : > { %v1542_v39 = vmul.f32 %v5754_v36, %v1541_v38  ;;  %v1539_v41 = vsel %vm1538_vm7, %v5752_v27, %v1535_v37 }
 0xa50   : > { %v1550_v46 = vmul.f32 %v1539_v41, %v1516_v13  ;;  %v5531_v13 = vld [vmem:[%s7257_s8 + $0x80] sm:$0xff] }
 0xa51   : > { %v1543_v42 = vmul.f32 0.5, %v1542_v39  ;;  %1676 = vmatpush.bf16.msra.mxu2 %v5531_v13 }
 0xa52   : > { %v1555_v51 = vmul.f32 %v6370_v45, %v1550_v46 }
 0xa53   : > { %v1544_v43 = vsub.f32 1.5, %v1543_v42 }
 0xa54   : > { %v6380_v59 = vadd.f32 %v6375_v50, %v1555_v51  ;;  %4892 = vmatmul.msk.bf16.vlgmr.msra.gmra.mxu2 %vm729_vm0, %v6342_v0 }
 0xa55   : > { %v1545_v47 = vmul.f32 %v5754_v36, %v1544_v43  ;;  %v5536_v43 = vld [vmem:[%s7257_s8 + $0x58] sm:$0xff] }
 0xa57   : > { %v1549_v48 = vsel %vm1548_vm10, %v5754_v36, %v1545_v47 }
 0xa58   : > { %v1551_v52 = vmul.f32 %v1549_v48, %v1517_v19  ;;  %v6426_v19 = vld [vmem:[%s6410_s20 + $0x8] sm:$0xff] }
 0xa5a   : > { %v1556_v55 = vmul.f32 %v6370_v45, %v1551_v52 }
 0xa5c   : > { %v6383_v60 = vadd.f32 %v6375_v50, %v1556_v55  ;;  %v5539_v55 = vld [vmem:[%s7257_s8 + $0x20] sm:$0xff] }
 0xa5e   : > { %v6388_v4 = vpack.c.bf16 %v6383_v60, %v6380_v59 }
 0xa60   : > { %4863 = vmatmul.msk.bf16.vlgmr.msra.gmra.mxu0 %vm729_vm0, %v6388_v4 }
 0xa64   : > { %4893 = vmatmul.msk.bf16.gmra.mxu2 %vm729_vm0, %v6349_v15 }
 0xad7   : > { %v1678_v29 = vpop.f32.mrf.mxu2 }
 0xad8   : > { %v1679_v38 = vadd.f32 %v5674_v35, %v1678_v29 }
 0xadd   : > { %v1595_v63 = vpop.f32.mrf.mxu0 }
 0xade   : > { %v1596_v7 = vadd.f32 %v5672_v1, %v1595_v63 }
 0xadf   : > { %v1680_v33 = vpop.f32.mrf.mxu2 }
 0xae0   : > { %v1681_v39 = vadd.f32 %v5674_v35, %v1680_v33 }
 0xae2   : > { %v1737_v42 = vpack.c.bf16 %v1681_v39, %v1679_v38 }
 0xae5   : > { %v1597_v2 = vpop.f32.mrf.mxu0 }
 0xae6   : > { %v1598_v8 = vadd.f32 %v5672_v1, %v1597_v2 }
 0xae7   : > { %v1683_v34 = vpop.f32.mrf.mxu2 }
 0xae8   : > { %v1688_v10 = vpack.c.bf16 %v1598_v8, %v1596_v7  ;;  %v1684_v36 = vadd.f32 %v5674_v35, %v1683_v34 }
 0xaea   : > { %4894 = vmatmul.msk.bf16.vlgmr.msra.gmra.mxu3 %vm821_vm1, %v1688_v10 }
 0xaef   : > { %v1685_v37 = vpop.f32.mrf.mxu2 }
 0xaf0   : > { %v1686_v40 = vadd.f32 %v5674_v35, %v1685_v37 }
 0xaf2   : > { %v1738_v41 = vpack.c.bf16 %v1686_v40, %v1684_v36 }
 0xaf4   : > { %1748 = vmatpush.bf16.msrb.mxu0 %v1738_v41 }
 0xaf8   : > { %1749 = vmatpush.bf16.msrb.mxu0 %v1737_v42  ;;  %v5677_v42 = vld [vmem:[%s7258_s9 + $0x9] ss:$0 sm:$0xff] }
 0xafa   : > { %4909 = vmatmul.msk.bf16.vlgmr.msrb.gmra.mxu3 %vm729_vm0, %v6388_v4 }
 0xafc   : > { %1822 = vmatpush.bf16.msra.mxu0 %v5536_v43 }
 0xb00   : > { %1823 = vmatpush.bf16.msra.mxu0 %v5535_v44 }
 0xb6d   : > { %v1709_v16 = vpop.f32.mrf.mxu3 }
 0xb6e   : > { %v1710_v17 = vadd.f32 %v1709_v16, %v6419_v14  ;;  %v5673_v16 = vld [vmem:[%s7258_s9 + $0x1] ss:$0 sm:$0xff] }
 0xb70   : > { %v1714_v18 = vsel %vm729_vm0, %v1710_v17, -inf }
 0xb71   : > { %1715 = vmax.xlane.f32.xlu2 %v1714_v18 }
 0xb75   : > { %v1711_v9 = vpop.f32.mrf.mxu3 }
 0xb76   : > { %v1712_v20 = vadd.f32 %v1711_v9, %v6426_v19 }
 0xb78   : > { %v1717_v21 = vsel %vm729_vm0, %v1712_v20, -inf }
 0xb79   : > { %1718 = vmax.xlane.f32.xlu0 %v1717_v21  ;;  %v5538_v21 = vld [vmem:[%s7257_s8 + $0x98] sm:$0xff] }
 0xb7a   : > { %1863 = vmatpush.bf16.msrb.mxu1 %v5538_v21 }
 0xb7d   : > { %v1789_v1 = vpop.f32.mrf.mxu3 }
 0xb7e   : > { %v1790_v9 = vadd.f32 %v5673_v16, %v1789_v1 }
 0xb85   : > { %v1791_v13 = vpop.f32.mrf.mxu3 }
 0xb86   : > { %v1792_v18 = vadd.f32 %v5673_v16, %v1791_v13 }
 0xbe4   : > { %v1716_v22 = vpop.xlane.xlu2 %1715 }
 0xbe5   : > { %v1720_v24 = vsub.f32 %v1710_v17, %v1716_v22  ;;  %v5537_v22 = vld [vmem:[%s7257_s8 + $0x90] sm:$0xff] }
 0xbe6   : > { %1864 = vmatpush.bf16.msrb.mxu1 %v5537_v22 }
 0xbe7   : > { %v1722_v6 = vmul.f32 1.442695, %v1720_v24  ;;  %v5542_v24 = vld [vmem:[%s7257_s8 + $0x68] sm:$0xff] }
 0xbe9   : > { %5755 = vpow2.f32 %v1722_v6  ;;  %v5541_v6 = vld [vmem:[%s7257_s8 + $0x60] sm:$0xff]  ;;  %4938 = vmatmul.msk.bf16.vlgmr.msrb.gmra.mxu1 %vm729_vm0, %v6342_v0 }
 0xbea   : > { %2051 = vmatpush.bf16.msra.mxu1 %v5542_v24 }
 0xbec   : > { %v1719_v25 = vpop.xlane.xlu0 %1718 }
 0xbed   : > { %v1721_v26 = vsub.f32 %v1712_v20, %v1719_v25  ;;  %v1876_v20 = vpack.c.bf16 %v1792_v18, %v1790_v9 }
 0xbee   : > { %2052 = vmatpush.bf16.msra.mxu1 %v5541_v6 }
 0xbef   : > { %v5756_v23 = vpop.eup %5755  ;;  %v1724_v28 = vmul.f32 1.442695, %v1721_v26 }
 0xbf0   : > { %v1726_v27 = vsel %vm729_vm0, %v5756_v23, 0.0 }
 0xbf1   : > { %5757 = vpow2.f32 %v1724_v28  ;;  %1727 = vadd.xlane.f32.xlu1 %v1726_v27 }
 0xbf7   : > { %v5758_v30 = vpop.eup %5757 }
 0xbf8   : > { %v1729_v32 = vsel %vm729_vm0, %v5758_v30, 0.0 }
 0xbf9   : > { %1730 = vadd.xlane.f32.xlu2 %v1729_v32  ;;  %4939 = vmatmul.msk.bf16.gmra.mxu1 %vm729_vm0, %v6349_v15 }
 0xc09   : > { %4972 = vmatmul.msk.bf16.vlgmr.msra.gmra.mxu1 %vm729_vm0, %v6342_v0 }
 0xc19   : > { %4973 = vmatmul.msk.bf16.gmra.mxu1 %vm729_vm0, %v6349_v15 }
 0xc64   : > { %v1728_v46 = vpop.xlane.xlu1 %1727 }
 0xc65   : > { %5759 = vrcp.f32 %v1728_v46 }
 0xc6b   : > { %v5760_v48 = vpop.eup %5759 }
 0xc6c   : > { %v1731_v47 = vpop.xlane.xlu2 %1730  ;;  %v1734_v51 = vmul.f32 %v5760_v48, %v5756_v23 }
 0xc6d   : > { %5761 = vrcp.f32 %v1731_v47 }
 0xc73   : > { %v5762_v49 = vpop.eup %5761 }
 0xc74   : > { %v1735_v52 = vmul.f32 %v5762_v49, %v5758_v30  ;;  %v1866_v30 = vpop.f32.mrf.mxu1 }
 0xc75   : > { %v1867_v48 = vadd.f32 %v5677_v42, %v1866_v30 }
 0xc76   : > { %v1736_v53 = vpack.c.bf16 %v1735_v52, %v1734_v51 }
 0xc78   : > { %4895 = vmatmul.msk.bf16.vlgmr.msrb.gmra.mxu0 %vm729_vm0, %v1736_v53 }
 0xc79   : > { %2015 = vmatpush.bf16.msrb.mxu0 %v5540_v54 }
 0xc7c   : > { %v1868_v35 = vpop.f32.mrf.mxu1 }
 0xc7d   : > { %2016 = vmatpush.bf16.msrb.mxu0 %v5539_v55  ;;  %v1869_v49 = vadd.f32 %v5677_v42, %v1868_v35  ;;  %v1757_v55 = vld [vmem:[%s7259_s10] sm:$0xf] }
 0xc7f   : > { %v1925_v53 = vpack.c.bf16 %v1869_v49, %v1867_v48 }
 0xc84   : > { %v1871_v40 = vpop.f32.mrf.mxu1 }
 0xc85   : > { %v1872_v43 = vadd.f32 %v5677_v42, %v1871_v40 }
 0xc88   : > { %4923 = vmatmul.msk.bf16.vlgmr.msra.gmra.mxu0 %vm729_vm0, %v6342_v0 }
 0xc8c   : > { %v1873_v46 = vpop.f32.mrf.mxu1 }
 0xc8d   : > { %v1874_v51 = vadd.f32 %v5677_v42, %v1873_v46  ;;  %v5548_v42 = vld [vmem:[%s7257_s8 + $0x78] sm:$0xff] }
 0xc8e   : > { %2262 = vmatpush.bf16.msrb.mxu1 %v5548_v42 }
 0xc8f   : > { %v1926_v52 = vpack.c.bf16 %v1874_v51, %v1872_v43 }
 0xc91   : > { %1936 = vmatpush.bf16.msra.mxu3 %v1926_v52 }
 0xc94   : > { %v2054_v54 = vpop.f32.mrf.mxu1 }
 0xc95   : > { %1937 = vmatpush.bf16.msra.mxu3 %v1925_v53 }
 0xc98   : > { %4924 = vmatmul.msk.bf16.gmra.mxu0 %vm729_vm0, %v6349_v15 }
 0xca8   : > { %4958 = vmatmul.msk.bf16.vlgmr.msrb.gmra.mxu0 %vm729_vm0, %v6388_v4 }
 0xcf5   : > { %v6456_v56 = vpop.f32.mrf.mxu0 }
 0xcfd   : > { %v6458_v57 = vpop.f32.mrf.mxu0 }
 0xcfe   : > { %v1756_v24 = vpack.c.bf16 %v6458_v57, %v6456_v56 }
 0xd05   : > { %v1825_v58 = vpop.f32.mrf.mxu0 }
 0xd06   : > { %v1826_v10 = vadd.f32 %v5675_v5, %v1825_v58  ;;  %v1971_v58 = vsel %vm1063_vm3, %v1757_v55, 0 }
 0xd07   : > { %1980 = vmatpush.bf16.msrb.mxu3 %v1971_v58 }
 0xd0d   : > { %v1827_v11 = vpop.f32.mrf.mxu0 }
 0xd0e   : > { %v1828_v7 = vadd.f32 %v5675_v5, %v1827_v11  ;;  %v2056_v11 = vpop.f32.mrf.mxu1 }
 0xd10   : > { %v1877_v12 = vpack.c.bf16 %v1828_v7, %v1826_v10 }
 0xd12   : > { %v1883_v17 = vsel %vm821_vm1, %v1877_v12, 0 }
 0xd15   : > { %v1830_v31 = vpop.f32.mrf.mxu0 }
 0xd16   : > { %v1831_v62 = vadd.f32 %v5675_v5, %v1830_v31  ;;  %v2059_v31 = vpop.f32.mrf.mxu1 }
 0xd1d   : > { %v1832_v61 = vpop.f32.mrf.mxu0 }
 0xd1e   : > { %v1833_v63 = vadd.f32 %v5675_v5, %v1832_v61  ;;  %v2061_v61 = vpop.f32.mrf.mxu1 }
 0xd20   : > { %v1878_v2 = vpack.c.bf16 %v1833_v63, %v1831_v62  ;;  %v5678_v62 = vld [vmem:[%s7258_s9 + $0x6] ss:$0 sm:$0xff] }
 0xd21   : > { %v2060_v1 = vadd.f32 %v5678_v62, %v2059_v31  ;;  %v2055_v18 = vadd.f32 %v5678_v62, %v2054_v54  ;;  %v2057_v9 = vadd.f32 %v5678_v62, %v2056_v11 }
 0xd22   : > { %v1886_v8 = vsel %vm821_vm1, %v1878_v2, 0  ;;  %v2062_v2 = vadd.f32 %v5678_v62, %v2061_v61  ;;  %v5679_v62 = vld [vmem:[%s7258_s9 + $0xa] ss:$0 sm:$0xff] }
 0xd23   : > { %1894 = vmatpush.bf16.xpose.msrb.mxu2 %v1886_v8 }
 0xd24   : > { %v2107_v8 = vpack.c.bf16 %v2062_v2, %v2060_v1 }
 0xd25   : > { %v2018_v22 = vpop.f32.mrf.mxu0 }
 0xd2b   : > { %1895 = vmatpush.bf16.xpose.msrb.mxu2 %v1883_v17  ;;  %v2115_v17 = vsel %vm821_vm1, %v2107_v8, 0 }
 0xd2d   : > { %v2020_v6 = vpop.f32.mrf.mxu0 }
 0xd32   : > { %4940 = vmatmul.msk.bf16.vlgmr.msrb.gmra.mxu2 %vm821_vm1, %v1876_v20  ;;  %v2106_v20 = vpack.c.bf16 %v2057_v9, %v2055_v18  ;;  %v4991_v9 = vld [vmem:[%s7259_s10 + $0x8] sm:$0xf] }
 0xd34   : > { %v2112_v21 = vsel %vm821_vm1, %v2106_v20, 0  ;;  %v2180_v20 = vsel %vm1063_vm3, %v4991_v9, 0 }
 0xdb5   : > { %v1897_v25 = vpop.f32.mrf.mxu2 }
 0xdb6   : > { %v1898_v26 = vadd.f32 %v1897_v25, %v6419_v14  ;;  %v5676_v25 = vld [vmem:[%s7258_s9 + $0x2] ss:$0 sm:$0xff] }
 0xdb8   : > { %v1902_v23 = vsel %vm729_vm0, %v1898_v26, -inf }
 0xdb9   : > { %1903 = vmax.xlane.f32.xlu0 %v1902_v23  ;;  %v2019_v23 = vadd.f32 %v5676_v25, %v2018_v22 }
 0xdbd   : > { %v1899_v28 = vpop.f32.mrf.mxu2 }
 0xdbe   : > { %v1900_v27 = vadd.f32 %v1899_v28, %v6426_v19 }
 0xdc0   : > { %v1905_v29 = vsel %vm729_vm0, %v1900_v27, -inf }
 0xdc1   : > { %1906 = vmax.xlane.f32.xlu1 %v1905_v29 }
 0xe2c   : > { %v1904_v32 = vpop.xlane.xlu0 %1903 }
 0xe2d   : > { %v1908_v33 = vsub.f32 %v1898_v26, %v1904_v32  ;;  %v2021_v26 = vadd.f32 %v5676_v25, %v2020_v6  ;;  %v5544_v32 = vld [vmem:[%s7257_s8 + $0xa8] sm:$0xff] }
 0xe2f   : > { %v1910_v34 = vmul.f32 1.442695, %v1908_v33  ;;  %v2105_v28 = vpack.c.bf16 %v2021_v26, %v2019_v23  ;;  %v5543_v33 = vld [vmem:[%s7257_s8 + $0xa0] sm:$0xff] }
 0xe31   : > { %5763 = vpow2.f32 %v1910_v34 }
 0xe34   : > { %v1907_v36 = vpop.xlane.xlu1 %1906 }
 0xe35   : > { %v1909_v37 = vsub.f32 %v1900_v27, %v1907_v36  ;;  %v4942_v27 = vld [vmem:[%s7259_s10 + $0x4] sm:$0xf] }
 0xe36   : > { %v1951_v29 = vsel %vm1063_vm3, %v4942_v27, 0  ;;  %v5680_v27 = vld [vmem:[%s7258_s9 + $0x7] ss:$0 sm:$0xff] }
 0xe37   : > { %v5764_v38 = vpop.eup %5763  ;;  %v1912_v39 = vmul.f32 1.442695, %v1909_v37  ;;  %1960 = vmatpush.bf16.msra.mxu2 %v1951_v29 }
 0xe38   : > { %v1914_v41 = vsel %vm729_vm0, %v5764_v38, 0.0 }
 0xe39   : > { %5765 = vpow2.f32 %v1912_v39  ;;  %1915 = vadd.xlane.f32.xlu2 %v1914_v41 }
 0xe3b   : > { %2092 = vmatpush.bf16.msrb.mxu2 %v5544_v32 }
 0xe3f   : > { %v5766_v44 = vpop.eup %5765  ;;  %2093 = vmatpush.bf16.msrb.mxu2 %v5543_v33 }
 0xe40   : > { %v1917_v47 = vsel %vm729_vm0, %v5766_v44, 0.0 }
 0xe41   : > { %1918 = vadd.xlane.f32.xlu0 %v1917_v47 }
 0xeac   : > { %v1916_v5 = vpop.xlane.xlu2 %1915 }
 0xead   : > { %5767 = vrcp.f32 %v1916_v5 }
 0xeb3   : > { %v5768_v7 = vpop.eup %5767 }
 0xeb4   : > { %v1919_v63 = vpop.xlane.xlu0 %1918  ;;  %v1922_v12 = vmul.f32 %v5768_v7, %v5764_v38 }
 0xeb5   : > { %5769 = vrcp.f32 %v1919_v63 }
 0xebb   : > { %v5770_v10 = vpop.eup %5769 }
 0xebc   : > { %v1923_v13 = vmul.f32 %v5770_v10, %v5766_v44  ;;  %v5547_v44 = vld [vmem:[%s7257_s8 + $0x70] sm:$0xff] }
 0xebd   : > { %2263 = vmatpush.bf16.msrb.mxu1 %v5547_v44  ;;  %v5681_v44 = vld [vmem:[%s7258_s9 + $0x3] ss:$0 sm:$0xff] }
 0xebe   : > { %v1924_v16 = vpack.c.bf16 %v1923_v13, %v1922_v12  ;;  %v5546_v13 = vld [vmem:[%s7257_s8 + $0x38] sm:$0xff] }
 0xec0   : > { %4941 = vmatmul.msk.bf16.vlgmr.msra.gmra.mxu3 %vm729_vm0, %v1924_v16  ;;  %5020 = vmatmul.msk.bf16.vlgmr.msrb.gmra.mxu1 %vm729_vm0, %v6342_v0  ;;  %v5545_v16 = vld [vmem:[%s7257_s8 + $0x30] sm:$0xff] }
 0xec1   : > { %2123 = vmatpush.bf16.xpose.msra.mxu3 %v2115_v17 }
 0xec9   : > { %2124 = vmatpush.bf16.xpose.msra.mxu3 %v2112_v21 }
 0xed0   : > { %4944 = vmatmul.msk.bf16.vlgmr.msrb.gmra.mxu3 %vm821_vm1, %v1756_v24  ;;  %5021 = vmatmul.msk.bf16.gmra.mxu1 %vm729_vm0, %v6349_v15 }
 0xed1   : > { %2189 = vmatpush.bf16.msrb.mxu3 %v2180_v20 }
 0xee0   : > { %4989 = vmatmul.msk.bf16.vlgmr.msra.gmra.mxu3 %vm821_vm1, %v2105_v28 }
 0xf3d   : > { %v2265_v18 = vpop.f32.mrf.mxu1 }
 0xf43   : > { %v1939_v56 = vpop.f32.mrf.mxu3 }
 0xf45   : > { %v2267_v22 = vpop.f32.mrf.mxu1 }
 0xf46   : > { %v2268_v32 = vadd.f32 %v5680_v27, %v2267_v22 }
 0xf4b   : > { %v1941_v57 = vpop.f32.mrf.mxu3 }
 0xf4c   : > { %v1944_v30 = vpack.c.bf16 %v1941_v57, %v1939_v56 }
 0xf4d   : > { %v2270_v28 = vpop.f32.mrf.mxu1 }
 0xf4e   : > { %4943 = vmatmul.msk.bf16.vlgmr.msra.gmra.mxu2 %vm821_vm1, %v1944_v30  ;;  %v2271_v29 = vadd.f32 %v5680_v27, %v2270_v28  ;;  %v2266_v30 = vadd.f32 %v5680_v27, %v2265_v18  ;;  %v5682_v18 = vld [vmem:[%s7258_s9 + $0xb] ss:$0 sm:$0xff] }
 0xf53   : > { %v6526_v34 = vpop.f32.mrf.mxu3 }
 0xf55   : > { %v2272_v56 = vpop.f32.mrf.mxu1 }
 0xf56   : > { %v2273_v57 = vadd.f32 %v5680_v27, %v2272_v56 }
 0xf58   : > { %v2318_v33 = vpack.c.bf16 %v2273_v57, %v2271_v29 }
 0xf5b   : > { %v6528_v35 = vpop.f32.mrf.mxu3 }
 0xf5e   : > { %4987 = vmatmul.msk.bf16.vlgmr.msrb.gmra.mxu2 %vm729_vm0, %v6342_v0 }
 0xf63   : > { %v2126_v36 = vpop.f32.mrf.mxu3 }
 0xf64   : > { %v2127_v37 = vadd.f32 %v2126_v36, %v6419_v14  ;;  %v2326_v36 = vsel %vm821_vm1, %v2318_v33, 0 }
 0xf65   : > { %2334 = vmatpush.bf16.xpose.msra.mxu3 %v2326_v36 }
 0xf66   : > { %v2131_v38 = vsel %vm729_vm0, %v2127_v37, -inf }
 0xf67   : > { %2132 = vmax.xlane.f32.xlu1 %v2131_v38 }
 0xf6b   : > { %v2128_v39 = vpop.f32.mrf.mxu3 }
 0xf6c   : > { %v2129_v40 = vadd.f32 %v2128_v39, %v6426_v19 }
 0xf6e   : > { %v2134_v41 = vsel %vm729_vm0, %v2129_v40, -inf  ;;  %4988 = vmatmul.msk.bf16.gmra.mxu2 %vm729_vm0, %v6349_v15 }
 0xf6f   : > { %2135 = vmax.xlane.f32.xlu2 %v2134_v41 }
 0xfd1   : > { %v6541_v43 = vpop.f32.mrf.mxu2 }
 0xfd9   : > { %v6548_v46 = vpop.f32.mrf.mxu2 }
 0xfda   : > { %v2133_v47 = vpop.xlane.xlu1 %2132 }
 0xfdb   : > { %v2137_v48 = vsub.f32 %v2127_v37, %v2133_v47  ;;  %v2317_v37 = vpack.c.bf16 %v2268_v32, %v2266_v30  ;;  %v5039_v30 = vld [vmem:[%s7259_s10 + $0xc] sm:$0xf] }
 0xfdc   : > { %v2391_v32 = vsel %vm1063_vm3, %v5039_v30, 0 }
 0xfdd   : > { %v2139_v49 = vmul.f32 1.442695, %v2137_v48  ;;  %v2323_v38 = vsel %vm821_vm1, %v2317_v37, 0 }
 0xfde   : > { %2335 = vmatpush.bf16.xpose.msra.mxu3 %v2323_v38  ;;  %v5683_v38 = vld [vmem:[%s7260_s11] ss:$0 sm:$0xff] }
 0xfdf   : > { %5771 = vpow2.f32 %v2139_v49 }
 0xfe1   : > { %v2095_v51 = vpop.f32.mrf.mxu2 }
 0xfe2   : > { %v2136_v52 = vpop.xlane.xlu2 %2135  ;;  %v2096_v2 = vadd.f32 %v5679_v62, %v2095_v51 }
 0xfe3   : > { %v2138_v53 = vsub.f32 %v2129_v40, %v2136_v52  ;;  %v1983_v52 = vadd.f32 %v6526_v34, %v6541_v43 }
 0xfe5   : > { %v5772_v54 = vpop.eup %5771  ;;  %v2141_v55 = vmul.f32 1.442695, %v2138_v53 }
 0xfe6   : > { %v2143_v58 = vsel %vm729_vm0, %v5772_v54, 0.0 }
 0xfe7   : > { %5773 = vpow2.f32 %v2141_v55  ;;  %2144 = vadd.xlane.f32.xlu0 %v2143_v58 }
 0xfe9   : > { %v2097_v11 = vpop.f32.mrf.mxu2 }
 0xfea   : > { %v2098_v7 = vadd.f32 %v5679_v62, %v2097_v11 }
 0xfec   : > { %v2154_v12 = vpack.c.bf16 %v2098_v7, %v2096_v2 }
 0xfed   : > { %v5774_v31 = vpop.eup %5773 }
 0xfee   : > { %v2146_v5 = vsel %vm729_vm0, %v5774_v31, 0.0 }
 0xfef   : > { %2147 = vadd.xlane.f32.xlu1 %v2146_v5 }
 0xff1   : > { %v2100_v61 = vpop.f32.mrf.mxu2 }
 0xff2   : > { %v2101_v63 = vadd.f32 %v5679_v62, %v2100_v61 }
 0xff9   : > { %v2102_v1 = vpop.f32.mrf.mxu2 }
 0xffa   : > { %v2103_v8 = vadd.f32 %v5679_v62, %v2102_v1 }
 0xffc   : > { %v2155_v10 = vpack.c.bf16 %v2103_v8, %v2101_v63 }
 0xffe   : > { %2165 = vmatpush.bf16.msra.mxu0 %v2155_v10 }
0x1002   : > { %2166 = vmatpush.bf16.msra.mxu0 %v2154_v12 }
0x1006   : > { %2226 = vmatpush.bf16.msrb.mxu0 %v5546_v13 }
0x100a   : > { %2227 = vmatpush.bf16.msrb.mxu0 %v5545_v16 }
0x105a   : > { %v2145_v17 = vpop.xlane.xlu0 %2144 }
0x105b   : > { %5775 = vrcp.f32 %v2145_v17 }
0x1061   : > { %v5776_v24 = vpop.eup %5775 }
0x1062   : > { %v2148_v21 = vpop.xlane.xlu1 %2147  ;;  %v2151_v25 = vmul.f32 %v5776_v24, %v5772_v54  ;;  %v5549_v54 = vld [vmem:[%s7257_s8 + $0xb0] sm:$0xff] }
0x1063   : > { %5777 = vrcp.f32 %v2148_v21 }
0x1069   : > { %v5778_v6 = vpop.eup %5777 }
0x106a   : > { %v2152_v26 = vmul.f32 %v5778_v6, %v5774_v31 }
0x106c   : > { %v2153_v23 = vpack.c.bf16 %v2152_v26, %v2151_v25 }
0x106e   : > { %4990 = vmatmul.msk.bf16.vlgmr.msra.gmra.mxu0 %vm729_vm0, %v2153_v23 }
0x107e   : > { %5006 = vmatmul.msk.bf16.vlgmr.msrb.gmra.mxu0 %vm729_vm0, %v6388_v4  ;;  %v5550_v4 = vld [vmem:[%s7257_s8 + $0xb8] sm:$0xff] }
0x107f   : > { %2303 = vmatpush.bf16.msra.mxu2 %v5550_v4 }
0x1083   : > { %2304 = vmatpush.bf16.msra.mxu2 %v5549_v54 }
0x1086   : > { %5035 = vmatmul.msk.bf16.vlgmr.msra.gmra.mxu2 %vm729_vm0, %v6342_v0 }
0x1096   : > { %5036 = vmatmul.msk.bf16.gmra.mxu2 %vm729_vm0, %v6349_v15 }
0x10eb   : > { %v2168_v39 = vpop.f32.mrf.mxu0 }
0x10f3   : > { %v2170_v40 = vpop.f32.mrf.mxu0 }
0x10f4   : > { %v2173_v41 = vpack.c.bf16 %v2170_v40, %v2168_v39 }
0x10f6   : > { %4992 = vmatmul.msk.bf16.vlgmr.msrb.gmra.mxu3 %vm821_vm1, %v2173_v41 }
0x10f7   : > { %2400 = vmatpush.bf16.msrb.mxu3 %v2391_v32  ;;  %v5684_v32 = vld [vmem:[%s7262_s13] ss:$0 sm:$0xff] }
0x10fb   : > { %v2229_v42 = vpop.f32.mrf.mxu0 }
0x10fc   : > { %v2230_v48 = vadd.f32 %v5681_v44, %v2229_v42  ;;  %v1985_v42 = vadd.f32 %v6528_v35, %v6548_v46 }
0x1103   : > { %v2231_v47 = vpop.f32.mrf.mxu0 }
0x1104   : > { %v2232_v49 = vadd.f32 %v5681_v44, %v2231_v47 }
0x1106   : > { %v2316_v51 = vpack.c.bf16 %v2232_v49, %v2230_v48 }
0x1108   : > { %5037 = vmatmul.msk.bf16.vlgmr.msra.gmra.mxu3 %vm821_vm1, %v2316_v51 }
0x1109   : > { %v2306_v1 = vpop.f32.mrf.mxu2 }
0x110a   : > { %v2307_v21 = vadd.f32 %v5682_v18, %v2306_v1 }
0x1179   : > { %v2191_v53 = vpop.f32.mrf.mxu3 }
0x117a   : > { %v2196_v55 = vadd.f32 %v2191_v53, %v1983_v52 }
0x1181   : > { %v2193_v58 = vpop.f32.mrf.mxu3 }
0x1182   : > { %v2197_v47 = vadd.f32 %v2193_v58, %v1985_v42 }
0x118b   : > { %v2337_v11 = vpop.f32.mrf.mxu3 }
0x118c   : > { %v2338_v31 = vadd.f32 %v2337_v11, %v6419_v14  ;;  %v2308_v14 = vpop.f32.mrf.mxu2 }
0x118d   : > { %v2309_v22 = vadd.f32 %v5682_v18, %v2308_v14 }
0x118e   : > { %v2342_v5 = vsel %vm729_vm0, %v2338_v31, -inf }
0x118f   : > { %2343 = vmax.xlane.f32.xlu2 %v2342_v5  ;;  %v2365_v25 = vpack.c.bf16 %v2309_v22, %v2307_v21 }
0x1193   : > { %v2339_v34 = vpop.f32.mrf.mxu3 }
0x1194   : > { %v2340_v43 = vadd.f32 %v2339_v34, %v6426_v19  ;;  %v2311_v16 = vpop.f32.mrf.mxu2 }
0x1195   : > { %v2312_v9 = vadd.f32 %v5682_v18, %v2311_v16 }
0x1196   : > { %v2345_v61 = vsel %vm729_vm0, %v2340_v43, -inf }
0x1197   : > { %2346 = vmax.xlane.f32.xlu0 %v2345_v61 }
0x119c   : > { %v2313_v20 = vpop.f32.mrf.mxu2 }
0x119d   : > { %v2314_v24 = vadd.f32 %v5682_v18, %v2313_v20 }
0x119f   : > { %v2366_v6 = vpack.c.bf16 %v2314_v24, %v2312_v9 }
0x11a1   : > { %2376 = vmatpush.bf16.msra.mxu0 %v2366_v6 }
0x11a5   : > { %2377 = vmatpush.bf16.msra.mxu0 %v2365_v25 }
0x1202   : > { %v2344_v62 = vpop.xlane.xlu2 %2343 }
0x1203   : > { %v2348_v63 = vsub.f32 %v2338_v31, %v2344_v62 }
0x1205   : > { %v2350_v2 = vmul.f32 1.442695, %v2348_v63  ;;  %v5551_v63 = vld [vmem:[%s7261_s12] sm:$0xff] }
0x1207   : > { %5779 = vpow2.f32 %v2350_v2 }
0x120a   : > { %v2347_v7 = vpop.xlane.xlu0 %2346 }
0x120b   : > { %v2349_v8 = vsub.f32 %v2340_v43, %v2347_v7 }
0x120d   : > { %v5780_v10 = vpop.eup %5779  ;;  %v2352_v12 = vmul.f32 1.442695, %v2349_v8 }
0x120e   : > { %v2354_v13 = vsel %vm729_vm0, %v5780_v10, 0.0 }
0x120f   : > { %5781 = vpow2.f32 %v2352_v12  ;;  %2355 = vadd.xlane.f32.xlu1 %v2354_v13 }
0x1215   : > { %v5782_v17 = vpop.eup %5781 }
0x1216   : > { %v2357_v19 = vsel %vm729_vm0, %v5782_v17, 0.0 }
0x1217   : > { %2358 = vadd.xlane.f32.xlu2 %v2357_v19 }
0x1282   : > { %v2356_v26 = vpop.xlane.xlu1 %2355 }
0x1283   : > { %5783 = vrcp.f32 %v2356_v26 }
0x1289   : > { %v5784_v28 = vpop.eup %5783 }
0x128a   : > { %v2359_v23 = vpop.xlane.xlu2 %2358  ;;  %v2362_v29 = vmul.f32 %v5784_v28, %v5780_v10 }
0x128b   : > { %5785 = vrcp.f32 %v2359_v23 }
0x1291   : > { %v5786_v27 = vpop.eup %5785 }
0x1292   : > { %v2363_v56 = vmul.f32 %v5786_v27, %v5782_v17 }
0x1294   : > { %v2364_v57 = vpack.c.bf16 %v2363_v56, %v2362_v29  ;;  %v5556_v56 = vld [vmem:[%s7263_s14 + $0x18] sm:$0xff] }
0x1295   : > { %2550 = vmatpush.bf16.msra.mxu1 %v5556_v56 }
0x1296   : > { %5038 = vmatmul.msk.bf16.vlgmr.msra.gmra.mxu0 %vm729_vm0, %v2364_v57  ;;  %v5555_v57 = vld [vmem:[%s7263_s14 + $0x10] sm:$0xff] }
0x1299   : > { %2551 = vmatpush.bf16.msra.mxu1 %v5555_v57  ;;  %v5871_v57 = vld [vmem:[%s7265_s16] ss:$0 sm:$0xff] }
0x1313   : > { %v2379_v33 = vpop.f32.mrf.mxu0 }
0x131b   : > { %v2381_v36 = vpop.f32.mrf.mxu0 }
0x131c   : > { %v2384_v37 = vpack.c.bf16 %v2381_v36, %v2379_v33 }
0x131e   : > { %5040 = vmatmul.msk.bf16.vlgmr.msrb.gmra.mxu3 %vm821_vm1, %v2384_v37 }
0x13a1   : > { %v2402_v39 = vpop.f32.mrf.mxu3 }
0x13a2   : > { %v2407_v40 = vadd.f32 %v2402_v39, %v2196_v55 }
0x13a4   : > { %v2413_v41 = vadd.f32 %v5683_v38, %v2407_v40 }
0x13a6   : > { %v2415_v44 = vadd.f32 %v2413_v41, %v6380_v59  ;;  %v5685_v41 = vld [vmem:[%s7264_s15] ss:$0 sm:$0xff] }
0x13a8   : > { %v2417_v48 = vsel %vm729_vm0, %v2415_v44, 0.0 }
0x13a9   : > { %v2404_v49 = vpop.f32.mrf.mxu3  ;;  %2418 = vadd.xlane.f32.xlu0 %v2417_v48 }
0x13aa   : > { %v2408_v51 = vadd.f32 %v2404_v49, %v2197_v47 }
0x13ac   : > { %v2414_v4 = vadd.f32 %v5683_v38, %v2408_v51 }
0x13ae   : > { %v2416_v52 = vadd.f32 %v2414_v4, %v6383_v60  ;;  %v5552_v60 = vld [vmem:[%s7261_s12 + $0x8] sm:$0xff] }
0x13af   : > { %2495 = vmatpush.bf16.msrb.mxu0 %v5552_v60  ;;  %v5560_v60 = vld [vmem:[%s7296_s21 + $0x108] sm:$0xff] }
0x13b0   : > { %v2420_v53 = vsel %vm729_vm0, %v2416_v52, 0.0  ;;  %2682 = vmatpush.bf16.msra.mxu3 %v5560_v60 }
0x13b1   : > { %2421 = vadd.xlane.f32.xlu1 %v2420_v53 }
0x13b3   : > { %2496 = vmatpush.bf16.msrb.mxu0 %v5551_v63 }
0x141c   : > { %v2419_v54 = vpop.xlane.xlu0 %2418 }
0x141d   : > { %v2423_v55 = vmul.f32 %v2419_v54, %v6346_v3 }
0x141f   : > { %v2425_v11 = vsub.f32 %v2415_v44, %v2423_v55 }
0x1421   : > { %v2427_v31 = vmul.f32 %v2425_v11, %v2425_v11 }
0x1423   : > { %v2429_v35 = vsel %vm729_vm0, %v2427_v31, 0.0 }
0x1424   : > { %v2422_v59 = vpop.xlane.xlu1 %2421  ;;  %2430 = vadd.xlane.f32.xlu2 %v2429_v35 }
0x1425   : > { %v2424_v46 = vmul.f32 %v2422_v59, %v6346_v3 }
0x1427   : > { %v2426_v58 = vsub.f32 %v2416_v52, %v2424_v46 }
0x1429   : > { %v2428_v5 = vmul.f32 %v2426_v58, %v2426_v58 }
0x142b   : > { %v2432_v34 = vsel %vm729_vm0, %v2428_v5, 0.0 }
0x142c   : > { %2433 = vadd.xlane.f32.xlu0 %v2432_v34  ;;  %v5558_v34 = vld [vmem:[%s7296_s21 + $0xc8] sm:$0xff] }
0x142d   : > { %2646 = vmatpush.bf16.msrb.mxu2 %v5558_v34 }
0x1497   : > { %v2431_v43 = vpop.xlane.xlu2 %2430 }
0x1498   : > { %v2435_v61 = vmul.f32 %v2431_v43, %v6346_v3  ;;  %v5562_v43 = vld [vmem:[%s7296_s21 + $0x148] sm:$0xff] }
0x1499   : > { %2718 = vmatpush.bf16.msra.mxu0 %v5562_v43 }
0x149a   : > { %v2437_v62 = vadd.f32 1e-05, %v2435_v61 }
0x149c   : > { %5787 = vrsqrt.f32 %v2437_v62  ;;  %vm2445_vm12 = vweird.f32 %v2437_v62 }
0x149f   : > { %v2434_v1 = vpop.xlane.xlu0 %2433 }
0x14a0   : > { %v2436_v2 = vmul.f32 %v2434_v1, %v6346_v3  ;;  %v5557_v1 = vld [vmem:[%s7296_s21 + $0xc0] sm:$0xff] }
0x14a1   : > { %2647 = vmatpush.bf16.msrb.mxu2 %v5557_v1 }
0x14a2   : > { %v5788_v7 = vpop.eup %5787  ;;  %v2438_v8 = vadd.f32 1e-05, %v2436_v2  ;;  %v5559_v2 = vld [vmem:[%s7296_s21 + $0x100] sm:$0xff] }
0x14a3   : > { %v2440_v14 = vmul.f32 %v5788_v7, %v2437_v62  ;;  %vm2446_vm11 = vweird.f32 %v5788_v7  ;;  %2683 = vmatpush.bf16.msra.mxu3 %v5559_v2  ;;  %v6738_v2 = vld [vmem:[%s6155_s27] sm:$0xff] }
0x14a4   : > { %5789 = vrsqrt.f32 %v2438_v8  ;;  %vm2447_vm13 = vmor %vm2445_vm12, %vm2446_vm11  ;;  %vm2455_vm15 = vweird.f32 %v2438_v8 }
0x14a5   : > { %v2441_v10 = vmul.f32 %v5788_v7, %v2440_v14  ;;  %v5564_v14 = vld [vmem:[%s7296_s21 + $0xd8] sm:$0xff] }
0x14a7   : > { %v2442_v12 = vmul.f32 0.5, %v2441_v10  ;;  %v5566_v10 = vld [vmem:[%s7296_s21 + $0x118] sm:$0xff]  ;;  %2820 = vmatpush.bf16.msrb.mxu3 %v5564_v14 }
0x14a9   : > { %v2443_v13 = vsub.f32 1.5, %v2442_v12 }
0x14aa   : > { %v5790_v16 = vpop.eup %5789 }
0x14ab   : > { %v2444_v17 = vmul.f32 %v5788_v7, %v2443_v13  ;;  %v2450_v19 = vmul.f32 %v5790_v16, %v2438_v8  ;;  %vm2456_vm14 = vweird.f32 %v5790_v16  ;;  %v5563_v13 = vld [vmem:[%s7296_s21 + $0xd0] sm:$0xff] }
0x14ac   : > { %vm2457_vm4 = vmor %vm2455_vm15, %vm2456_vm14  ;;  %2821 = vmatpush.bf16.msrb.mxu3 %v5563_v13 }
0x14ad   : > { %v2451_v18 = vmul.f32 %v5790_v16, %v2450_v19  ;;  %v2448_v9 = vsel %vm2447_vm13, %v5788_v7, %v2444_v17  ;;  %v5561_v7 = vld [vmem:[%s7296_s21 + $0x140] sm:$0xff] }
0x14ae   : > { %v2459_v22 = vmul.f32 %v2448_v9, %v2425_v11  ;;  %2719 = vmatpush.bf16.msra.mxu0 %v5561_v7 }
0x14af   : > { %v2452_v20 = vmul.f32 0.5, %v2451_v18 }
0x14b0   : > { %v2461_v25 = vmul.f32 %v6370_v45, %v2459_v22 }
0x14b1   : > { %v2453_v21 = vsub.f32 1.5, %v2452_v20 }
0x14b2   : > { %v2463_v28 = vadd.f32 %v6375_v50, %v2461_v25 }
0x14b3   : > { %v2454_v24 = vmul.f32 %v5790_v16, %v2453_v21 }
0x14b5   : > { %v2458_v6 = vsel %vm2457_vm4, %v5790_v16, %v2454_v24  ;;  %v5565_v16 = vld [vmem:[%s7296_s21 + $0x110] sm:$0xff] }
0x14b6   : > { %v2460_v26 = vmul.f32 %v2458_v6, %v2426_v58 }
0x14b8   : > { %v2462_v23 = vmul.f32 %v6370_v45, %v2460_v26  ;;  %v5554_v45 = vld [vmem:[%s7263_s14 + $0x8] sm:$0xff] }
0x14b9   : > { %2552 = vmatpush.bf16.msra.mxu1 %v5554_v45 }
0x14ba   : > { %v2464_v27 = vadd.f32 %v6375_v50, %v2462_v23  ;;  %v5553_v50 = vld [vmem:[%s7263_s14] sm:$0xff] }
0x14bc   : > { %v2465_v29 = vpack.c.bf16 %v2464_v27, %v2463_v28 }
0x14bd   : > { %2553 = vmatpush.bf16.msra.mxu1 %v5553_v50 }
0x14be   : > { %5049 = vmatmul.msk.bf16.vlgmr.msrb.gmra.mxu0 %vm729_vm0, %v2465_v29 }
0x14bf   : > { %2856 = vmatpush.bf16.msrb.mxu0 %v5566_v10  ;;  %v6743_v10 = vld [vmem:[%s6155_s27 + $0x8] sm:$0xff]  ;;  %s5898_s27 = scalar_lea.hbm %s7305_s25, 32 }
0x14c0   : > { %p5900_p3 = scmp.lt.s32.totalorder %s5898_s27, %s5894_s29 }
0x14c2   : > { %p5901_p4 = por %p5900_p3, %p5899_p2 }
0x14c3   : > { %2857 = vmatpush.bf16.msrb.mxu0 %v5565_v16 }
0x14c4   : > { %p5902_p7 = pnand %p5901_p4, %p5897_p1 }
0x153b   : > { %v2498_v30 = vpop.f32.mrf.mxu0 }
0x153c   : > { %v2499_v33 = vadd.f32 %v5684_v32, %v2498_v30 }
0x153e   : > { %v2503_v38 = vmax.f32 %v2499_v33, 0.0 }
0x1543   : > { %v2500_v36 = vpop.f32.mrf.mxu0 }
0x1544   : > { %v2501_v37 = vadd.f32 %v5684_v32, %v2500_v36  ;;  %v5872_v32 = vld [vmem:[%s7266_s17] ss:$0 sm:$0xff] }
0x1546   : > { %v2504_v39 = vmax.f32 %v2501_v37, 0.0 }
0x1548   : > { %v2505_v40 = vpack.c.bf16 %v2504_v39, %v2503_v38  ;;  %v5686_v39 = vld [vmem:[%s7298_s5 + $0x14] ss:$0 sm:$0xff] }
0x154a   : > { %5066 = vmatmul.msk.bf16.vlgmr.msra.gmra.mxu1 %vm2542_vm5, %v2505_v40 }
0x15c7   : > { %v2555_v42 = vpop.f32.mrf.mxu1 }
0x15c8   : > { %v2556_v44 = vadd.f32 %v5685_v41, %v2555_v42 }
0x15ca   : > { %v2560_v47 = vadd.f32 %v2556_v44, %v2463_v28 }
0x15cc   : > { %v2562_v48 = vsel %vm729_vm0, %v2560_v47, 0.0 }
0x15cd   : > { %2563 = vadd.xlane.f32.xlu1 %v2562_v48  ;;  %v5688_v48 = vld [vmem:[%s7298_s5 + $0x10] ss:$0 sm:$0xff] }
0x15cf   : > { %v2557_v49 = vpop.f32.mrf.mxu1 }
0x15d0   : > { %v2558_v51 = vadd.f32 %v5685_v41, %v2557_v49 }
0x15d2   : > { %v2561_v4 = vadd.f32 %v2558_v51, %v2464_v27 }
0x15d4   : > { %v2565_v52 = vsel %vm729_vm0, %v2561_v4, 0.0 }
0x15d5   : > { %2566 = vadd.xlane.f32.xlu2 %v2565_v52 }
0x1640   : > { %v2564_v53 = vpop.xlane.xlu1 %2563 }
0x1641   : > { %v2568_v54 = vmul.f32 %v2564_v53, %v6346_v3 }
0x1643   : > { %v2570_v55 = vsub.f32 %v2560_v47, %v2568_v54 }
0x1645   : > { %v2572_v11 = vmul.f32 %v2570_v55, %v2570_v55 }
0x1647   : > { %v2574_v31 = vsel %vm729_vm0, %v2572_v11, 0.0 }
0x1648   : > { %v2567_v35 = vpop.xlane.xlu2 %2566  ;;  %2575 = vadd.xlane.f32.xlu0 %v2574_v31  ;;  %v5687_v31 = vld [vmem:[%s7298_s5 + $0xc] ss:$0 sm:$0xff] }
0x1649   : > { %v2569_v59 = vmul.f32 %v2567_v35, %v6346_v3 }
0x164b   : > { %v2571_v46 = vsub.f32 %v2561_v4, %v2569_v59 }
0x164d   : > { %v2573_v58 = vmul.f32 %v2571_v46, %v2571_v46 }
0x164f   : > { %v2577_v5 = vsel %vm729_vm0, %v2573_v58, 0.0  ;;  %v5689_v58 = vld [vmem:[%s7298_s5 + $0x11] ss:$0 sm:$0xff] }
0x1650   : > { %2578 = vadd.xlane.f32.xlu1 %v2577_v5 }
0x16bb   : > { %v2576_v61 = vpop.xlane.xlu0 %2575 }
0x16bc   : > { %v2580_v62 = vmul.f32 %v2576_v61, %v6346_v3 }
0x16be   : > { %v2582_v63 = vadd.f32 1e-05, %v2580_v62 }
0x16c0   : > { %5791 = vrsqrt.f32 %v2582_v63  ;;  %vm2590_vm7 = vweird.f32 %v2582_v63 }
0x16c3   : > { %v2579_v8 = vpop.xlane.xlu1 %2578 }
0x16c4   : > { %v2581_v12 = vmul.f32 %v2579_v8, %v6346_v3 }
0x16c6   : > { %v5792_v17 = vpop.eup %5791  ;;  %v2583_v19 = vadd.f32 1e-05, %v2581_v12 }
0x16c7   : > { %v2585_v18 = vmul.f32 %v5792_v17, %v2582_v63  ;;  %vm2591_vm6 = vweird.f32 %v5792_v17 }
0x16c8   : > { %5793 = vrsqrt.f32 %v2583_v19  ;;  %vm2592_vm8 = vmor %vm2590_vm7, %vm2591_vm6  ;;  %vm2600_vm10 = vweird.f32 %v2583_v19 }
0x16c9   : > { %v2586_v9 = vmul.f32 %v5792_v17, %v2585_v18 }
0x16cb   : > { %v2587_v20 = vmul.f32 0.5, %v2586_v9 }
0x16cd   : > { %v2588_v21 = vsub.f32 1.5, %v2587_v20 }
0x16ce   : > { %v5794_v22 = vpop.eup %5793 }
0x16cf   : > { %v2589_v24 = vmul.f32 %v5792_v17, %v2588_v21  ;;  %v2595_v6 = vmul.f32 %v5794_v22, %v2583_v19  ;;  %vm2601_vm9 = vweird.f32 %v5794_v22 }
0x16d0   : > { %vm2602_vm11 = vmor %vm2600_vm10, %vm2601_vm9 }
0x16d1   : > { %v2596_v25 = vmul.f32 %v5794_v22, %v2595_v6  ;;  %v2593_v26 = vsel %vm2592_vm8, %v5792_v17, %v2589_v24  ;;  %v5691_v17 = vld [vmem:[%s7298_s5 + $0x15] ss:$0 sm:$0xff] }
0x16d2   : > { %v2604_v27 = vmul.f32 %v2593_v26, %v2570_v55  ;;  %v5568_v55 = vld [vmem:[%s7296_s21 + $0x158] sm:$0xff] }
0x16d3   : > { %v2597_v23 = vmul.f32 0.5, %v2596_v25 }
0x16d4   : > { %v2606_v45 = vmul.f32 %v5871_v57, %v2604_v27 }
0x16d5   : > { %v2598_v28 = vsub.f32 1.5, %v2597_v23 }
0x16d6   : > { %v6696_v33 = vadd.f32 %v5872_v32, %v2606_v45 }
0x16d7   : > { %v2599_v29 = vmul.f32 %v5794_v22, %v2598_v28 }
0x16d9   : > { %v2603_v56 = vsel %vm2602_vm11, %v5794_v22, %v2599_v29 }
0x16da   : > { %v2605_v50 = vmul.f32 %v2603_v56, %v2571_v46  ;;  %v5567_v46 = vld [vmem:[%s7296_s21 + $0x150] sm:$0xff] }
0x16dc   : > { %v2607_v30 = vmul.f32 %v5871_v57, %v2605_v50 }
0x16de   : > { %v6698_v36 = vadd.f32 %v5872_v32, %v2607_v30 }
0x16e0   : > { %v6702_v37 = vpack.c.bf16 %v6698_v36, %v6696_v33 }
0x16e2   : > { %5082 = vmatmul.msk.bf16.vlgmr.msrb.gmra.mxu2 %vm729_vm0, %v6702_v37  ;;  %5096 = vmatmul.msk.bf16.vlgmr.msra.gmra.mxu3 %vm729_vm0, %v6702_v37 }
0x16e3   : > { %5110 = vmatmul.msk.bf16.vlgmr.msra.gmra.mxu0 %vm729_vm0, %v6702_v37 }
0x16f2   : > { %5127 = vmatmul.msk.bf16.vlgmr.msrb.gmra.mxu3 %vm729_vm0, %v6702_v37 }
0x16f3   : > { %5141 = vmatmul.msk.bf16.vlgmr.msrb.gmra.mxu0 %vm729_vm0, %v6702_v37 }
0x1760   : > { %v2721_v38 = vpop.f32.mrf.mxu0 }
0x1761   : > { %v2722_v44 = vadd.f32 %v5686_v39, %v2721_v38 }
0x1765   : > { %v2685_v40 = vpop.f32.mrf.mxu3  ;;  %v2649_v41 = vpop.f32.mrf.mxu2 }
0x1766   : > { %v2686_v4 = vadd.f32 %v5688_v48, %v2685_v40  ;;  %v2650_v5 = vadd.f32 %v5687_v31, %v2649_v41  ;;  %v5569_v41 = vld [vmem:[%s7296_s21 + $0xe0] sm:$0xff] }
0x1768   : > { %v2723_v42 = vpop.f32.mrf.mxu0 }
0x1769   : > { %v2724_v47 = vadd.f32 %v5686_v39, %v2723_v42  ;;  %v5570_v39 = vld [vmem:[%s7296_s21 + $0xe8] sm:$0xff] }
0x176b   : > { %v2771_v49 = vpack.c.bf16 %v2724_v47, %v2722_v44  ;;  %v5690_v44 = vld [vmem:[%s7298_s5 + $0xd] ss:$0 sm:$0xff] }
0x176d   : > { %2782 = vmatpush.bf16.msra.mxu2 %v2771_v49  ;;  %v2687_v51 = vpop.f32.mrf.mxu3  ;;  %v2651_v11 = vpop.f32.mrf.mxu2 }
0x176e   : > { %v2688_v52 = vadd.f32 %v5688_v48, %v2687_v51  ;;  %v2652_v59 = vadd.f32 %v5687_v31, %v2651_v11  ;;  %v5113_v51 = vld [vmem:[%s7300_s6 + $0x10] sm:$0xf] }
0x1770   : > { %v2727_v53 = vpack.c.bf16 %v2688_v52, %v2686_v4  ;;  %v2859_v54 = vpop.f32.mrf.mxu0  ;;  %v2726_v34 = vpack.c.bf16 %v2652_v59, %v2650_v5  ;;  %v2990_v4 = vsel %vm1063_vm3, %v5113_v51, 0 }
0x1771   : > { %v2860_v43 = vadd.f32 %v5689_v58, %v2859_v54 }
0x1772   : > { %v2732_v35 = vsel %vm821_vm1, %v2727_v53, 0 }
0x1773   : > { %2741 = vmatpush.bf16.xpose.msrb.mxu1 %v2732_v35 }
0x1775   : > { %v2823_v38 = vpop.f32.mrf.mxu3 }
0x1776   : > { %v2824_v48 = vadd.f32 %v5690_v44, %v2823_v38 }
0x1778   : > { %v2861_v60 = vpop.f32.mrf.mxu0 }
0x1779   : > { %v2862_v61 = vadd.f32 %v5689_v58, %v2861_v60 }
0x177a   : > { %5111 = vmatmul.msk.bf16.vlgmr.msrb.gmra.mxu1 %vm821_vm1, %v2726_v34 }
0x177b   : > { %2892 = vmatpush.bf16.msra.mxu1 %v5568_v55  ;;  %v2901_v62 = vpack.c.bf16 %v2862_v61, %v2860_v43 }
0x177d   : > { %v2906_v63 = vsel %vm821_vm1, %v2901_v62, 0  ;;  %v2825_v42 = vpop.f32.mrf.mxu3 }
0x177e   : > { %2915 = vmatpush.bf16.xpose.msrb.mxu2 %v2906_v63  ;;  %v2826_v47 = vadd.f32 %v5690_v44, %v2825_v42  ;;  %v5577_v42 = vld [vmem:[%s7296_s21 + $0x130] sm:$0xff] }
0x177f   : > { %2893 = vmatpush.bf16.msra.mxu1 %v5567_v46 }
0x1780   : > { %v2900_v49 = vpack.c.bf16 %v2826_v47, %v2824_v48 }
0x1783   : > { %2999 = vmatpush.bf16.msrb.mxu1 %v2990_v4 }
0x178a   : > { %5155 = vmatmul.msk.bf16.vlgmr.msra.gmra.mxu1 %vm729_vm0, %v6702_v37 }
0x17f7   : > { %v2743_v1 = vpop.f32.mrf.mxu1 }
0x17f8   : > { %v2744_v7 = vadd.f32 %v6738_v2, %v2743_v1 }
0x17fa   : > { %v2748_v8 = vsel %vm842_vm2, %v2744_v7, -inf }
0x17fb   : > { %2749 = vmax.xlane.f32.xlu2 %v2748_v8  ;;  %v5572_v8 = vld [vmem:[%s7296_s21 + $0x128] sm:$0xff] }
0x17ff   : > { %v2745_v14 = vpop.f32.mrf.mxu1 }
0x1800   : > { %v2746_v12 = vadd.f32 %v6743_v10, %v2745_v14  ;;  %v5571_v14 = vld [vmem:[%s7296_s21 + $0x120] sm:$0xff] }
0x1802   : > { %v2751_v13 = vsel %vm842_vm2, %v2746_v12, -inf }
0x1803   : > { %2752 = vmax.xlane.f32.xlu0 %v2751_v13 }
0x1807   : > { %v2895_v16 = vpop.f32.mrf.mxu1 }
0x1808   : > { %v2896_v18 = vadd.f32 %v5691_v17, %v2895_v16 }
0x180f   : > { %v2897_v19 = vpop.f32.mrf.mxu1 }
0x1810   : > { %v2898_v9 = vadd.f32 %v5691_v17, %v2897_v19 }
0x1812   : > { %v2945_v20 = vpack.c.bf16 %v2898_v9, %v2896_v18 }
0x1814   : > { %2956 = vmatpush.bf16.msra.mxu3 %v2945_v20  ;;  %v5158_v20 = vld [vmem:[%s7300_s6 + $0x14] sm:$0xf] }
0x1818   : > { %3070 = vmatpush.bf16.msrb.mxu3 %v5572_v8 }
0x181c   : > { %3071 = vmatpush.bf16.msrb.mxu3 %v5571_v14 }
0x186e   : > { %v2750_v21 = vpop.xlane.xlu2 %2749 }
0x186f   : > { %v2754_v22 = vsub.f32 %v2744_v7, %v2750_v21  ;;  %v2970_v21 = vsel %vm1063_vm3, %v5158_v20, 0 }
0x1870   : > { %2979 = vmatpush.bf16.msra.mxu0 %v2970_v21 }
0x1871   : > { %v2756_v24 = vmul.f32 1.442695, %v2754_v22  ;;  %v5574_v22 = vld [vmem:[%s7296_s21 + $0x168] sm:$0xff] }
0x1873   : > { %5795 = vpow2.f32 %v2756_v24  ;;  %v5573_v24 = vld [vmem:[%s7296_s21 + $0x160] sm:$0xff] }
0x1874   : > { %3106 = vmatpush.bf16.msrb.mxu0 %v5574_v22 }
0x1876   : > { %v2753_v6 = vpop.xlane.xlu0 %2752 }
0x1877   : > { %v2755_v25 = vsub.f32 %v2746_v12, %v2753_v6 }
0x1878   : > { %3107 = vmatpush.bf16.msrb.mxu0 %v5573_v24  ;;  %v5580_v24 = vld [vmem:[%s7296_s21 + $0x178] sm:$0xff] }
0x1879   : > { %v5796_v26 = vpop.eup %5795  ;;  %v2758_v23 = vmul.f32 1.442695, %v2755_v25 }
0x187a   : > { %v2760_v28 = vsel %vm842_vm2, %v5796_v26, 0.0 }
0x187b   : > { %5797 = vpow2.f32 %v2758_v23  ;;  %2761 = vadd.xlane.f32.xlu1 %v2760_v28  ;;  %v5575_v28 = vld [vmem:[%s7296_s21 + $0xf0] sm:$0xff] }
0x1881   : > { %v5798_v27 = vpop.eup %5797 }
0x1882   : > { %v2763_v29 = vsel %vm842_vm2, %v5798_v27, 0.0 }
0x1883   : > { %2764 = vadd.xlane.f32.xlu2 %v2763_v29 }
0x18ee   : > { %v2762_v56 = vpop.xlane.xlu1 %2761 }
0x18ef   : > { %5799 = vrcp.f32 %v2762_v56  ;;  %v5693_v56 = vld [vmem:[%s7298_s5 + $0x12] ss:$0 sm:$0xff] }
0x18f5   : > { %v5800_v45 = vpop.eup %5799 }
0x18f6   : > { %v2765_v57 = vpop.xlane.xlu2 %2764  ;;  %v2768_v30 = vmul.f32 %v5800_v45, %v5796_v26  ;;  %v5576_v26 = vld [vmem:[%s7296_s21 + $0xf8] sm:$0xff] }
0x18f7   : > { %5801 = vrcp.f32 %v2765_v57 }
0x18fd   : > { %v5802_v50 = vpop.eup %5801 }
0x18fe   : > { %v2769_v32 = vmul.f32 %v5802_v50, %v5798_v27 }
0x1900   : > { %v2770_v40 = vpack.c.bf16 %v2769_v32, %v2768_v30  ;;  %v5578_v32 = vld [vmem:[%s7296_s21 + $0x138] sm:$0xff] }
0x1902   : > { %5112 = vmatmul.msk.bf16.vlgmr.msra.gmra.mxu2 %vm842_vm2, %v2770_v40 }
0x1903   : > { %3034 = vmatpush.bf16.msra.mxu2 %v5570_v39  ;;  %v5692_v39 = vld [vmem:[%s7298_s5 + $0xe] ss:$0 sm:$0xff] }
0x1907   : > { %3035 = vmatpush.bf16.msra.mxu2 %v5569_v41 }
0x1912   : > { %5156 = vmatmul.msk.bf16.vlgmr.msrb.gmra.mxu2 %vm821_vm1, %v2900_v49 }
0x1922   : > { %5174 = vmatmul.msk.bf16.vlgmr.msra.gmra.mxu2 %vm729_vm0, %v6702_v37 }
0x1985   : > { %v2784_v52 = vpop.f32.mrf.mxu2 }
0x198d   : > { %v2786_v53 = vpop.f32.mrf.mxu2 }
0x198e   : > { %v2789_v54 = vpack.c.bf16 %v2786_v53, %v2784_v52  ;;  %v5694_v53 = vld [vmem:[%s7298_s5 + $0x16] ss:$0 sm:$0xff] }
0x1990   : > { %5160 = vmatmul.msk.bf16.vlgmr.msrb.gmra.mxu1 %vm821_vm1, %v2789_v54  ;;  %v5205_v54 = vld [vmem:[%s7300_s6 + $0x18] sm:$0xf] }
0x1995   : > { %v2917_v55 = vpop.f32.mrf.mxu2 }
0x1996   : > { %v2918_v11 = vadd.f32 %v6738_v2, %v2917_v55  ;;  %v3184_v55 = vsel %vm1063_vm3, %v5205_v54, 0 }
0x1998   : > { %v2922_v31 = vsel %vm842_vm2, %v2918_v11, -inf }
0x1999   : > { %2923 = vmax.xlane.f32.xlu0 %v2922_v31 }
0x199d   : > { %v2919_v35 = vpop.f32.mrf.mxu2 }
0x199e   : > { %v2920_v59 = vadd.f32 %v6743_v10, %v2919_v35 }
0x19a0   : > { %v2925_v46 = vsel %vm842_vm2, %v2920_v59, -inf }
0x19a1   : > { %2926 = vmax.xlane.f32.xlu1 %v2925_v46 }
0x19a5   : > { %v3037_v29 = vpop.f32.mrf.mxu2 }
0x19a6   : > { %v3038_v44 = vadd.f32 %v5692_v39, %v3037_v29 }
0x19ad   : > { %v3039_v38 = vpop.f32.mrf.mxu2 }
0x19ae   : > { %v3040_v41 = vadd.f32 %v5692_v39, %v3039_v38  ;;  %v5695_v39 = vld [vmem:[%s7298_s5 + $0xf] ss:$0 sm:$0xff] }
0x19b0   : > { %v3114_v47 = vpack.c.bf16 %v3040_v41, %v3038_v44  ;;  %v5697_v41 = vld [vmem:[%s7298_s5 + $0x17] ss:$0 sm:$0xff] }
0x1a0c   : > { %v2924_v58 = vpop.xlane.xlu0 %2923 }
0x1a0d   : > { %v2928_v5 = vsub.f32 %v2918_v11, %v2924_v58  ;;  %v6824_v49 = vpop.f32.mrf.mxu1 }
0x1a0f   : > { %v2930_v34 = vmul.f32 1.442695, %v2928_v5 }
0x1a11   : > { %5803 = vpow2.f32 %v2930_v34 }
0x1a14   : > { %v2927_v60 = vpop.xlane.xlu1 %2926 }
0x1a15   : > { %v2929_v43 = vsub.f32 %v2920_v59, %v2927_v60  ;;  %v6828_v52 = vpop.f32.mrf.mxu1 }
0x1a17   : > { %v5804_v61 = vpop.eup %5803  ;;  %v2932_v62 = vmul.f32 1.442695, %v2929_v43 }
0x1a18   : > { %v2934_v63 = vsel %vm842_vm2, %v5804_v61, 0.0 }
0x1a19   : > { %5805 = vpow2.f32 %v2932_v62  ;;  %2935 = vadd.xlane.f32.xlu2 %v2934_v63  ;;  %v5696_v62 = vld [vmem:[%s7298_s5 + $0x13] ss:$0 sm:$0xff] }
0x1a1f   : > { %v5806_v1 = vpop.eup %5805 }
0x1a20   : > { %v2937_v7 = vsel %vm842_vm2, %v5806_v1, 0.0 }
0x1a21   : > { %2938 = vadd.xlane.f32.xlu0 %v2937_v7 }
0x1a8c   : > { %v2936_v12 = vpop.xlane.xlu2 %2935 }
0x1a8d   : > { %5807 = vrcp.f32 %v2936_v12 }
0x1a93   : > { %v5808_v16 = vpop.eup %5807 }
0x1a94   : > { %v2939_v13 = vpop.xlane.xlu0 %2938  ;;  %v2942_v19 = vmul.f32 %v5808_v16, %v5804_v61 }
0x1a95   : > { %5809 = vrcp.f32 %v2939_v13 }
0x1a9b   : > { %v5810_v17 = vpop.eup %5809 }
0x1a9c   : > { %v2943_v18 = vmul.f32 %v5810_v17, %v5806_v1 }
0x1a9e   : > { %v2944_v9 = vpack.c.bf16 %v2943_v18, %v2942_v19 }
0x1aa0   : > { %5157 = vmatmul.msk.bf16.vlgmr.msra.gmra.mxu3 %vm842_vm2, %v2944_v9 }
0x1aa1   : > { %3193 = vmatpush.bf16.msra.mxu3 %v3184_v55 }
0x1ab0   : > { %5188 = vmatmul.msk.bf16.vlgmr.msrb.gmra.mxu3 %vm729_vm0, %v6702_v37 }
0x1b23   : > { %v2958_v6 = vpop.f32.mrf.mxu3 }
0x1b2b   : > { %v2960_v25 = vpop.f32.mrf.mxu3 }
0x1b2c   : > { %v2963_v23 = vpack.c.bf16 %v2960_v25, %v2958_v6  ;;  %v5579_v6 = vld [vmem:[%s7296_s21 + $0x170] sm:$0xff] }
0x1b2e   : > { %5159 = vmatmul.msk.bf16.vlgmr.msra.gmra.mxu0 %vm821_vm1, %v2963_v23 }
0x1b2f   : > { %3230 = vmatpush.bf16.msra.mxu0 %v5576_v26 }
0x1b33   : > { %v3073_v27 = vpop.f32.mrf.mxu3  ;;  %3231 = vmatpush.bf16.msra.mxu0 %v5575_v28 }
0x1b34   : > { %v3074_v45 = vadd.f32 %v5693_v56, %v3073_v27 }
0x1b3b   : > { %v3075_v57 = vpop.f32.mrf.mxu3 }
0x1b3c   : > { %v3076_v50 = vadd.f32 %v5693_v56, %v3075_v57 }
0x1b3e   : > { %v3115_v30 = vpack.c.bf16 %v3076_v50, %v3074_v45  ;;  %5202 = vmatmul.msk.bf16.vlgmr.msrb.gmra.mxu0 %vm729_vm0, %v6702_v37 }
0x1b40   : > { %v3120_v40 = vsel %vm821_vm1, %v3115_v30, 0 }
0x1b41   : > { %3129 = vmatpush.bf16.xpose.msra.mxu1 %v3120_v40 }
0x1b48   : > { %5203 = vmatmul.msk.bf16.vlgmr.msra.gmra.mxu1 %vm821_vm1, %v3114_v47 }
0x1b49   : > { %3266 = vmatpush.bf16.msrb.mxu1 %v5578_v32 }
0x1b4d   : > { %3267 = vmatpush.bf16.msrb.mxu1 %v5577_v42 }
0x1b4e   : > { %5220 = vmatmul.msk.bf16.vlgmr.msra.gmra.mxu0 %vm729_vm0, %v6702_v37 }
0x1b58   : > { %5234 = vmatmul.msk.bf16.vlgmr.msrb.gmra.mxu1 %vm729_vm0, %v6702_v37 }
0x1bab   : > { %v6822_v48 = vpop.f32.mrf.mxu0 }
0x1bac   : > { %v3002_v54 = vadd.f32 %v6824_v49, %v6822_v48 }
0x1bb3   : > { %v6826_v51 = vpop.f32.mrf.mxu0 }
0x1bbb   : > { %v3109_v4 = vpop.f32.mrf.mxu0 }
0x1bbc   : > { %v3110_v31 = vadd.f32 %v5694_v53, %v3109_v4 }
0x1bc3   : > { %v3111_v11 = vpop.f32.mrf.mxu0 }
0x1bc4   : > { %v3112_v35 = vadd.f32 %v5694_v53, %v3111_v11 }
0x1bc5   : > { %v3131_v59 = vpop.f32.mrf.mxu1 }
0x1bc6   : > { %v3159_v46 = vpack.c.bf16 %v3112_v35, %v3110_v31  ;;  %v3132_v58 = vadd.f32 %v6738_v2, %v3131_v59  ;;  %v3004_v31 = vadd.f32 %v6828_v52, %v6826_v51 }
0x1bc8   : > { %3170 = vmatpush.bf16.msrb.mxu2 %v3159_v46  ;;  %v3136_v5 = vsel %vm842_vm2, %v3132_v58, -inf }
0x1bc9   : > { %3137 = vmax.xlane.f32.xlu1 %v3136_v5 }
0x1bcb   : > { %v3233_v45 = vpop.f32.mrf.mxu0 }
0x1bcc   : > { %3302 = vmatpush.bf16.msra.mxu2 %v5580_v24  ;;  %v3234_v42 = vadd.f32 %v5695_v39, %v3233_v45  ;;  %v5584_v45 = vld [vmem:[%s7257_s8 + $0x108] sm:$0xff] }
0x1bcd   : > { %v3133_v34 = vpop.f32.mrf.mxu1 }
0x1bce   : > { %v3134_v60 = vadd.f32 %v6743_v10, %v3133_v34 }
0x1bd0   : > { %v3139_v43 = vsel %vm842_vm2, %v3134_v60, -inf  ;;  %3303 = vmatpush.bf16.msra.mxu2 %v5579_v6 }
0x1bd1   : > { %3140 = vmax.xlane.f32.xlu2 %v3139_v43 }
0x1bd3   : > { %v3235_v38 = vpop.f32.mrf.mxu0 }
0x1bd4   : > { %v3236_v40 = vadd.f32 %v5695_v39, %v3235_v38 }
0x1bd5   : > { %v3269_v61 = vpop.f32.mrf.mxu1 }
0x1bd6   : > { %v3270_v1 = vadd.f32 %v5696_v62, %v3269_v61 }
0x1bdd   : > { %v3271_v63 = vpop.f32.mrf.mxu1 }
0x1bde   : > { %v3272_v7 = vadd.f32 %v5696_v62, %v3271_v63 }
0x1be0   : > { %v3311_v8 = vpack.c.bf16 %v3272_v7, %v3270_v1 }
0x1be2   : > { %v3316_v14 = vsel %vm821_vm1, %v3311_v8, 0 }
0x1be3   : > { %3325 = vmatpush.bf16.xpose.msrb.mxu3 %v3316_v14 }
0x1c3c   : > { %v3138_v12 = vpop.xlane.xlu1 %3137 }
0x1c3d   : > { %v3142_v13 = vsub.f32 %v3132_v58, %v3138_v12 }
0x1c3f   : > { %v3144_v16 = vmul.f32 1.442695, %v3142_v13 }
0x1c41   : > { %5811 = vpow2.f32 %v3144_v16 }
0x1c44   : > { %v3141_v17 = vpop.xlane.xlu2 %3140 }
0x1c45   : > { %v3143_v19 = vsub.f32 %v3134_v60, %v3141_v17 }
0x1c47   : > { %v5812_v18 = vpop.eup %5811  ;;  %v3146_v9 = vmul.f32 1.442695, %v3143_v19  ;;  %v5251_v19 = vld [vmem:[%s7300_s6 + $0x1c] sm:$0xf] }
0x1c48   : > { %v3148_v20 = vsel %vm842_vm2, %v5812_v18, 0.0 }
0x1c49   : > { %5813 = vpow2.f32 %v3146_v9  ;;  %3149 = vadd.xlane.f32.xlu0 %v3148_v20 }
0x1c4f   : > { %v5814_v21 = vpop.eup %5813 }
0x1c50   : > { %v3151_v22 = vsel %vm842_vm2, %v5814_v21, 0.0 }
0x1c51   : > { %3152 = vadd.xlane.f32.xlu1 %v3151_v22  ;;  %v5698_v22 = vld [vmem:[%s7301_s7 + $0x1] ss:$0 sm:$0xff] }
0x1cbc   : > { %v3150_v25 = vpop.xlane.xlu0 %3149 }
0x1cbd   : > { %5815 = vrcp.f32 %v3150_v25 }
0x1cc3   : > { %v5816_v23 = vpop.eup %5815 }
0x1cc4   : > { %v3153_v26 = vpop.xlane.xlu1 %3152  ;;  %v3156_v27 = vmul.f32 %v5816_v23, %v5812_v18  ;;  %v3380_v18 = vsel %vm1063_vm3, %v5251_v19, 0 }
0x1cc5   : > { %5817 = vrcp.f32 %v3153_v26  ;;  %3389 = vmatpush.bf16.msra.mxu1 %v3380_v18 }
0x1ccb   : > { %v5818_v28 = vpop.eup %5817 }
0x1ccc   : > { %v3157_v29 = vmul.f32 %v5818_v28, %v5814_v21 }
0x1cce   : > { %v3158_v56 = vpack.c.bf16 %v3157_v29, %v3156_v27 }
0x1cd0   : > { %5204 = vmatmul.msk.bf16.vlgmr.msrb.gmra.mxu2 %vm842_vm2, %v3158_v56 }
0x1ce0   : > { %5248 = vmatmul.msk.bf16.vlgmr.msra.gmra.mxu2 %vm729_vm0, %v6702_v37  ;;  %v3310_v37 = vpack.c.bf16 %v3236_v40, %v3234_v42 }
0x1d53   : > { %v3172_v57 = vpop.f32.mrf.mxu2 }
0x1d5b   : > { %v3174_v50 = vpop.f32.mrf.mxu2 }
0x1d5c   : > { %v3177_v30 = vpack.c.bf16 %v3174_v50, %v3172_v57 }
0x1d5e   : > { %5206 = vmatmul.msk.bf16.vlgmr.msra.gmra.mxu3 %vm821_vm1, %v3177_v30 }
0x1d5f   : > { %3529 = vmatpush.bf16.msra.mxu3 %v5584_v45 }
0x1d63   : > { %v3305_v32 = vpop.f32.mrf.mxu2 }
0x1d64   : > { %v3306_v47 = vadd.f32 %v5697_v41, %v3305_v32 }
0x1d6b   : > { %v3307_v44 = vpop.f32.mrf.mxu2 }
0x1d6c   : > { %v3308_v4 = vadd.f32 %v5697_v41, %v3307_v44 }
0x1d6e   : > { %v3355_v53 = vpack.c.bf16 %v3308_v4, %v3306_v47  ;;  %5249 = vmatmul.msk.bf16.vlgmr.msrb.gmra.mxu3 %vm821_vm1, %v3310_v37  ;;  %v5582_v37 = vld [vmem:[%s7257_s8 + $0xc8] sm:$0xff] }
0x1d6f   : > { %3493 = vmatpush.bf16.msrb.mxu2 %v5582_v37 }
0x1d70   : > { %3366 = vmatpush.bf16.msrb.mxu0 %v3355_v53 }
0x1de1   : > { %v3195_v55 = vpop.f32.mrf.mxu3 }
0x1de2   : > { %v3200_v11 = vadd.f32 %v3195_v55, %v3002_v54  ;;  %v5581_v54 = vld [vmem:[%s7257_s8 + $0xc0] sm:$0xff] }
0x1de3   : > { %3494 = vmatpush.bf16.msrb.mxu2 %v5581_v54 }
0x1de9   : > { %v3197_v35 = vpop.f32.mrf.mxu3 }
0x1dea   : > { %v3201_v59 = vadd.f32 %v3197_v35, %v3004_v31 }
0x1df1   : > { %v3327_v46 = vpop.f32.mrf.mxu3 }
0x1df2   : > { %v3328_v58 = vadd.f32 %v6738_v2, %v3327_v46 }
0x1df4   : > { %v3332_v5 = vsel %vm842_vm2, %v3328_v58, -inf }
0x1df5   : > { %3333 = vmax.xlane.f32.xlu2 %v3332_v5 }
0x1df9   : > { %v3329_v34 = vpop.f32.mrf.mxu3 }
0x1dfa   : > { %v3330_v60 = vadd.f32 %v6743_v10, %v3329_v34 }
0x1dfc   : > { %v3335_v43 = vsel %vm842_vm2, %v3330_v60, -inf }
0x1dfd   : > { %3336 = vmax.xlane.f32.xlu0 %v3335_v43 }
0x1e68   : > { %v3334_v48 = vpop.xlane.xlu2 %3333 }
0x1e69   : > { %v3338_v49 = vsub.f32 %v3328_v58, %v3334_v48 }
0x1e6b   : > { %v3340_v61 = vmul.f32 1.442695, %v3338_v49 }
0x1e6d   : > { %5819 = vpow2.f32 %v3340_v61 }
0x1e70   : > { %v3337_v62 = vpop.xlane.xlu0 %3336 }
0x1e71   : > { %v3339_v51 = vsub.f32 %v3330_v60, %v3337_v62 }
0x1e73   : > { %v5820_v52 = vpop.eup %5819  ;;  %v3342_v63 = vmul.f32 1.442695, %v3339_v51 }
0x1e74   : > { %v3344_v1 = vsel %vm842_vm2, %v5820_v52, 0.0 }
0x1e75   : > { %5821 = vpow2.f32 %v3342_v63  ;;  %3345 = vadd.xlane.f32.xlu1 %v3344_v1  ;;  %v5701_v1 = vld [vmem:[%s7258_s9 + $0x10] ss:$0 sm:$0xff] }
0x1e7b   : > { %v5822_v2 = vpop.eup %5821 }
0x1e7c   : > { %v3347_v7 = vsel %vm842_vm2, %v5822_v2, 0.0 }
0x1e7d   : > { %3348 = vadd.xlane.f32.xlu2 %v3347_v7 }
0x1ee8   : > { %v3346_v10 = vpop.xlane.xlu1 %3345 }
0x1ee9   : > { %5823 = vrcp.f32 %v3346_v10 }
0x1eef   : > { %v5824_v14 = vpop.eup %5823 }
0x1ef0   : > { %v3349_v8 = vpop.xlane.xlu2 %3348  ;;  %v3352_v13 = vmul.f32 %v5824_v14, %v5820_v52 }
0x1ef1   : > { %5825 = vrcp.f32 %v3349_v8 }
0x1ef7   : > { %v5826_v12 = vpop.eup %5825 }
0x1ef8   : > { %v3353_v16 = vmul.f32 %v5826_v12, %v5822_v2  ;;  %v6915_v2 = vld [vmem:[%s7265_s16 + $0x1] ss:$0 sm:$0xff] }
0x1ef9   : > { %v6920_v12 = vld [vmem:[%s7266_s17 + $0x1] ss:$0 sm:$0xff] }
0x1efa   : > { %v3354_v17 = vpack.c.bf16 %v3353_v16, %v3352_v13 }
0x1efc   : > { %5250 = vmatmul.msk.bf16.vlgmr.msrb.gmra.mxu0 %vm842_vm2, %v3354_v17 }
0x1f79   : > { %v3368_v9 = vpop.f32.mrf.mxu0 }
0x1f81   : > { %v3370_v20 = vpop.f32.mrf.mxu0 }
0x1f82   : > { %v3373_v21 = vpack.c.bf16 %v3370_v20, %v3368_v9 }
0x1f84   : > { %5252 = vmatmul.msk.bf16.vlgmr.msra.gmra.mxu1 %vm821_vm1, %v3373_v21 }
0x2001   : > { %v3391_v24 = vpop.f32.mrf.mxu1 }
0x2002   : > { %v3396_v6 = vadd.f32 %v3391_v24, %v3200_v11 }
0x2004   : > { %v3403_v25 = vadd.f32 %v5698_v22, %v3396_v6 }
0x2006   : > { %v3405_v26 = vadd.f32 %v3403_v25, %v6696_v33  ;;  %v5583_v33 = vld [vmem:[%s7257_s8 + $0x100] sm:$0xff] }
0x2007   : > { %3530 = vmatpush.bf16.msra.mxu3 %v5583_v33 }
0x2008   : > { %v3407_v23 = vsel %vm729_vm0, %v3405_v26, 0.0 }
0x2009   : > { %v3393_v28 = vpop.f32.mrf.mxu1  ;;  %3408 = vadd.xlane.f32.xlu0 %v3407_v23 }
0x200a   : > { %v3397_v27 = vadd.f32 %v3393_v28, %v3201_v59  ;;  %5281 = vmatmul.msk.bf16.vlgmr.msra.gmra.mxu3 %vm729_vm0, %v6342_v0  ;;  %v5588_v28 = vld [vmem:[%s7257_s8 + $0xd8] sm:$0xff] }
0x200c   : > { %v3404_v29 = vadd.f32 %v5698_v22, %v3397_v27  ;;  %v5587_v27 = vld [vmem:[%s7257_s8 + $0xd0] sm:$0xff] }
0x200e   : > { %v3406_v56 = vadd.f32 %v3404_v29, %v6698_v36 }
0x2010   : > { %v3410_v57 = vsel %vm729_vm0, %v3406_v56, 0.0 }
0x2011   : > { %3411 = vadd.xlane.f32.xlu1 %v3410_v57 }
0x201a   : > { %5282 = vmatmul.msk.bf16.gmra.mxu3 %vm729_vm0, %v6349_v15 }
0x207c   : > { %v3409_v50 = vpop.xlane.xlu0 %3408 }
0x207d   : > { %v3413_v30 = vmul.f32 %v3409_v50, %v6346_v3 }
0x207f   : > { %v3415_v36 = vsub.f32 %v3405_v26, %v3413_v30  ;;  %v5586_v30 = vld [vmem:[%s7257_s8 + $0x148] sm:$0xff] }
0x2080   : > { %3570 = vmatpush.bf16.msra.mxu0 %v5586_v30 }
0x2081   : > { %v3417_v32 = vmul.f32 %v3415_v36, %v3415_v36 }
0x2083   : > { %v3419_v38 = vsel %vm729_vm0, %v3417_v32, 0.0 }
0x2084   : > { %v3412_v39 = vpop.xlane.xlu1 %3411  ;;  %3420 = vadd.xlane.f32.xlu2 %v3419_v38  ;;  %v6957_v38 = vld [vmem:[%s6410_s20] sm:$0xff] }
0x2085   : > { %v3414_v40 = vmul.f32 %v3412_v39, %v6346_v3 }
0x2087   : > { %v3416_v41 = vsub.f32 %v3406_v56, %v3414_v40  ;;  %v5702_v56 = vld [vmem:[%s7258_s9 + $0xc] ss:$0 sm:$0xff] }
0x2089   : > { %v3418_v42 = vmul.f32 %v3416_v41, %v3416_v41 }
0x208b   : > { %v3422_v44 = vsel %vm729_vm0, %v3418_v42, 0.0  ;;  %v6964_v42 = vld [vmem:[%s6410_s20 + $0x8] sm:$0xff]  ;;  %s667_s20 = sand.u32 1, %s5932_s22  }
0x208c   : > { %3423 = vadd.xlane.f32.xlu0 %v3422_v44  ;;  %s4668_s28 = sshll.u32 %s667_s20, 4  ;;  %s4551_s5 = scalar_lea.sflag [#allocation3], %s667_s20 }
0x208d   : > { %v3532_v55 = vpop.f32.mrf.mxu3  ;;  %s669_s0 = scalar_lea.vmem [#allocation2], %s4668_s28 }
0x208e   : > { %v3533_v9 = vadd.f32 %v5701_v1, %v3532_v55  ;;  %s4563_s3 = sshll.u32 %s669_s0, 4  ;;  %s4564_s3 = int_to_ptr.vmem [resolvable:$true] %s4563_s3 }
0x2095   : > { %v3534_v5 = vpop.f32.mrf.mxu3 }
0x2096   : > { %v3535_v20 = vadd.f32 %v5701_v1, %v3534_v5 }
0x2098   : > { %v3584_v26 = vpack.c.bf16 %v3535_v20, %v3533_v9 }
0x209a   : > { %v3590_v23 = vsel %vm821_vm1, %v3584_v26, 0 }
0x209d   : > { %v3537_v62 = vpop.f32.mrf.mxu3 }
0x209e   : > { %v3538_v14 = vadd.f32 %v5701_v1, %v3537_v62 }
0x20a5   : > { %v3539_v17 = vpop.f32.mrf.mxu3 }
0x20a6   : > { %v3540_v19 = vadd.f32 %v5701_v1, %v3539_v17  ;;  %v5589_v1 = vld [vmem:[%s7257_s8 + $0x110] sm:$0xff] }
0x20a8   : > { %v3585_v21 = vpack.c.bf16 %v3540_v19, %v3538_v14  ;;  %v5594_v19 = vld [vmem:[%s7257_s8 + $0xe8] sm:$0xff] }
0x20aa   : > { %v3593_v6 = vsel %vm821_vm1, %v3585_v21, 0 }
0x20ab   : > { %3601 = vmatpush.bf16.xpose.msrb.mxu1 %v3593_v6 }
0x20b3   : > { %3602 = vmatpush.bf16.xpose.msrb.mxu1 %v3590_v23 }
0x20bb   : > { %3682 = vmatpush.bf16.msra.mxu1 %v5588_v28  ;;  %v5705_v28 = vld [vmem:[%s7258_s9 + $0x11] ss:$0 sm:$0xff] }
0x20bf   : > { %3683 = vmatpush.bf16.msra.mxu1 %v5587_v27 }
0x20f7   : > { %v3421_v47 = vpop.xlane.xlu2 %3420 }
0x20f8   : > { %v3425_v4 = vmul.f32 %v3421_v47, %v6346_v3 }
0x20fa   : > { %v3427_v53 = vadd.f32 1e-05, %v3425_v4 }
0x20fc   : > { %5827 = vrsqrt.f32 %v3427_v53  ;;  %vm3435_vm12 = vweird.f32 %v3427_v53 }
0x20ff   : > { %v3424_v11 = vpop.xlane.xlu0 %3423 }
0x2100   : > { %v3426_v31 = vmul.f32 %v3424_v11, %v6346_v3 }
0x2102   : > { %v5828_v35 = vpop.eup %5827  ;;  %v3428_v59 = vadd.f32 1e-05, %v3426_v31 }
0x2103   : > { %v3430_v46 = vmul.f32 %v5828_v35, %v3427_v53  ;;  %vm3436_vm2 = vweird.f32 %v5828_v35 }
0x2104   : > { %5829 = vrsqrt.f32 %v3428_v59  ;;  %vm3437_vm13 = vmor %vm3435_vm12, %vm3436_vm2  ;;  %vm3445_vm15 = vweird.f32 %v3428_v59 }
0x2105   : > { %v3431_v58 = vmul.f32 %v5828_v35, %v3430_v46 }
0x2107   : > { %v3432_v34 = vmul.f32 0.5, %v3431_v58 }
0x2109   : > { %v3433_v60 = vsub.f32 1.5, %v3432_v34 }
0x210a   : > { %v5830_v43 = vpop.eup %5829 }
0x210b   : > { %v3434_v48 = vmul.f32 %v5828_v35, %v3433_v60  ;;  %v3440_v49 = vmul.f32 %v5830_v43, %v3428_v59  ;;  %vm3446_vm14 = vweird.f32 %v5830_v43  ;;  %v5704_v60 = vld [vmem:[%s7258_s9 + $0x14] ss:$0 sm:$0xff] }
0x210c   : > { %vm3447_vm4 = vmor %vm3445_vm15, %vm3446_vm14 }
0x210d   : > { %v3441_v61 = vmul.f32 %v5830_v43, %v3440_v49  ;;  %v3438_v51 = vsel %vm3437_vm13, %v5828_v35, %v3434_v48 }
0x210e   : > { %v3449_v7 = vmul.f32 %v3438_v51, %v3415_v36  ;;  %v5585_v36 = vld [vmem:[%s7257_s8 + $0x140] sm:$0xff] }
0x210f   : > { %v3442_v52 = vmul.f32 0.5, %v3441_v61  ;;  %3571 = vmatpush.bf16.msra.mxu0 %v5585_v36 }
0x2110   : > { %v3454_v13 = vmul.f32 %v6915_v2, %v3449_v7 }
0x2111   : > { %v3443_v63 = vsub.f32 1.5, %v3442_v52 }
0x2112   : > { %v6925_v22 = vadd.f32 %v6920_v12, %v3454_v13  ;;  %5296 = vmatmul.msk.bf16.vlgmr.msra.gmra.mxu0 %vm729_vm0, %v6342_v0 }
0x2113   : > { %v3444_v10 = vmul.f32 %v5830_v43, %v3443_v63  ;;  %v5590_v63 = vld [vmem:[%s7257_s8 + $0x118] sm:$0xff] }
0x2115   : > { %v3448_v8 = vsel %vm3447_vm4, %v5830_v43, %v3444_v10 }
0x2116   : > { %v3450_v16 = vmul.f32 %v3448_v8, %v3416_v41 }
0x2118   : > { %v3455_v18 = vmul.f32 %v6915_v2, %v3450_v16 }
0x211a   : > { %v6928_v24 = vadd.f32 %v6920_v12, %v3455_v18  ;;  %v5593_v18 = vld [vmem:[%s7257_s8 + $0xe0] sm:$0xff] }
0x211c   : > { %v6933_v25 = vpack.c.bf16 %v6928_v24, %v6925_v22 }
0x211e   : > { %5267 = vmatmul.msk.bf16.vlgmr.msrb.gmra.mxu2 %vm729_vm0, %v6933_v25 }
0x2122   : > { %5297 = vmatmul.msk.bf16.gmra.mxu0 %vm729_vm0, %v6349_v15 }
0x218f   : > { %v3573_v11 = vpop.f32.mrf.mxu0 }
0x2190   : > { %v3574_v49 = vadd.f32 %v5704_v60, %v3573_v11 }
0x2197   : > { %v3575_v46 = vpop.f32.mrf.mxu0 }
0x2198   : > { %v3576_v61 = vadd.f32 %v5704_v60, %v3575_v46 }
0x219a   : > { %v3632_v52 = vpack.c.bf16 %v3576_v61, %v3574_v49 }
0x219f   : > { %v3578_v34 = vpop.f32.mrf.mxu0 }
0x21a0   : > { %v3579_v43 = vadd.f32 %v5704_v60, %v3578_v34 }
0x21a1   : > { %v3496_v29 = vpop.f32.mrf.mxu2 }
0x21a2   : > { %v3497_v45 = vadd.f32 %v5702_v56, %v3496_v29 }
0x21a7   : > { %v3580_v48 = vpop.f32.mrf.mxu0 }
0x21a8   : > { %v3581_v62 = vadd.f32 %v5704_v60, %v3580_v48 }
0x21a9   : > { %v3498_v57 = vpop.f32.mrf.mxu2 }
0x21aa   : > { %v3499_v33 = vadd.f32 %v5702_v56, %v3498_v57  ;;  %v3633_v51 = vpack.c.bf16 %v3581_v62, %v3579_v43 }
0x21ac   : > { %v3583_v50 = vpack.c.bf16 %v3499_v33, %v3497_v45  ;;  %3643 = vmatpush.bf16.msra.mxu2 %v3633_v51 }
0x21ae   : > { %5298 = vmatmul.msk.bf16.vlgmr.msrb.gmra.mxu1 %vm821_vm1, %v3583_v50 }
0x21b0   : > { %3644 = vmatpush.bf16.msra.mxu2 %v3632_v52 }
0x21b4   : > { %3718 = vmatpush.bf16.msrb.mxu2 %v5590_v63 }
0x21b8   : > { %3719 = vmatpush.bf16.msrb.mxu2 %v5589_v1 }
0x21be   : > { %5314 = vmatmul.msk.bf16.vlgmr.msra.gmra.mxu1 %vm729_vm0, %v6933_v25 }
0x222b   : > { %v3604_v32 = vpop.f32.mrf.mxu1 }
0x222c   : > { %v3605_v39 = vadd.f32 %v6957_v38, %v3604_v32 }
0x222e   : > { %v3609_v40 = vsel %vm729_vm0, %v3605_v39, -inf }
0x222f   : > { %3610 = vmax.xlane.f32.xlu1 %v3609_v40 }
0x2233   : > { %v3606_v41 = vpop.f32.mrf.mxu1 }
0x2234   : > { %v3607_v44 = vadd.f32 %v6964_v42, %v3606_v41 }
0x2236   : > { %v3612_v37 = vsel %vm729_vm0, %v3607_v44, -inf }
0x2237   : > { %3613 = vmax.xlane.f32.xlu2 %v3612_v37 }
0x223b   : > { %v3685_v57 = vpop.f32.mrf.mxu1 }
0x2243   : > { %v3687_v32 = vpop.f32.mrf.mxu1 }
0x22a2   : > { %v3611_v47 = vpop.xlane.xlu1 %3610 }
0x22a3   : > { %v3615_v4 = vsub.f32 %v3605_v39, %v3611_v47  ;;  %v5703_v39 = vld [vmem:[%s7258_s9 + $0xd] ss:$0 sm:$0xff]  ;;  %v5592_v47 = vld [vmem:[%s7257_s8 + $0x158] sm:$0xff] }
0x22a4   : > { %v3688_v41 = vadd.f32 %v5703_v39, %v3687_v32  ;;  %3759 = vmatpush.bf16.msrb.mxu3 %v5592_v47 }
0x22a5   : > { %v3617_v53 = vmul.f32 1.442695, %v3615_v4  ;;  %v5591_v4 = vld [vmem:[%s7257_s8 + $0x150] sm:$0xff] }
0x22a7   : > { %5831 = vpow2.f32 %v3617_v53  ;;  %v5596_v53 = vld [vmem:[%s7257_s8 + $0x128] sm:$0xff] }
0x22a8   : > { %3760 = vmatpush.bf16.msrb.mxu3 %v5591_v4 }
0x22aa   : > { %v3614_v54 = vpop.xlane.xlu2 %3613 }
0x22ab   : > { %v3616_v55 = vsub.f32 %v3607_v44, %v3614_v54  ;;  %v3686_v44 = vadd.f32 %v5703_v39, %v3685_v57  ;;  %v5595_v54 = vld [vmem:[%s7257_s8 + $0x120] sm:$0xff]  ;;  %5343 = vmatmul.msk.bf16.vlgmr.msrb.gmra.mxu3 %vm729_vm0, %v6342_v0 }
0x22ac   : > { %3947 = vmatpush.bf16.msra.mxu3 %v5596_v53 }
0x22ad   : > { %v5832_v31 = vpop.eup %5831  ;;  %v3619_v35 = vmul.f32 1.442695, %v3616_v55  ;;  %v3772_v37 = vpack.c.bf16 %v3688_v41, %v3686_v44 }
0x22ae   : > { %v3621_v59 = vsel %vm729_vm0, %v5832_v31, 0.0 }
0x22af   : > { %5833 = vpow2.f32 %v3619_v35  ;;  %3622 = vadd.xlane.f32.xlu0 %v3621_v59 }
0x22b0   : > { %3948 = vmatpush.bf16.msra.mxu3 %v5595_v54 }
0x22b5   : > { %v5834_v58 = vpop.eup %5833 }
0x22b6   : > { %v3624_v5 = vsel %vm729_vm0, %v5834_v58, 0.0 }
0x22b7   : > { %3625 = vadd.xlane.f32.xlu1 %v3624_v5 }
0x22bb   : > { %5344 = vmatmul.msk.bf16.gmra.mxu3 %vm729_vm0, %v6349_v15 }
0x22cb   : > { %5377 = vmatmul.msk.bf16.vlgmr.msra.gmra.mxu3 %vm729_vm0, %v6342_v0 }
0x22db   : > { %5378 = vmatmul.msk.bf16.gmra.mxu3 %vm729_vm0, %v6349_v15 }
0x2322   : > { %v3623_v7 = vpop.xlane.xlu0 %3622 }
0x2323   : > { %5835 = vrcp.f32 %v3623_v7  ;;  %v5707_v7 = vld [vmem:[%s7258_s9 + $0x15] ss:$0 sm:$0xff] }
0x2329   : > { %v5836_v8 = vpop.eup %5835 }
0x232a   : > { %v3626_v10 = vpop.xlane.xlu1 %3625  ;;  %v3629_v13 = vmul.f32 %v5836_v8, %v5832_v31 }
0x232b   : > { %5837 = vrcp.f32 %v3626_v10 }
0x232e   : > { %v3762_v34 = vpop.f32.mrf.mxu3 }
0x2331   : > { %v5838_v14 = vpop.eup %5837 }
0x2332   : > { %v3630_v16 = vmul.f32 %v5838_v14, %v5834_v58  ;;  %v3763_v14 = vadd.f32 %v5707_v7, %v3762_v34 }
0x2334   : > { %v3631_v17 = vpack.c.bf16 %v3630_v16, %v3629_v13 }
0x2336   : > { %5299 = vmatmul.msk.bf16.vlgmr.msra.gmra.mxu2 %vm729_vm0, %v3631_v17  ;;  %v3764_v49 = vpop.f32.mrf.mxu3 }
0x2337   : > { %3911 = vmatpush.bf16.msra.mxu2 %v5594_v19  ;;  %v3765_v13 = vadd.f32 %v5707_v7, %v3764_v49 }
0x2339   : > { %v3821_v19 = vpack.c.bf16 %v3765_v13, %v3763_v14 }
0x233b   : > { %3912 = vmatpush.bf16.msra.mxu2 %v5593_v18 }
0x233e   : > { %v3767_v52 = vpop.f32.mrf.mxu3 }
0x233f   : > { %v3768_v10 = vadd.f32 %v5707_v7, %v3767_v52 }
0x2346   : > { %5328 = vmatmul.msk.bf16.vlgmr.msrb.gmra.mxu2 %vm729_vm0, %v6342_v0  ;;  %v3769_v8 = vpop.f32.mrf.mxu3 }
0x2347   : > { %v3770_v16 = vadd.f32 %v5707_v7, %v3769_v8 }
0x2349   : > { %v3822_v17 = vpack.c.bf16 %v3770_v16, %v3768_v10 }
0x234b   : > { %3832 = vmatpush.bf16.msrb.mxu1 %v3822_v17 }
0x234e   : > { %v3950_v18 = vpop.f32.mrf.mxu3 }
0x234f   : > { %3833 = vmatpush.bf16.msrb.mxu1 %v3821_v19 }
0x2356   : > { %5329 = vmatmul.msk.bf16.gmra.mxu2 %vm729_vm0, %v6349_v15 }
0x2366   : > { %5363 = vmatmul.msk.bf16.vlgmr.msra.gmra.mxu2 %vm729_vm0, %v6933_v25 }
0x23b9   : > { %v6994_v9 = vpop.f32.mrf.mxu2 }
0x23c1   : > { %v6996_v20 = vpop.f32.mrf.mxu2 }
0x23c2   : > { %v3651_v21 = vpack.c.bf16 %v6996_v20, %v6994_v9 }
0x23c9   : > { %v3721_v6 = vpop.f32.mrf.mxu2 }
0x23ca   : > { %v3722_v30 = vadd.f32 %v5705_v28, %v3721_v6  ;;  %v5300_v6 = vld [vmem:[%s7259_s10 + $0x10] sm:$0xf] }
0x23d1   : > { %v3723_v26 = vpop.f32.mrf.mxu2 }
0x23d2   : > { %v3724_v33 = vadd.f32 %v5705_v28, %v3723_v26  ;;  %v3952_v26 = vpop.f32.mrf.mxu3 }
0x23d4   : > { %v3773_v36 = vpack.c.bf16 %v3724_v33, %v3722_v30 }
0x23d6   : > { %v3779_v40 = vsel %vm821_vm1, %v3773_v36, 0 }
0x23d9   : > { %v3726_v23 = vpop.f32.mrf.mxu2 }
0x23da   : > { %v3727_v29 = vadd.f32 %v5705_v28, %v3726_v23  ;;  %v3867_v23 = vsel %vm1063_vm3, %v5300_v6, 0 }
0x23db   : > { %3876 = vmatpush.bf16.msra.mxu1 %v3867_v23 }
0x23e1   : > { %v3728_v27 = vpop.f32.mrf.mxu2 }
0x23e2   : > { %v3729_v56 = vadd.f32 %v5705_v28, %v3728_v27  ;;  %v3955_v28 = vpop.f32.mrf.mxu3 }
0x23e4   : > { %v3774_v45 = vpack.c.bf16 %v3729_v56, %v3727_v29  ;;  %v5708_v56 = vld [vmem:[%s7258_s9 + $0x12] ss:$0 sm:$0xff] }
0x23e5   : > { %v3951_v44 = vadd.f32 %v5708_v56, %v3950_v18 }
0x23e6   : > { %v3782_v50 = vsel %vm821_vm1, %v3774_v45, 0  ;;  %v3956_v45 = vadd.f32 %v5708_v56, %v3955_v28 }
0x23e7   : > { %3790 = vmatpush.bf16.xpose.msrb.mxu0 %v3782_v50 }
0x23e9   : > { %v3914_v53 = vpop.f32.mrf.mxu2 }
0x23ea   : > { %v3957_v29 = vpop.f32.mrf.mxu3 }
0x23eb   : > { %v3958_v33 = vadd.f32 %v5708_v56, %v3957_v29  ;;  %v5709_v29 = vld [vmem:[%s7258_s9 + $0x16] ss:$0 sm:$0xff] }
0x23ed   : > { %v4003_v30 = vpack.c.bf16 %v3958_v33, %v3956_v45 }
0x23ef   : > { %3791 = vmatpush.bf16.xpose.msrb.mxu0 %v3779_v40  ;;  %v4011_v41 = vsel %vm821_vm1, %v4003_v30, 0 }
0x23f1   : > { %v3916_v54 = vpop.f32.mrf.mxu2 }
0x23f6   : > { %5345 = vmatmul.msk.bf16.vlgmr.msrb.gmra.mxu0 %vm821_vm1, %v3772_v37  ;;  %v3953_v37 = vadd.f32 %v5708_v56, %v3952_v26 }
0x23f8   : > { %v4002_v47 = vpack.c.bf16 %v3953_v37, %v3951_v44  ;;  %v5396_v37 = vld [vmem:[%s7259_s10 + $0x18] sm:$0xf] }
0x23fa   : > { %v4008_v4 = vsel %vm821_vm1, %v4002_v47, 0  ;;  %v4076_v47 = vsel %vm1063_vm3, %v5396_v37, 0 }
0x2473   : > { %v3793_v55 = vpop.f32.mrf.mxu0 }
0x2474   : > { %v3794_v11 = vadd.f32 %v6957_v38, %v3793_v55  ;;  %v5706_v55 = vld [vmem:[%s7258_s9 + $0xe] ss:$0 sm:$0xff] }
0x2476   : > { %v3798_v31 = vsel %vm729_vm0, %v3794_v11, -inf }
0x2477   : > { %3799 = vmax.xlane.f32.xlu2 %v3798_v31  ;;  %v3915_v31 = vadd.f32 %v5706_v55, %v3914_v53 }
0x247b   : > { %v3795_v35 = vpop.f32.mrf.mxu0 }
0x247c   : > { %v3796_v59 = vadd.f32 %v6964_v42, %v3795_v35 }
0x247e   : > { %v3801_v46 = vsel %vm729_vm0, %v3796_v59, -inf }
0x247f   : > { %3802 = vmax.xlane.f32.xlu0 %v3801_v46 }
0x24ea   : > { %v3800_v58 = vpop.xlane.xlu2 %3799 }
0x24eb   : > { %v3804_v5 = vsub.f32 %v3794_v11, %v3800_v58  ;;  %v3917_v11 = vadd.f32 %v5706_v55, %v3916_v54  ;;  %v5598_v58 = vld [vmem:[%s7257_s8 + $0x168] sm:$0xff] }
0x24ed   : > { %v3806_v60 = vmul.f32 1.442695, %v3804_v5  ;;  %v4001_v35 = vpack.c.bf16 %v3917_v11, %v3915_v31  ;;  %v5597_v5 = vld [vmem:[%s7257_s8 + $0x160] sm:$0xff] }
0x24ef   : > { %5839 = vpow2.f32 %v3806_v60 }
0x24f2   : > { %v3803_v43 = vpop.xlane.xlu0 %3802 }
0x24f3   : > { %v3805_v48 = vsub.f32 %v3796_v59, %v3803_v43  ;;  %v5347_v59 = vld [vmem:[%s7259_s10 + $0x14] sm:$0xf] }
0x24f4   : > { %v3847_v46 = vsel %vm1063_vm3, %v5347_v59, 0 }
0x24f5   : > { %v5840_v61 = vpop.eup %5839  ;;  %v3808_v62 = vmul.f32 1.442695, %v3805_v48  ;;  %3856 = vmatpush.bf16.msra.mxu0 %v3847_v46 }
0x24f6   : > { %v3810_v51 = vsel %vm729_vm0, %v5840_v61, 0.0 }
0x24f7   : > { %5841 = vpow2.f32 %v3808_v62  ;;  %3811 = vadd.xlane.f32.xlu1 %v3810_v51 }
0x24f9   : > { %3988 = vmatpush.bf16.msrb.mxu0 %v5598_v58 }
0x24fd   : > { %v5842_v63 = vpop.eup %5841  ;;  %3989 = vmatpush.bf16.msrb.mxu0 %v5597_v5 }
0x24fe   : > { %v3813_v1 = vsel %vm729_vm0, %v5842_v63, 0.0 }
0x24ff   : > { %3814 = vadd.xlane.f32.xlu2 %v3813_v1  ;;  %v5601_v1 = vld [vmem:[%s7257_s8 + $0x130] sm:$0xff] }
0x256a   : > { %v3812_v27 = vpop.xlane.xlu1 %3811 }
0x256b   : > { %5843 = vrcp.f32 %v3812_v27 }
0x2571   : > { %v5844_v50 = vpop.eup %5843 }
0x2572   : > { %v3815_v57 = vpop.xlane.xlu2 %3814  ;;  %v3818_v32 = vmul.f32 %v5844_v50, %v5840_v61 }
0x2573   : > { %5845 = vrcp.f32 %v3815_v57 }
0x2579   : > { %v5846_v36 = vpop.eup %5845 }
0x257a   : > { %v3819_v39 = vmul.f32 %v5846_v36, %v5842_v63  ;;  %v5602_v63 = vld [vmem:[%s7257_s8 + $0x138] sm:$0xff] }
0x257b   : > { %4158 = vmatpush.bf16.msrb.mxu3 %v5602_v63 }
0x257c   : > { %v3820_v40 = vpack.c.bf16 %v3819_v39, %v3818_v32  ;;  %v5600_v32 = vld [vmem:[%s7257_s8 + $0xf8] sm:$0xff]  ;;  %v5599_v39 = vld [vmem:[%s7257_s8 + $0xf0] sm:$0xff] }
0x257e   : > { %5346 = vmatmul.msk.bf16.vlgmr.msrb.gmra.mxu1 %vm729_vm0, %v3820_v40 }
0x257f   : > { %4019 = vmatpush.bf16.xpose.msrb.mxu1 %v4011_v41  ;;  %4159 = vmatpush.bf16.msrb.mxu3 %v5601_v1  ;;  %v5710_v41 = vld [vmem:[%s7258_s9 + $0x13] ss:$0 sm:$0xff]  ;;  %v5711_v1 = vld [vmem:[%s7258_s9 + $0xf] ss:$0 sm:$0xff] }
0x2582   : > { %5425 = vmatmul.msk.bf16.vlgmr.msrb.gmra.mxu3 %vm729_vm0, %v6342_v0 }
0x2587   : > { %4020 = vmatpush.bf16.xpose.msrb.mxu1 %v4008_v4 }
0x258e   : > { %5349 = vmatmul.msk.bf16.vlgmr.msra.gmra.mxu1 %vm821_vm1, %v3651_v21 }
0x258f   : > { %4085 = vmatpush.bf16.msra.mxu1 %v4076_v47 }
0x2592   : > { %5426 = vmatmul.msk.bf16.gmra.mxu3 %vm729_vm0, %v6349_v15 }
0x259e   : > { %5394 = vmatmul.msk.bf16.vlgmr.msrb.gmra.mxu1 %vm821_vm1, %v4001_v35 }
0x25fb   : > { %v3835_v9 = vpop.f32.mrf.mxu1 }
0x2603   : > { %v3837_v20 = vpop.f32.mrf.mxu1 }
0x2604   : > { %v3840_v21 = vpack.c.bf16 %v3837_v20, %v3835_v9 }
0x2605   : > { %v4161_v44 = vpop.f32.mrf.mxu3 }
0x2606   : > { %5348 = vmatmul.msk.bf16.vlgmr.msra.gmra.mxu0 %vm821_vm1, %v3840_v21  ;;  %v4162_v4 = vadd.f32 %v5710_v41, %v4161_v44 }
0x260b   : > { %v7067_v34 = vpop.f32.mrf.mxu1 }
0x260d   : > { %v4163_v54 = vpop.f32.mrf.mxu3 }
0x260e   : > { %v4164_v11 = vadd.f32 %v5710_v41, %v4163_v54 }
0x2610   : > { %v4213_v35 = vpack.c.bf16 %v4164_v11, %v4162_v4 }
0x2613   : > { %v7069_v60 = vpop.f32.mrf.mxu1 }
0x2615   : > { %v4166_v20 = vpop.f32.mrf.mxu3 }
0x2616   : > { %5392 = vmatmul.msk.bf16.vlgmr.msrb.gmra.mxu0 %vm729_vm0, %v6342_v0  ;;  %v4167_v21 = vadd.f32 %v5710_v41, %v4166_v20 }
0x261b   : > { %v4022_v43 = vpop.f32.mrf.mxu1 }
0x261c   : > { %v4023_v48 = vadd.f32 %v6957_v38, %v4022_v43 }
0x261d   : > { %v4168_v58 = vpop.f32.mrf.mxu3 }
0x261e   : > { %v4027_v49 = vsel %vm729_vm0, %v4023_v48, -inf  ;;  %v4169_v5 = vadd.f32 %v5710_v41, %v4168_v58 }
0x261f   : > { %4028 = vmax.xlane.f32.xlu0 %v4027_v49  ;;  %v4219_v49 = vsel %vm821_vm1, %v4213_v35, 0 }
0x2620   : > { %v4214_v43 = vpack.c.bf16 %v4169_v5, %v4167_v21 }
0x2623   : > { %v4024_v61 = vpop.f32.mrf.mxu1 }
0x2624   : > { %v4025_v62 = vadd.f32 %v6964_v42, %v4024_v61 }
0x2626   : > { %v4030_v51 = vsel %vm729_vm0, %v4025_v62, -inf  ;;  %5393 = vmatmul.msk.bf16.gmra.mxu0 %vm729_vm0, %v6349_v15 }
0x2627   : > { %4031 = vmax.xlane.f32.xlu1 %v4030_v51 }
0x2683   : > { %v7079_v52 = vpop.f32.mrf.mxu0 }
0x268b   : > { %v7087_v7 = vpop.f32.mrf.mxu0 }
0x2692   : > { %v4029_v10 = vpop.xlane.xlu0 %4028 }
0x2693   : > { %v4033_v8 = vsub.f32 %v4023_v48, %v4029_v10  ;;  %v3991_v14 = vpop.f32.mrf.mxu0  ;;  %v4222_v48 = vsel %vm821_vm1, %v4214_v43, 0  ;;  %v5713_v43 = vld [vmem:[%s7260_s11 + $0x1] ss:$0 sm:$0xff] }
0x2694   : > { %v3992_v45 = vadd.f32 %v5709_v29, %v3991_v14  ;;  %4230 = vmatpush.bf16.xpose.msrb.mxu1 %v4222_v48 }
0x2695   : > { %v4035_v13 = vmul.f32 1.442695, %v4033_v8 }
0x2697   : > { %5847 = vpow2.f32 %v4035_v13 }
0x269a   : > { %v4032_v16 = vpop.xlane.xlu1 %4031 }
0x269b   : > { %v4034_v17 = vsub.f32 %v4025_v62, %v4032_v16  ;;  %v3993_v19 = vpop.f32.mrf.mxu0  ;;  %v3879_v16 = vadd.f32 %v7067_v34, %v7079_v52 }
0x269c   : > { %v3994_v33 = vadd.f32 %v5709_v29, %v3993_v19  ;;  %4231 = vmatpush.bf16.xpose.msrb.mxu1 %v4219_v49  ;;  %v5603_v19 = vld [vmem:[%s7257_s8 + $0x170] sm:$0xff] }
0x269d   : > { %v5848_v18 = vpop.eup %5847  ;;  %v4037_v6 = vmul.f32 1.442695, %v4034_v17 }
0x269e   : > { %v4039_v26 = vsel %vm729_vm0, %v5848_v18, 0.0  ;;  %v4050_v36 = vpack.c.bf16 %v3994_v33, %v3992_v45 }
0x269f   : > { %5849 = vpow2.f32 %v4037_v6  ;;  %4040 = vadd.xlane.f32.xlu2 %v4039_v26  ;;  %v3881_v6 = vadd.f32 %v7069_v60, %v7087_v7 }
0x26a3   : > { %v3996_v23 = vpop.f32.mrf.mxu0 }
0x26a4   : > { %v3997_v56 = vadd.f32 %v5709_v29, %v3996_v23 }
0x26a5   : > { %v5850_v28 = vpop.eup %5849 }
0x26a6   : > { %v4042_v27 = vsel %vm729_vm0, %v5850_v28, 0.0 }
0x26a7   : > { %4043 = vadd.xlane.f32.xlu0 %v4042_v27 }
0x26ab   : > { %v3998_v57 = vpop.f32.mrf.mxu0 }
0x26ac   : > { %v3999_v50 = vadd.f32 %v5709_v29, %v3998_v57 }
0x26ae   : > { %v4051_v30 = vpack.c.bf16 %v3999_v50, %v3997_v56 }
0x26b0   : > { %4061 = vmatpush.bf16.msrb.mxu2 %v4051_v30 }
0x26b4   : > { %4062 = vmatpush.bf16.msrb.mxu2 %v4050_v36 }
0x26b8   : > { %4122 = vmatpush.bf16.msra.mxu2 %v5600_v32 }
0x26bc   : > { %4123 = vmatpush.bf16.msra.mxu2 %v5599_v39 }
0x2712   : > { %v4041_v40 = vpop.xlane.xlu2 %4040 }
0x2713   : > { %5851 = vrcp.f32 %v4041_v40 }
0x2719   : > { %v5852_v55 = vpop.eup %5851 }
0x271a   : > { %v4044_v53 = vpop.xlane.xlu0 %4043  ;;  %v4047_v59 = vmul.f32 %v5852_v55, %v5848_v18 }
0x271b   : > { %5853 = vrcp.f32 %v4044_v53 }
0x2721   : > { %v5854_v31 = vpop.eup %5853 }
0x2722   : > { %v4048_v46 = vmul.f32 %v5854_v31, %v5850_v28 }
0x2724   : > { %v4049_v9 = vpack.c.bf16 %v4048_v46, %v4047_v59 }
0x2726   : > { %5395 = vmatmul.msk.bf16.vlgmr.msrb.gmra.mxu2 %vm729_vm0, %v4049_v9  ;;  %v5444_v9 = vld [vmem:[%s7259_s10 + $0x1c] sm:$0xf] }
0x2727   : > { %v4287_v20 = vsel %vm1063_vm3, %v5444_v9, 0 }
0x2736   : > { %5411 = vmatmul.msk.bf16.vlgmr.msra.gmra.mxu2 %vm729_vm0, %v6933_v25  ;;  %v5604_v25 = vld [vmem:[%s7257_s8 + $0x178] sm:$0xff] }
0x2737   : > { %4199 = vmatpush.bf16.msra.mxu0 %v5604_v25 }
0x273b   : > { %4200 = vmatpush.bf16.msra.mxu0 %v5603_v19 }
0x273e   : > { %5440 = vmatmul.msk.bf16.vlgmr.msra.gmra.mxu0 %vm729_vm0, %v6342_v0 }
0x274e   : > { %5441 = vmatmul.msk.bf16.gmra.mxu0 %vm729_vm0, %v6349_v15  ;;  %v5712_v15 = vld [vmem:[%s7258_s9 + $0x17] ss:$0 sm:$0xff] }
0x27a9   : > { %v4064_v61 = vpop.f32.mrf.mxu2 }
0x27b1   : > { %v4066_v62 = vpop.f32.mrf.mxu2 }
0x27b2   : > { %v4069_v51 = vpack.c.bf16 %v4066_v62, %v4064_v61 }
0x27b4   : > { %5397 = vmatmul.msk.bf16.vlgmr.msra.gmra.mxu1 %vm821_vm1, %v4069_v51 }
0x27b5   : > { %4296 = vmatpush.bf16.msra.mxu1 %v4287_v20 }
0x27b9   : > { %v4125_v63 = vpop.f32.mrf.mxu2 }
0x27ba   : > { %v4126_v8 = vadd.f32 %v5711_v1, %v4125_v63 }
0x27bb   : > { %v4202_v60 = vpop.f32.mrf.mxu0 }
0x27bc   : > { %v4203_v44 = vadd.f32 %v5712_v15, %v4202_v60 }
0x27c1   : > { %v4127_v10 = vpop.f32.mrf.mxu2 }
0x27c2   : > { %v4128_v14 = vadd.f32 %v5711_v1, %v4127_v10 }
0x27c3   : > { %v4204_v45 = vpop.f32.mrf.mxu0 }
0x27c4   : > { %v4212_v13 = vpack.c.bf16 %v4128_v14, %v4126_v8  ;;  %v4205_v37 = vadd.f32 %v5712_v15, %v4204_v45 }
0x27c6   : > { %5442 = vmatmul.msk.bf16.vlgmr.msrb.gmra.mxu1 %vm821_vm1, %v4212_v13  ;;  %v4261_v53 = vpack.c.bf16 %v4205_v37, %v4203_v44 }
0x27cb   : > { %v4207_v36 = vpop.f32.mrf.mxu0 }
0x27d3   : > { %v4209_v40 = vpop.f32.mrf.mxu0 }
0x27d4   : > { %v4210_v47 = vadd.f32 %v5712_v15, %v4209_v40 }
0x2831   : > { %v4087_v17 = vpop.f32.mrf.mxu1 }
0x2832   : > { %v4092_v18 = vadd.f32 %v4087_v17, %v3879_v16 }
0x2839   : > { %v4089_v26 = vpop.f32.mrf.mxu1 }
0x283a   : > { %v4093_v23 = vadd.f32 %v4089_v26, %v3881_v6 }
0x2843   : > { %v4233_v28 = vpop.f32.mrf.mxu1 }
0x2844   : > { %v4234_v27 = vadd.f32 %v6957_v38, %v4233_v28 }
0x2846   : > { %v4238_v34 = vsel %vm729_vm0, %v4234_v27, -inf }
0x2847   : > { %4239 = vmax.xlane.f32.xlu1 %v4238_v34 }
0x284b   : > { %v4235_v52 = vpop.f32.mrf.mxu1 }
0x284c   : > { %v4236_v29 = vadd.f32 %v6964_v42, %v4235_v52  ;;  %v4208_v42 = vadd.f32 %v5712_v15, %v4207_v36  ;;  %v5605_v52 = vld [vmem:[%s7261_s12 + $0x10] sm:$0xff] }
0x284e   : > { %v4241_v56 = vsel %vm729_vm0, %v4236_v29, -inf  ;;  %v4262_v4 = vpack.c.bf16 %v4210_v47, %v4208_v42 }
0x284f   : > { %4242 = vmax.xlane.f32.xlu2 %v4241_v56 }
0x2850   : > { %4272 = vmatpush.bf16.msrb.mxu2 %v4262_v4 }
0x2854   : > { %4273 = vmatpush.bf16.msrb.mxu2 %v4261_v53 }
0x28ba   : > { %v4240_v7 = vpop.xlane.xlu1 %4239 }
0x28bb   : > { %v4244_v0 = vsub.f32 %v4234_v27, %v4240_v7 }
0x28bd   : > { %v4246_v57 = vmul.f32 1.442695, %v4244_v0 }
0x28bf   : > { %5855 = vpow2.f32 %v4246_v57 }
0x28c2   : > { %v4243_v33 = vpop.xlane.xlu2 %4242 }
0x28c3   : > { %v4245_v38 = vsub.f32 %v4236_v29, %v4243_v33 }
0x28c5   : > { %v5856_v50 = vpop.eup %5855  ;;  %v4248_v30 = vmul.f32 1.442695, %v4245_v38 }
0x28c6   : > { %v4250_v32 = vsel %vm729_vm0, %v5856_v50, 0.0 }
0x28c7   : > { %5857 = vpow2.f32 %v4248_v30  ;;  %4251 = vadd.xlane.f32.xlu0 %v4250_v32 }
0x28cd   : > { %v5858_v39 = vpop.eup %5857 }
0x28ce   : > { %v4253_v41 = vsel %vm729_vm0, %v5858_v39, 0.0 }
0x28cf   : > { %4254 = vadd.xlane.f32.xlu1 %v4253_v41 }
0x293a   : > { %v4252_v54 = vpop.xlane.xlu0 %4251 }
0x293b   : > { %5859 = vrcp.f32 %v4252_v54 }
0x2941   : > { %v5860_v11 = vpop.eup %5859 }
0x2942   : > { %v4255_v55 = vpop.xlane.xlu1 %4254  ;;  %v4258_v35 = vmul.f32 %v5860_v11, %v5856_v50  ;;  %v5609_v11 = vld [vmem:[%s7263_s14 + $0x30] sm:$0xff] }
0x2943   : > { %5861 = vrcp.f32 %v4255_v55  ;;  %v5610_v55 = vld [vmem:[%s7263_s14 + $0x38] sm:$0xff] }
0x2944   : > { %4450 = vmatpush.bf16.msra.mxu3 %v5610_v55 }
0x2948   : > { %4451 = vmatpush.bf16.msra.mxu3 %v5609_v11 }
0x2949   : > { %v5862_v31 = vpop.eup %5861 }
0x294a   : > { %v4259_v59 = vmul.f32 %v5862_v31, %v5858_v39  ;;  %v5608_v31 = vld [vmem:[%s7263_s14 + $0x28] sm:$0xff] }
0x294c   : > { %v4260_v46 = vpack.c.bf16 %v4259_v59, %v4258_v35  ;;  %4452 = vmatpush.bf16.msra.mxu3 %v5608_v31  ;;  %v5607_v35 = vld [vmem:[%s7263_s14 + $0x20] sm:$0xff] }
0x294e   : > { %5443 = vmatmul.msk.bf16.vlgmr.msrb.gmra.mxu2 %vm729_vm0, %v4260_v46  ;;  %v5714_v46 = vld [vmem:[%s7262_s13 + $0x1] ss:$0 sm:$0xff] }
0x2950   : > { %4453 = vmatpush.bf16.msra.mxu3 %v5607_v35 }
0x29d1   : > { %v4275_v21 = vpop.f32.mrf.mxu2 }
0x29d9   : > { %v4277_v58 = vpop.f32.mrf.mxu2 }
0x29da   : > { %v4280_v5 = vpack.c.bf16 %v4277_v58, %v4275_v21 }
0x29dc   : > { %5445 = vmatmul.msk.bf16.vlgmr.msra.gmra.mxu1 %vm821_vm1, %v4280_v5 }
0x2a59   : > { %v4298_v48 = vpop.f32.mrf.mxu1 }
0x2a5a   : > { %v4303_v49 = vadd.f32 %v4298_v48, %v4092_v18  ;;  %v5715_v48 = vld [vmem:[%s7264_s15 + $0x1] ss:$0 sm:$0xff] }
0x2a5c   : > { %v4310_v61 = vadd.f32 %v5713_v43, %v4303_v49 }
0x2a5e   : > { %v4312_v62 = vadd.f32 %v4310_v61, %v6925_v22 }
0x2a60   : > { %v4314_v51 = vsel %vm729_vm0, %v4312_v62, 0.0 }
0x2a61   : > { %v4300_v63 = vpop.f32.mrf.mxu1  ;;  %4315 = vadd.xlane.f32.xlu2 %v4314_v51 }
0x2a62   : > { %v4304_v1 = vadd.f32 %v4300_v63, %v4093_v23 }
0x2a64   : > { %v4311_v10 = vadd.f32 %v5713_v43, %v4304_v1 }
0x2a66   : > { %v4313_v8 = vadd.f32 %v4311_v10, %v6928_v24  ;;  %v5606_v24 = vld [vmem:[%s7261_s12 + $0x18] sm:$0xff] }
0x2a67   : > { %4394 = vmatpush.bf16.msra.mxu2 %v5606_v24 }
0x2a68   : > { %v4317_v14 = vsel %vm729_vm0, %v4313_v8, 0.0 }
0x2a69   : > { %4318 = vadd.xlane.f32.xlu0 %v4317_v14 }
0x2a6b   : > { %4395 = vmatpush.bf16.msra.mxu2 %v5605_v52 }
0x2ad4   : > { %v4316_v13 = vpop.xlane.xlu2 %4315 }
0x2ad5   : > { %v4320_v25 = vmul.f32 %v4316_v13, %v6346_v3 }
0x2ad7   : > { %v4322_v16 = vsub.f32 %v4312_v62, %v4320_v25 }
0x2ad9   : > { %v4324_v17 = vmul.f32 %v4322_v16, %v4322_v16 }
0x2adb   : > { %v4326_v19 = vsel %vm729_vm0, %v4324_v17, 0.0 }
0x2adc   : > { %v4319_v18 = vpop.xlane.xlu0 %4318  ;;  %4327 = vadd.xlane.f32.xlu1 %v4326_v19 }
0x2add   : > { %v4321_v22 = vmul.f32 %v4319_v18, %v6346_v3 }
0x2adf   : > { %v4323_v6 = vsub.f32 %v4313_v8, %v4321_v22 }
0x2ae1   : > { %v4325_v26 = vmul.f32 %v4323_v6, %v4323_v6 }
0x2ae3   : > { %v4329_v23 = vsel %vm729_vm0, %v4325_v26, 0.0 }
0x2ae4   : > { %4330 = vadd.xlane.f32.xlu2 %v4329_v23  ;;  %v5612_v23 = vld [vmem:[%s7267_s18 + $0x8] sm:$0xff] }
0x2ae5   : > { %4540 = vmatpush.bf16.msrb.mxu0 %v5612_v23 }
0x2b4f   : > { %v4328_v28 = vpop.xlane.xlu1 %4327 }
0x2b50   : > { %v4332_v27 = vmul.f32 %v4328_v28, %v6346_v3 }
0x2b52   : > { %v4334_v34 = vadd.f32 1e-05, %v4332_v27 }
0x2b54   : > { %5863 = vrsqrt.f32 %v4334_v34  ;;  %vm4342_vm3 = vweird.f32 %v4334_v34 }
0x2b57   : > { %v4331_v29 = vpop.xlane.xlu2 %4330 }
0x2b58   : > { %v4333_v56 = vmul.f32 %v4331_v29, %v6346_v3 }
0x2b5a   : > { %v5864_v60 = vpop.eup %5863  ;;  %v4335_v7 = vadd.f32 1e-05, %v4333_v56 }
0x2b5b   : > { %v4337_v0 = vmul.f32 %v5864_v60, %v4334_v34  ;;  %vm4343_vm1 = vweird.f32 %v5864_v60  ;;  %v5611_v34 = vld [vmem:[%s7267_s18] sm:$0xff] }
0x2b5c   : > { %5865 = vrsqrt.f32 %v4335_v7  ;;  %vm4344_vm6 = vmor %vm4342_vm3, %vm4343_vm1  ;;  %vm4352_vm8 = vweird.f32 %v4335_v7  ;;  %4541 = vmatpush.bf16.msrb.mxu0 %v5611_v34 }
0x2b5d   : > { %v4338_v57 = vmul.f32 %v5864_v60, %v4337_v0 }
0x2b5f   : > { %v4339_v45 = vmul.f32 0.5, %v4338_v57 }
0x2b61   : > { %v4340_v33 = vsub.f32 1.5, %v4339_v45 }
0x2b62   : > { %v5866_v38 = vpop.eup %5865 }
0x2b63   : > { %v4341_v50 = vmul.f32 %v5864_v60, %v4340_v33  ;;  %v4347_v30 = vmul.f32 %v5866_v38, %v4335_v7  ;;  %vm4353_vm7 = vweird.f32 %v5866_v38 }
0x2b64   : > { %vm4354_vm9 = vmor %vm4352_vm8, %vm4353_vm7 }
0x2b65   : > { %v4348_v36 = vmul.f32 %v5866_v38, %v4347_v30  ;;  %v4345_v32 = vsel %vm4344_vm6, %v5864_v60, %v4341_v50 }
0x2b66   : > { %v4356_v39 = vmul.f32 %v4345_v32, %v4322_v16 }
0x2b67   : > { %v4349_v15 = vmul.f32 0.5, %v4348_v36 }
0x2b68   : > { %v4358_v44 = vmul.f32 %v6915_v2, %v4356_v39 }
0x2b69   : > { %v4350_v42 = vsub.f32 1.5, %v4349_v15 }
0x2b6a   : > { %v4360_v4 = vadd.f32 %v6920_v12, %v4358_v44  ;;  %v5877_v44 = vld [vmem:[%s7265_s16 + $0x1] ss:$0 sm:$0xff] }
0x2b6b   : > { %v4351_v40 = vmul.f32 %v5866_v38, %v4350_v42 }
0x2b6d   : > { %v4355_v41 = vsel %vm4354_vm9, %v5866_v38, %v4351_v40 }
0x2b6e   : > { %v4357_v37 = vmul.f32 %v4355_v41, %v4323_v6 }
0x2b70   : > { %v4359_v47 = vmul.f32 %v6915_v2, %v4357_v37 }
0x2b72   : > { %v4361_v53 = vadd.f32 %v6920_v12, %v4359_v47 }
0x2b74   : > { %v4362_v54 = vpack.c.bf16 %v4361_v53, %v4360_v4 }
0x2b76   : > { %5460 = vmatmul.msk.bf16.vlgmr.msra.gmra.mxu2 %vm729_vm0, %v4362_v54  ;;  %v5716_v54 = vld [vmem:[%s7268_s19] ss:$0 sm:$0xff] }
0x2bf9   : > { %v4397_v59 = vpop.f32.mrf.mxu2 }
0x2bfa   : > { %v4398_v9 = vadd.f32 %v5714_v46, %v4397_v59 }
0x2bfc   : > { %v4402_v58 = vmax.f32 %v4398_v9, 0.0 }
0x2c01   : > { %v4399_v20 = vpop.f32.mrf.mxu2 }
0x2c02   : > { %v4400_v21 = vadd.f32 %v5714_v46, %v4399_v20 }
0x2c04   : > { %v4403_v5 = vmax.f32 %v4400_v21, 0.0 }
0x2c06   : > { %v4404_v43 = vpack.c.bf16 %v4403_v5, %v4402_v58 }
0x2c08   : > { %5486 = vmatmul.msk.bf16.vlgmr.msra.gmra.mxu3 %vm2542_vm5, %v4404_v43 }
0x2c8b   : > { %v4455_v49 = vpop.f32.mrf.mxu3 }
0x2c8c   : > { %v4456_v61 = vadd.f32 %v5715_v48, %v4455_v49 }
0x2c8e   : > { %v4460_v62 = vadd.f32 %v4456_v61, %v4360_v4 }
0x2c90   : > { %v4462_v51 = vsel %vm729_vm0, %v4460_v62, 0.0 }
0x2c91   : > { %4463 = vadd.xlane.f32.xlu0 %v4462_v51 }
0x2c93   : > { %v4457_v63 = vpop.f32.mrf.mxu3 }
0x2c94   : > { %v4458_v1 = vadd.f32 %v5715_v48, %v4457_v63 }
0x2c96   : > { %v4461_v10 = vadd.f32 %v4458_v1, %v4361_v53 }
0x2c98   : > { %v4465_v8 = vsel %vm729_vm0, %v4461_v10, 0.0 }
0x2c99   : > { %4466 = vadd.xlane.f32.xlu1 %v4465_v8 }
0x2d04   : > { %v4464_v14 = vpop.xlane.xlu0 %4463 }
0x2d05   : > { %v4468_v13 = vmul.f32 %v4464_v14, %v6346_v3 }
0x2d07   : > { %v4470_v25 = vsub.f32 %v4460_v62, %v4468_v13 }
0x2d09   : > { %v4472_v16 = vmul.f32 %v4470_v25, %v4470_v25 }
0x2d0b   : > { %v4474_v17 = vsel %vm729_vm0, %v4472_v16, 0.0 }
0x2d0c   : > { %v4467_v19 = vpop.xlane.xlu1 %4466  ;;  %4475 = vadd.xlane.f32.xlu2 %v4474_v17 }
0x2d0d   : > { %v4469_v18 = vmul.f32 %v4467_v19, %v6346_v3 }
0x2d0f   : > { %v4471_v22 = vsub.f32 %v4461_v10, %v4469_v18 }
0x2d11   : > { %v4473_v6 = vmul.f32 %v4471_v22, %v4471_v22 }
0x2d13   : > { %v4477_v26 = vsel %vm729_vm0, %v4473_v6, 0.0 }
0x2d14   : > { %4478 = vadd.xlane.f32.xlu0 %v4477_v26 }
0x2d7f   : > { %v4476_v24 = vpop.xlane.xlu2 %4475 }
0x2d80   : > { %v4480_v28 = vmul.f32 %v4476_v24, %v6346_v3 }
0x2d82   : > { %v4482_v27 = vadd.f32 1e-05, %v4480_v28 }
0x2d84   : > { %5867 = vrsqrt.f32 %v4482_v27  ;;  %vm4490_vm10 = vweird.f32 %v4482_v27 }
0x2d87   : > { %v4479_v52 = vpop.xlane.xlu0 %4478 }
0x2d88   : > { %v4481_v29 = vmul.f32 %v4479_v52, %v6346_v3 }
0x2d8a   : > { %v5868_v56 = vpop.eup %5867  ;;  %v4483_v60 = vadd.f32 1e-05, %v4481_v29 }
0x2d8b   : > { %v4485_v7 = vmul.f32 %v5868_v56, %v4482_v27  ;;  %vm4491_vm5 = vweird.f32 %v5868_v56 }
0x2d8c   : > { %5869 = vrsqrt.f32 %v4483_v60  ;;  %vm4492_vm11 = vmor %vm4490_vm10, %vm4491_vm5  ;;  %vm4500_vm12 = vweird.f32 %v4483_v60 }
0x2d8d   : > { %v4486_v0 = vmul.f32 %v5868_v56, %v4485_v7 }
0x2d8f   : > { %v4487_v57 = vmul.f32 0.5, %v4486_v0 }
0x2d91   : > { %v4488_v45 = vsub.f32 1.5, %v4487_v57 }
0x2d92   : > { %v5870_v33 = vpop.eup %5869 }
0x2d93   : > { %v4489_v38 = vmul.f32 %v5868_v56, %v4488_v45  ;;  %v4495_v50 = vmul.f32 %v5870_v33, %v4483_v60  ;;  %vm4501_vm2 = vweird.f32 %v5870_v33 }
0x2d94   : > { %vm4502_vm13 = vmor %vm4500_vm12, %vm4501_vm2 }
0x2d95   : > { %v4496_v30 = vmul.f32 %v5870_v33, %v4495_v50  ;;  %v4493_v36 = vsel %vm4492_vm11, %v5868_v56, %v4489_v38 }
0x2d96   : > { %v4504_v3 = vmul.f32 %v4493_v36, %v4470_v25 }
0x2d97   : > { %v4497_v32 = vmul.f32 0.5, %v4496_v30 }
0x2d98   : > { %v4506_v40 = vmul.f32 %v6915_v2, %v4504_v3 }
0x2d99   : > { %v4498_v15 = vsub.f32 1.5, %v4497_v32 }
0x2d9a   : > { %v4508_v47 = vadd.f32 %v6920_v12, %v4506_v40 }
0x2d9b   : > { %v4499_v42 = vmul.f32 %v5870_v33, %v4498_v15 }
0x2d9d   : > { %v4503_v39 = vsel %vm4502_vm13, %v5870_v33, %v4499_v42 }
0x2d9e   : > { %v4505_v41 = vmul.f32 %v4503_v39, %v4471_v22 }
0x2da0   : > { %v4507_v37 = vmul.f32 %v5877_v44, %v4505_v41 }
0x2da2   : > { %v4509_v4 = vadd.f32 %v6920_v12, %v4507_v37 }
0x2da4   : > { %v4510_v53 = vpack.c.bf16 %v4509_v4, %v4508_v47 }
0x2da6   : > { %5495 = vmatmul.msk.bf16.vlgmr.msrb.gmra.mxu0 %vm729_vm0, %v4510_v53 }
0x2e23   : > { %v4543_v2 = vpop.f32.mrf.mxu0 }
0x2e24   : > { %v4544_v55 = vadd.f32 %v5716_v54, %v4543_v2 }
0x2e26   : > { %4548 = vst [vmem:[%s669_s0] sm:$0xff] %v4544_v55 }
0x2e2b   : > { %v4545_v12 = vpop.f32.mrf.mxu0 }
0x2e2c   : > { %v4546_v11 = vadd.f32 %v5716_v54, %v4545_v12 }
0x2e2e   : > { %4549 = vst [vmem:[%s669_s0 + $0x8] sm:$0xff] %v4546_v11 }
0x2e2f   : > { %5905 = shalt.err (!%p5902_p7)
}
0x2e30   : > { %s5943_s20 = smov 128   ;;  %s5944_s0 = smov 8  }
0x2e31   : > { %5614 = dma.vmem_to_hbm [thread:$0]  (%p6088_p5), %s4564_s3, 256, %s4566_s23, %s4551_s5, %s5943_s20, %s5943_s20, %s5944_s0  }
0x2e32 PF: > { %s7306_s26 = sld [smem:[#allocation7_spill]] }
0x2e33   : > { %s7307_s6 = sld [smem:[#allocation5_spill]] }
0x2e38   : > { %p5620_p8 = scmp.ge.s32.totalorder %s7306_s26, 2 }
0x2e39   : > { %s4580_s2 = sand.u32 1, %s7307_s6  }
0x2e3a   : > { %p5617_p9 = pnand %p5620_p8, %p6092_p6  ;;  %s4581_s28 = scalar_lea.sflag [#allocation3], %s4580_s2 }
0x2e3c   : > { %p5618_p10 = pneg %p5617_p9 }
0x2e3e   : > { %5923 = dma.done.wait (%p5618_p10), %s4581_s28, 256  }
0x2e3f   : > { %5925 = vsyncadd (%p5618_p10), %s4581_s28, 4294967040  ;;  %s7309_s24 = sld [smem:[#allocation8_spill]]  ;;  %s7312_s1 = smov %s5932_s22 }
0x2e40   : > { %s7310_s29 = sld [smem:[#allocation6_spill]] }
0x2e41   : > { %s7311_s23 = sld [smem:[#allocation9_spill]] }
0x2e45   : > { %p30_p11 = scmp.ge.s32.totalorder %s7309_s24, 4  }
0x2e46   : > { %s7313_s22 = smov %s7310_s29 }
0x2e47   :  { %32 = sbr.rel (!%p30_p11) target bundleno = 13 (0xd), region = 258 }
0x2e4c   :  { %4587 = vsyncpa [#allocation3], 1 }
0x2e4d   :  { %4589 = vsyncpa [#allocation3 + $0x1], 1 }

</bundles_post_ra>
